<compile_context>
chip_gen: v7x
topology: tpu7x:2x2x1
jax: 0.10.0
libtpu: 0.0.40
codegen_flags: <defaults>
</compile_context>

<pallas_src>
import functools

import jax
import jax.numpy as jnp
from jax.experimental import pallas as pl
from jax.experimental.pallas import tpu as pltpu


# ----------------------------- Pallas kernels ------------------------------

def _conv3x3_kernel(x0_ref, x1_ref, x2_ref, w_ref, b_ref, o_ref, *, out_w, relu):
    """One output row of a 3x3 / stride-1 / pad-1 conv, bias + ReLU fused.

    x{k}_ref : (1, 1, W+2, Cin)  padded input row h+k        (bf16)
    w_ref    : (9, Cin, Cout)    tap-major weights, resident (bf16)
    b_ref    : (1, Cout)         bias, resident              (f32)
    o_ref    : (1, 1, W, Cout)   output row                  (bf16)
    """
    rows = (x0_ref[0, 0], x1_ref[0, 0], x2_ref[0, 0])     # each (W+2, Cin)
    cout = w_ref.shape[-1]
    acc = jnp.zeros((out_w, cout), jnp.float32)
    for kh in range(3):
        row = rows[kh]
        for kw in range(3):
            acc += jnp.dot(row[kw:kw + out_w, :], w_ref[kh * 3 + kw],
                           preferred_element_type=jnp.float32)
    acc = acc + b_ref[...]
    if relu:
        acc = jnp.maximum(acc, 0.0)
    o_ref[0, 0] = acc.astype(o_ref.dtype)


def _maxpool2x2_kernel(x_ref, o_ref, *, channels):
    """MaxPool2d(2, 2) over two input rows whose W-pairs are lane-folded.

    x_ref : (1, 2, W//2, 2*C)  rows 2h, 2h+1 with (even_w | odd_w) channels
    o_ref : (1, 1, W//2, C)
    """
    top = x_ref[0, 0]                        # (W//2, 2C)
    bot = x_ref[0, 1]
    m = jnp.maximum(top, bot)                # max over the H pair
    o_ref[0, 0] = jnp.maximum(m[:, :channels], m[:, channels:])   # max over W pair


# ------------------------------ wrappers ------------------------------------

def conv3x3_relu(x_nhwc, w_hwio, b, *, relu=True):
    """3x3 conv, stride 1, padding 1 (PyTorch Conv2d semantics), fused ReLU.

    Returns bf16 NHWC activations.
    """
    N, H, W, Cin = x_nhwc.shape
    Cout = w_hwio.shape[-1]

    # Pad channels up to a multiple of 8 (only matters for layer 0: 3 -> 8).
    cin_p = (Cin + 7) // 8 * 8
    xp = jnp.pad(x_nhwc, ((0, 0), (1, 1), (1, 1), (0, cin_p - Cin)))
    xp = xp.astype(jnp.bfloat16)

    w = w_hwio.reshape(9, Cin, Cout)
    if cin_p != Cin:
        w = jnp.pad(w, ((0, 0), (0, cin_p - Cin), (0, 0)))
    w = w.astype(jnp.bfloat16)
    bias = b.reshape(1, Cout).astype(jnp.float32)

    # Three kh-shifted views of the same padded input: block size 1 along the
    # padded-H axis makes the block index an element offset, so index_map can
    # return (n, h + kh) directly -- no im2col materialization.
    row_specs = [
        pl.BlockSpec((1, 1, W + 2, cin_p), lambda n, h, kh=kh: (n, h + kh, 0, 0))
        for kh in range(3)
    ]
    in_specs = row_specs + [
        pl.BlockSpec((9, cin_p, Cout), lambda n, h: (0, 0, 0)),   # resident weights
        pl.BlockSpec((1, Cout), lambda n, h: (0, 0)),             # resident bias
    ]
    out_spec = pl.BlockSpec((1, 1, W, Cout), lambda n, h: (n, h, 0, 0))

    flops = 2 * N * H * W * 9 * cin_p * Cout
    bytes_accessed = (3 * N * (H + 2) * (W + 2) * cin_p * 2      # bf16 input rows
                      + 9 * cin_p * Cout * 2                     # bf16 weights
                      + N * H * W * Cout * 2                     # bf16 output
                      + 4 * Cout)                                # f32 bias

    out = pl.pallas_call(
        functools.partial(_conv3x3_kernel, out_w=W, relu=relu),
        out_shape=jax.ShapeDtypeStruct((N, H, W, Cout), jnp.bfloat16),
        grid=(N, H),
        in_specs=in_specs,
        out_specs=out_spec,
        compiler_params=pltpu.CompilerParams(
            dimension_semantics=("parallel", "parallel")),
        cost_estimate=pl.CostEstimate(flops=flops, transcendentals=0,
                                      bytes_accessed=bytes_accessed),
    )(xp, xp, xp, w, bias)
    return out


def maxpool2x2(x_nhwc):
    """MaxPool2d(kernel_size=2, stride=2).  Assumes even H, W (true for VGG)."""
    N, H, W, C = x_nhwc.shape
    Ho, Wo = H // 2, W // 2
    # Fold W pairs into the channel (lane) dim; row-major reshape is free.
    xr = x_nhwc.reshape(N, H, Wo, 2 * C)

    out = pl.pallas_call(
        functools.partial(_maxpool2x2_kernel, channels=C),
        out_shape=jax.ShapeDtypeStruct((N, Ho, Wo, C), x_nhwc.dtype),
        grid=(N, Ho),
        in_specs=[pl.BlockSpec((1, 2, Wo, 2 * C), lambda n, h: (n, h, 0, 0))],
        out_specs=pl.BlockSpec((1, 1, Wo, C), lambda n, h: (n, h, 0, 0)),
        compiler_params=pltpu.CompilerParams(
            dimension_semantics=("parallel", "parallel")),
        cost_estimate=pl.CostEstimate(
            flops=3 * N * Ho * Wo * C, transcendentals=0,
            bytes_accessed=N * H * W * C * 2 + N * Ho * Wo * C * 2),
    )(xr)
    return out


# --------------------------- parameters / forward ---------------------------

# VGG19.features conv layers up to index 15: layer_index -> (Cin, Cout)
_VGG_CFG = {0: (3, 64), 2: (64, 64), 5: (64, 128), 7: (128, 128),
            10: (128, 256), 12: (256, 256), 14: (256, 256)}


def init_params(key):
    """Deterministic synthetic weights with VGG19 shapes (HWIO layout, f32)."""
    params = {}
    for idx in sorted(_VGG_CFG):
        cin, cout = _VGG_CFG[idx]
        key, kw, kb = jax.random.split(key, 3)
        fan_in = 9 * cin
        w = jax.random.normal(kw, (3, 3, cin, cout), jnp.float32) * jnp.sqrt(2.0 / fan_in)
        b = jax.random.normal(kb, (cout,), jnp.float32) * 0.01
        params[idx] = (w, b)
    return params


def pretrained_net_forward(x_nchw, params):
    """Equivalent of PretrainedNet.forward: returns the 5 selected features (NCHW, f32)."""
    x = jnp.transpose(x_nchw, (0, 2, 3, 1)).astype(jnp.bfloat16)   # NCHW -> NHWC
    f0 = conv3x3_relu(x, *params[0])                  # layer 0 (+ inplace ReLU 1)
    a = conv3x3_relu(f0, *params[2])                  # layers 2, 3
    a = maxpool2x2(a)                                 # layer 4
    f1 = conv3x3_relu(a, *params[5])                  # layer 5 (+ 6)
    f2 = conv3x3_relu(f1, *params[7])                 # layer 7 (+ 8)
    a = maxpool2x2(f2)                                # layer 9
    f3 = conv3x3_relu(a, *params[10])                 # layer 10 (+ 11)
    a = conv3x3_relu(f3, *params[12])                 # layers 12, 13
    f4 = conv3x3_relu(a, *params[14])                 # layers 14, 15 (selected)
    feats = [f0, f1, f2, f3, f4]
    # Back to NCHW, f32 like the PyTorch module's outputs.
    return [jnp.transpose(f, (0, 3, 1, 2)).astype(jnp.float32) for f in feats]


# ---------------------------------- main -------------------------------------

if __name__ == "__main__":
    key = jax.random.PRNGKey(0)
    kx, kp = jax.random.split(key)
    # VGG takes 3-channel images; small spatial size for the test.
    x = jax.random.normal(kx, (2, 3, 16, 16), jnp.float32)  # NCHW, like PyTorch
    params = init_params(kp)

    fwd = jax.jit(lambda inp: pretrained_net_forward(inp, params))
    feats = jax.block_until_ready(fwd(x))

    expected = [(2, 64, 16, 16), (2, 128, 8, 8), (2, 128, 8, 8),
                (2, 256, 4, 4), (2, 256, 4, 4)]
    got = [tuple(f.shape) for f in feats]
    assert got == expected, (got, expected)
    assert all(f.dtype == jnp.float32 for f in feats)
    assert all(bool(jnp.isfinite(f).all()) for f in feats)

    print("KERNEL_OK")
</pallas_src>

<mosaic_0001>
module attributes {stable_mosaic.version = 11 : i64} {
  func.func @_conv3x3_kernel(%arg0: i32, %arg1: i32, %arg2: memref<1x1x18x8xbf16, #tpu.memory_space<vmem>>, %arg3: memref<1x1x18x8xbf16, #tpu.memory_space<vmem>>, %arg4: memref<1x1x18x8xbf16, #tpu.memory_space<vmem>>, %arg5: memref<9x8x64xbf16, #tpu.memory_space<vmem>>, %arg6: memref<1x64xf32, #tpu.memory_space<vmem>>, %arg7: memref<1x1x16x64xbf16, #tpu.memory_space<vmem>>) attributes {dimension_semantics = [#tpu.dimension_semantics<parallel>, #tpu.dimension_semantics<parallel>], iteration_bounds = array<i64: 2, 16>, scalar_prefetch = 0 : i64, scratch_operands = 0 : i64, tpu.core_type = #tpu.core_type<tc>, window_params = [{transform_indices = @transform_0, window_bounds = array<i64: 1, 1, 18, 8>}, {transform_indices = @transform_1, window_bounds = array<i64: 1, 1, 18, 8>}, {transform_indices = @transform_2, window_bounds = array<i64: 1, 1, 18, 8>}, {pipeline_mode = #tpu.pipeline_mode<synchronous>, transform_indices = @transform_3, window_bounds = array<i64: 9, 8, 64>}, {pipeline_mode = #tpu.pipeline_mode<synchronous>, transform_indices = @transform_4, window_bounds = array<i64: 1, 64>}, {transform_indices = @transform_5, window_bounds = array<i64: 1, 1, 16, 64>}]} {
    %c0 = arith.constant 0 : index
    %c0_0 = arith.constant 0 : index
    %c0_1 = arith.constant 0 : index
    %c0_2 = arith.constant 0 : index
    %0 = vector.load %arg2[%c0, %c0_0, %c0_1, %c0_2] : memref<1x1x18x8xbf16, #tpu.memory_space<vmem>>, vector<1x1x18x8xbf16>
    %1 = vector.shape_cast %0 : vector<1x1x18x8xbf16> to vector<18x8xbf16>
    %c0_3 = arith.constant 0 : index
    %c0_4 = arith.constant 0 : index
    %c0_5 = arith.constant 0 : index
    %c0_6 = arith.constant 0 : index
    %2 = vector.load %arg3[%c0_3, %c0_4, %c0_5, %c0_6] : memref<1x1x18x8xbf16, #tpu.memory_space<vmem>>, vector<1x1x18x8xbf16>
    %3 = vector.shape_cast %2 : vector<1x1x18x8xbf16> to vector<18x8xbf16>
    %c0_7 = arith.constant 0 : index
    %c0_8 = arith.constant 0 : index
    %c0_9 = arith.constant 0 : index
    %c0_10 = arith.constant 0 : index
    %4 = vector.load %arg4[%c0_7, %c0_8, %c0_9, %c0_10] : memref<1x1x18x8xbf16, #tpu.memory_space<vmem>>, vector<1x1x18x8xbf16>
    %5 = vector.shape_cast %4 : vector<1x1x18x8xbf16> to vector<18x8xbf16>
    %cst = arith.constant 0.000000e+00 : f32
    %6 = vector.broadcast %cst : f32 to vector<16x64xf32>
    %7 = vector.extract_strided_slice %1 {offsets = [0, 0], sizes = [16, 8], strides = [1, 1]} : vector<18x8xbf16> to vector<16x8xbf16>
    %c0_11 = arith.constant 0 : index
    %c0_12 = arith.constant 0 : index
    %c0_13 = arith.constant 0 : index
    %8 = vector.load %arg5[%c0_11, %c0_12, %c0_13] : memref<9x8x64xbf16, #tpu.memory_space<vmem>>, vector<1x8x64xbf16>
    %9 = vector.shape_cast %8 : vector<1x8x64xbf16> to vector<8x64xbf16>
    %cst_14 = arith.constant dense<0.000000e+00> : vector<16x64xf32>
    %10 = tpu.matmul %7, %9, %cst_14 {dimension_numbers = #tpu.dot_dimension_numbers<[1], [0], [0], [1], [0, 0, 1, 1], [], []>} : vector<16x8xbf16>, vector<8x64xbf16>, vector<16x64xf32> -> vector<16x64xf32>
    %11 = arith.addf %6, %10 : vector<16x64xf32>
    %12 = vector.extract_strided_slice %1 {offsets = [1, 0], sizes = [16, 8], strides = [1, 1]} : vector<18x8xbf16> to vector<16x8xbf16>
    %c1 = arith.constant 1 : index
    %c0_15 = arith.constant 0 : index
    %c0_16 = arith.constant 0 : index
    %13 = vector.load %arg5[%c1, %c0_15, %c0_16] : memref<9x8x64xbf16, #tpu.memory_space<vmem>>, vector<1x8x64xbf16>
    %14 = vector.shape_cast %13 : vector<1x8x64xbf16> to vector<8x64xbf16>
    %cst_17 = arith.constant dense<0.000000e+00> : vector<16x64xf32>
    %15 = tpu.matmul %12, %14, %cst_17 {dimension_numbers = #tpu.dot_dimension_numbers<[1], [0], [0], [1], [0, 0, 1, 1], [], []>} : vector<16x8xbf16>, vector<8x64xbf16>, vector<16x64xf32> -> vector<16x64xf32>
    %16 = arith.addf %11, %15 : vector<16x64xf32>
    %17 = vector.extract_strided_slice %1 {offsets = [2, 0], sizes = [16, 8], strides = [1, 1]} : vector<18x8xbf16> to vector<16x8xbf16>
    %c2 = arith.constant 2 : index
    %c0_18 = arith.constant 0 : index
    %c0_19 = arith.constant 0 : index
    %18 = vector.load %arg5[%c2, %c0_18, %c0_19] : memref<9x8x64xbf16, #tpu.memory_space<vmem>>, vector<1x8x64xbf16>
    %19 = vector.shape_cast %18 : vector<1x8x64xbf16> to vector<8x64xbf16>
    %cst_20 = arith.constant dense<0.000000e+00> : vector<16x64xf32>
    %20 = tpu.matmul %17, %19, %cst_20 {dimension_numbers = #tpu.dot_dimension_numbers<[1], [0], [0], [1], [0, 0, 1, 1], [], []>} : vector<16x8xbf16>, vector<8x64xbf16>, vector<16x64xf32> -> vector<16x64xf32>
    %21 = arith.addf %16, %20 : vector<16x64xf32>
    %22 = vector.extract_strided_slice %3 {offsets = [0, 0], sizes = [16, 8], strides = [1, 1]} : vector<18x8xbf16> to vector<16x8xbf16>
    %c3 = arith.constant 3 : index
    %c0_21 = arith.constant 0 : index
    %c0_22 = arith.constant 0 : index
    %23 = vector.load %arg5[%c3, %c0_21, %c0_22] : memref<9x8x64xbf16, #tpu.memory_space<vmem>>, vector<1x8x64xbf16>
    %24 = vector.shape_cast %23 : vector<1x8x64xbf16> to vector<8x64xbf16>
    %cst_23 = arith.constant dense<0.000000e+00> : vector<16x64xf32>
    %25 = tpu.matmul %22, %24, %cst_23 {dimension_numbers = #tpu.dot_dimension_numbers<[1], [0], [0], [1], [0, 0, 1, 1], [], []>} : vector<16x8xbf16>, vector<8x64xbf16>, vector<16x64xf32> -> vector<16x64xf32>
    %26 = arith.addf %21, %25 : vector<16x64xf32>
    %27 = vector.extract_strided_slice %3 {offsets = [1, 0], sizes = [16, 8], strides = [1, 1]} : vector<18x8xbf16> to vector<16x8xbf16>
    %c4 = arith.constant 4 : index
    %c0_24 = arith.constant 0 : index
    %c0_25 = arith.constant 0 : index
    %28 = vector.load %arg5[%c4, %c0_24, %c0_25] : memref<9x8x64xbf16, #tpu.memory_space<vmem>>, vector<1x8x64xbf16>
    %29 = vector.shape_cast %28 : vector<1x8x64xbf16> to vector<8x64xbf16>
    %cst_26 = arith.constant dense<0.000000e+00> : vector<16x64xf32>
    %30 = tpu.matmul %27, %29, %cst_26 {dimension_numbers = #tpu.dot_dimension_numbers<[1], [0], [0], [1], [0, 0, 1, 1], [], []>} : vector<16x8xbf16>, vector<8x64xbf16>, vector<16x64xf32> -> vector<16x64xf32>
    %31 = arith.addf %26, %30 : vector<16x64xf32>
    %32 = vector.extract_strided_slice %3 {offsets = [2, 0], sizes = [16, 8], strides = [1, 1]} : vector<18x8xbf16> to vector<16x8xbf16>
    %c5 = arith.constant 5 : index
    %c0_27 = arith.constant 0 : index
    %c0_28 = arith.constant 0 : index
    %33 = vector.load %arg5[%c5, %c0_27, %c0_28] : memref<9x8x64xbf16, #tpu.memory_space<vmem>>, vector<1x8x64xbf16>
    %34 = vector.shape_cast %33 : vector<1x8x64xbf16> to vector<8x64xbf16>
    %cst_29 = arith.constant dense<0.000000e+00> : vector<16x64xf32>
    %35 = tpu.matmul %32, %34, %cst_29 {dimension_numbers = #tpu.dot_dimension_numbers<[1], [0], [0], [1], [0, 0, 1, 1], [], []>} : vector<16x8xbf16>, vector<8x64xbf16>, vector<16x64xf32> -> vector<16x64xf32>
    %36 = arith.addf %31, %35 : vector<16x64xf32>
    %37 = vector.extract_strided_slice %5 {offsets = [0, 0], sizes = [16, 8], strides = [1, 1]} : vector<18x8xbf16> to vector<16x8xbf16>
    %c6 = arith.constant 6 : index
    %c0_30 = arith.constant 0 : index
    %c0_31 = arith.constant 0 : index
    %38 = vector.load %arg5[%c6, %c0_30, %c0_31] : memref<9x8x64xbf16, #tpu.memory_space<vmem>>, vector<1x8x64xbf16>
    %39 = vector.shape_cast %38 : vector<1x8x64xbf16> to vector<8x64xbf16>
    %cst_32 = arith.constant dense<0.000000e+00> : vector<16x64xf32>
    %40 = tpu.matmul %37, %39, %cst_32 {dimension_numbers = #tpu.dot_dimension_numbers<[1], [0], [0], [1], [0, 0, 1, 1], [], []>} : vector<16x8xbf16>, vector<8x64xbf16>, vector<16x64xf32> -> vector<16x64xf32>
    %41 = arith.addf %36, %40 : vector<16x64xf32>
    %42 = vector.extract_strided_slice %5 {offsets = [1, 0], sizes = [16, 8], strides = [1, 1]} : vector<18x8xbf16> to vector<16x8xbf16>
    %c7 = arith.constant 7 : index
    %c0_33 = arith.constant 0 : index
    %c0_34 = arith.constant 0 : index
    %43 = vector.load %arg5[%c7, %c0_33, %c0_34] : memref<9x8x64xbf16, #tpu.memory_space<vmem>>, vector<1x8x64xbf16>
    %44 = vector.shape_cast %43 : vector<1x8x64xbf16> to vector<8x64xbf16>
    %cst_35 = arith.constant dense<0.000000e+00> : vector<16x64xf32>
    %45 = tpu.matmul %42, %44, %cst_35 {dimension_numbers = #tpu.dot_dimension_numbers<[1], [0], [0], [1], [0, 0, 1, 1], [], []>} : vector<16x8xbf16>, vector<8x64xbf16>, vector<16x64xf32> -> vector<16x64xf32>
    %46 = arith.addf %41, %45 : vector<16x64xf32>
    %47 = vector.extract_strided_slice %5 {offsets = [2, 0], sizes = [16, 8], strides = [1, 1]} : vector<18x8xbf16> to vector<16x8xbf16>
    %c8 = arith.constant 8 : index
    %c0_36 = arith.constant 0 : index
    %c0_37 = arith.constant 0 : index
    %48 = vector.load %arg5[%c8, %c0_36, %c0_37] : memref<9x8x64xbf16, #tpu.memory_space<vmem>>, vector<1x8x64xbf16>
    %49 = vector.shape_cast %48 : vector<1x8x64xbf16> to vector<8x64xbf16>
    %cst_38 = arith.constant dense<0.000000e+00> : vector<16x64xf32>
    %50 = tpu.matmul %47, %49, %cst_38 {dimension_numbers = #tpu.dot_dimension_numbers<[1], [0], [0], [1], [0, 0, 1, 1], [], []>} : vector<16x8xbf16>, vector<8x64xbf16>, vector<16x64xf32> -> vector<16x64xf32>
    %51 = arith.addf %46, %50 : vector<16x64xf32>
    %c0_39 = arith.constant 0 : index
    %c0_40 = arith.constant 0 : index
    %52 = vector.load %arg6[%c0_39, %c0_40] : memref<1x64xf32, #tpu.memory_space<vmem>>, vector<1x64xf32>
    %53 = vector.broadcast %52 : vector<1x64xf32> to vector<16x64xf32>
    %54 = arith.addf %51, %53 : vector<16x64xf32>
    %cst_41 = arith.constant 0.000000e+00 : f32
    %55 = vector.broadcast %cst_41 : f32 to vector<16x64xf32>
    %56 = arith.maximumf %54, %55 : vector<16x64xf32>
    %57 = arith.truncf %56 : vector<16x64xf32> to vector<16x64xbf16>
    %c0_42 = arith.constant 0 : index
    %c0_43 = arith.constant 0 : index
    %c0_44 = arith.constant 0 : index
    %c0_45 = arith.constant 0 : index
    %58 = vector.load %arg7[%c0_42, %c0_43, %c0_44, %c0_45] : memref<1x1x16x64xbf16, #tpu.memory_space<vmem>>, vector<1x1x16x64xbf16>
    %59 = vector.shape_cast %58 : vector<1x1x16x64xbf16> to vector<16x64xbf16>
    %60 = vector.shape_cast %57 : vector<16x64xbf16> to vector<1x1x16x64xbf16>
    tpu.vector_store %arg7[%c0_42, %c0_43, %c0_44, %c0_45], %60 {strides = array<i32>} : memref<1x1x16x64xbf16, #tpu.memory_space<vmem>>, vector<1x1x16x64xbf16>,
    return
  }
  func.func @transform_0(%arg0: i32, %arg1: i32) -> (i32, i32, i32, i32) {
    %c0_i32 = arith.constant 0 : i32
    %0 = arith.addi %arg1, %c0_i32 : i32
    %c0_i32_0 = arith.constant 0 : i32
    %c0_i32_1 = arith.constant 0 : i32
    %c0_i32_2 = arith.constant 0 : i32
    return %arg0, %0, %c0_i32_0, %c0_i32_1 : i32, i32, i32, i32
  }
  func.func @transform_1(%arg0: i32, %arg1: i32) -> (i32, i32, i32, i32) {
    %c1_i32 = arith.constant 1 : i32
    %0 = arith.addi %arg1, %c1_i32 : i32
    %c0_i32 = arith.constant 0 : i32
    %c0_i32_0 = arith.constant 0 : i32
    %c0_i32_1 = arith.constant 0 : i32
    return %arg0, %0, %c0_i32, %c0_i32_0 : i32, i32, i32, i32
  }
  func.func @transform_2(%arg0: i32, %arg1: i32) -> (i32, i32, i32, i32) {
    %c2_i32 = arith.constant 2 : i32
    %0 = arith.addi %arg1, %c2_i32 : i32
    %c0_i32 = arith.constant 0 : i32
    %c0_i32_0 = arith.constant 0 : i32
    %c0_i32_1 = arith.constant 0 : i32
    return %arg0, %0, %c0_i32, %c0_i32_0 : i32, i32, i32, i32
  }
  func.func @transform_3(%arg0: i32, %arg1: i32) -> (i32, i32, i32) {
    %c0_i32 = arith.constant 0 : i32
    %c0_i32_0 = arith.constant 0 : i32
    %c0_i32_1 = arith.constant 0 : i32
    %c0_i32_2 = arith.constant 0 : i32
    return %c0_i32, %c0_i32_0, %c0_i32_1 : i32, i32, i32
  }
  func.func @transform_4(%arg0: i32, %arg1: i32) -> (i32, i32) {
    %c0_i32 = arith.constant 0 : i32
    %c0_i32_0 = arith.constant 0 : i32
    %c0_i32_1 = arith.constant 0 : i32
    return %c0_i32, %c0_i32_0 : i32, i32
  }
  func.func @transform_5(%arg0: i32, %arg1: i32) -> (i32, i32, i32, i32) {
    %c0_i32 = arith.constant 0 : i32
    %c0_i32_0 = arith.constant 0 : i32
    %c0_i32_1 = arith.constant 0 : i32
    return %arg0, %arg1, %c0_i32, %c0_i32_0 : i32, i32, i32, i32
  }
}

module attributes {stable_mosaic.version = 11 : i64} {
  func.func @_conv3x3_kernel(%arg0: i32, %arg1: i32, %arg2: memref<1x1x18x64xbf16, #tpu.memory_space<vmem>>, %arg3: memref<1x1x18x64xbf16, #tpu.memory_space<vmem>>, %arg4: memref<1x1x18x64xbf16, #tpu.memory_space<vmem>>, %arg5: memref<9x64x64xbf16, #tpu.memory_space<vmem>>, %arg6: memref<1x64xf32, #tpu.memory_space<vmem>>, %arg7: memref<1x1x16x64xbf16, #tpu.memory_space<vmem>>) attributes {dimension_semantics = [#tpu.dimension_semantics<parallel>, #tpu.dimension_semantics<parallel>], iteration_bounds = array<i64: 2, 16>, scalar_prefetch = 0 : i64, scratch_operands = 0 : i64, tpu.core_type = #tpu.core_type<tc>, window_params = [{transform_indices = @transform_0, window_bounds = array<i64: 1, 1, 18, 64>}, {transform_indices = @transform_1, window_bounds = array<i64: 1, 1, 18, 64>}, {transform_indices = @transform_2, window_bounds = array<i64: 1, 1, 18, 64>}, {pipeline_mode = #tpu.pipeline_mode<synchronous>, transform_indices = @transform_3, window_bounds = array<i64: 9, 64, 64>}, {pipeline_mode = #tpu.pipeline_mode<synchronous>, transform_indices = @transform_4, window_bounds = array<i64: 1, 64>}, {transform_indices = @transform_5, window_bounds = array<i64: 1, 1, 16, 64>}]} {
    %c0 = arith.constant 0 : index
    %c0_0 = arith.constant 0 : index
    %c0_1 = arith.constant 0 : index
    %c0_2 = arith.constant 0 : index
    %0 = vector.load %arg2[%c0, %c0_0, %c0_1, %c0_2] : memref<1x1x18x64xbf16, #tpu.memory_space<vmem>>, vector<1x1x18x64xbf16>
    %1 = vector.shape_cast %0 : vector<1x1x18x64xbf16> to vector<18x64xbf16>
    %c0_3 = arith.constant 0 : index
    %c0_4 = arith.constant 0 : index
    %c0_5 = arith.constant 0 : index
    %c0_6 = arith.constant 0 : index
    %2 = vector.load %arg3[%c0_3, %c0_4, %c0_5, %c0_6] : memref<1x1x18x64xbf16, #tpu.memory_space<vmem>>, vector<1x1x18x64xbf16>
    %3 = vector.shape_cast %2 : vector<1x1x18x64xbf16> to vector<18x64xbf16>
    %c0_7 = arith.constant 0 : index
    %c0_8 = arith.constant 0 : index
    %c0_9 = arith.constant 0 : index
    %c0_10 = arith.constant 0 : index
    %4 = vector.load %arg4[%c0_7, %c0_8, %c0_9, %c0_10] : memref<1x1x18x64xbf16, #tpu.memory_space<vmem>>, vector<1x1x18x64xbf16>
    %5 = vector.shape_cast %4 : vector<1x1x18x64xbf16> to vector<18x64xbf16>
    %cst = arith.constant 0.000000e+00 : f32
    %6 = vector.broadcast %cst : f32 to vector<16x64xf32>
    %7 = vector.extract_strided_slice %1 {offsets = [0, 0], sizes = [16, 64], strides = [1, 1]} : vector<18x64xbf16> to vector<16x64xbf16>
    %c0_11 = arith.constant 0 : index
    %c0_12 = arith.constant 0 : index
    %c0_13 = arith.constant 0 : index
    %8 = vector.load %arg5[%c0_11, %c0_12, %c0_13] : memref<9x64x64xbf16, #tpu.memory_space<vmem>>, vector<1x64x64xbf16>
    %9 = vector.shape_cast %8 : vector<1x64x64xbf16> to vector<64x64xbf16>
    %cst_14 = arith.constant dense<0.000000e+00> : vector<16x64xf32>
    %10 = tpu.matmul %7, %9, %cst_14 {dimension_numbers = #tpu.dot_dimension_numbers<[1], [0], [0], [1], [0, 0, 1, 1], [], []>} : vector<16x64xbf16>, vector<64x64xbf16>, vector<16x64xf32> -> vector<16x64xf32>
    %11 = arith.addf %6, %10 : vector<16x64xf32>
    %12 = vector.extract_strided_slice %1 {offsets = [1, 0], sizes = [16, 64], strides = [1, 1]} : vector<18x64xbf16> to vector<16x64xbf16>
    %c1 = arith.constant 1 : index
    %c0_15 = arith.constant 0 : index
    %c0_16 = arith.constant 0 : index
    %13 = vector.load %arg5[%c1, %c0_15, %c0_16] : memref<9x64x64xbf16, #tpu.memory_space<vmem>>, vector<1x64x64xbf16>
    %14 = vector.shape_cast %13 : vector<1x64x64xbf16> to vector<64x64xbf16>
    %cst_17 = arith.constant dense<0.000000e+00> : vector<16x64xf32>
    %15 = tpu.matmul %12, %14, %cst_17 {dimension_numbers = #tpu.dot_dimension_numbers<[1], [0], [0], [1], [0, 0, 1, 1], [], []>} : vector<16x64xbf16>, vector<64x64xbf16>, vector<16x64xf32> -> vector<16x64xf32>
    %16 = arith.addf %11, %15 : vector<16x64xf32>
    %17 = vector.extract_strided_slice %1 {offsets = [2, 0], sizes = [16, 64], strides = [1, 1]} : vector<18x64xbf16> to vector<16x64xbf16>
    %c2 = arith.constant 2 : index
    %c0_18 = arith.constant 0 : index
    %c0_19 = arith.constant 0 : index
    %18 = vector.load %arg5[%c2, %c0_18, %c0_19] : memref<9x64x64xbf16, #tpu.memory_space<vmem>>, vector<1x64x64xbf16>
    %19 = vector.shape_cast %18 : vector<1x64x64xbf16> to vector<64x64xbf16>
    %cst_20 = arith.constant dense<0.000000e+00> : vector<16x64xf32>
    %20 = tpu.matmul %17, %19, %cst_20 {dimension_numbers = #tpu.dot_dimension_numbers<[1], [0], [0], [1], [0, 0, 1, 1], [], []>} : vector<16x64xbf16>, vector<64x64xbf16>, vector<16x64xf32> -> vector<16x64xf32>
    %21 = arith.addf %16, %20 : vector<16x64xf32>
    %22 = vector.extract_strided_slice %3 {offsets = [0, 0], sizes = [16, 64], strides = [1, 1]} : vector<18x64xbf16> to vector<16x64xbf16>
    %c3 = arith.constant 3 : index
    %c0_21 = arith.constant 0 : index
    %c0_22 = arith.constant 0 : index
    %23 = vector.load %arg5[%c3, %c0_21, %c0_22] : memref<9x64x64xbf16, #tpu.memory_space<vmem>>, vector<1x64x64xbf16>
    %24 = vector.shape_cast %23 : vector<1x64x64xbf16> to vector<64x64xbf16>
    %cst_23 = arith.constant dense<0.000000e+00> : vector<16x64xf32>
    %25 = tpu.matmul %22, %24, %cst_23 {dimension_numbers = #tpu.dot_dimension_numbers<[1], [0], [0], [1], [0, 0, 1, 1], [], []>} : vector<16x64xbf16>, vector<64x64xbf16>, vector<16x64xf32> -> vector<16x64xf32>
    %26 = arith.addf %21, %25 : vector<16x64xf32>
    %27 = vector.extract_strided_slice %3 {offsets = [1, 0], sizes = [16, 64], strides = [1, 1]} : vector<18x64xbf16> to vector<16x64xbf16>
    %c4 = arith.constant 4 : index
    %c0_24 = arith.constant 0 : index
    %c0_25 = arith.constant 0 : index
    %28 = vector.load %arg5[%c4, %c0_24, %c0_25] : memref<9x64x64xbf16, #tpu.memory_space<vmem>>, vector<1x64x64xbf16>
    %29 = vector.shape_cast %28 : vector<1x64x64xbf16> to vector<64x64xbf16>
    %cst_26 = arith.constant dense<0.000000e+00> : vector<16x64xf32>
    %30 = tpu.matmul %27, %29, %cst_26 {dimension_numbers = #tpu.dot_dimension_numbers<[1], [0], [0], [1], [0, 0, 1, 1], [], []>} : vector<16x64xbf16>, vector<64x64xbf16>, vector<16x64xf32> -> vector<16x64xf32>
    %31 = arith.addf %26, %30 : vector<16x64xf32>
    %32 = vector.extract_strided_slice %3 {offsets = [2, 0], sizes = [16, 64], strides = [1, 1]} : vector<18x64xbf16> to vector<16x64xbf16>
    %c5 = arith.constant 5 : index
    %c0_27 = arith.constant 0 : index
    %c0_28 = arith.constant 0 : index
    %33 = vector.load %arg5[%c5, %c0_27, %c0_28] : memref<9x64x64xbf16, #tpu.memory_space<vmem>>, vector<1x64x64xbf16>
    %34 = vector.shape_cast %33 : vector<1x64x64xbf16> to vector<64x64xbf16>
    %cst_29 = arith.constant dense<0.000000e+00> : vector<16x64xf32>
    %35 = tpu.matmul %32, %34, %cst_29 {dimension_numbers = #tpu.dot_dimension_numbers<[1], [0], [0], [1], [0, 0, 1, 1], [], []>} : vector<16x64xbf16>, vector<64x64xbf16>, vector<16x64xf32> -> vector<16x64xf32>
    %36 = arith.addf %31, %35 : vector<16x64xf32>
    %37 = vector.extract_strided_slice %5 {offsets = [0, 0], sizes = [16, 64], strides = [1, 1]} : vector<18x64xbf16> to vector<16x64xbf16>
    %c6 = arith.constant 6 : index
    %c0_30 = arith.constant 0 : index
    %c0_31 = arith.constant 0 : index
    %38 = vector.load %arg5[%c6, %c0_30, %c0_31] : memref<9x64x64xbf16, #tpu.memory_space<vmem>>, vector<1x64x64xbf16>
    %39 = vector.shape_cast %38 : vector<1x64x64xbf16> to vector<64x64xbf16>
    %cst_32 = arith.constant dense<0.000000e+00> : vector<16x64xf32>
    %40 = tpu.matmul %37, %39, %cst_32 {dimension_numbers = #tpu.dot_dimension_numbers<[1], [0], [0], [1], [0, 0, 1, 1], [], []>} : vector<16x64xbf16>, vector<64x64xbf16>, vector<16x64xf32> -> vector<16x64xf32>
    %41 = arith.addf %36, %40 : vector<16x64xf32>
    %42 = vector.extract_strided_slice %5 {offsets = [1, 0], sizes = [16, 64], strides = [1, 1]} : vector<18x64xbf16> to vector<16x64xbf16>
    %c7 = arith.constant 7 : index
    %c0_33 = arith.constant 0 : index
    %c0_34 = arith.constant 0 : index
    %43 = vector.load %arg5[%c7, %c0_33, %c0_34] : memref<9x64x64xbf16, #tpu.memory_space<vmem>>, vector<1x64x64xbf16>
    %44 = vector.shape_cast %43 : vector<1x64x64xbf16> to vector<64x64xbf16>
    %cst_35 = arith.constant dense<0.000000e+00> : vector<16x64xf32>
    %45 = tpu.matmul %42, %44, %cst_35 {dimension_numbers = #tpu.dot_dimension_numbers<[1], [0], [0], [1], [0, 0, 1, 1], [], []>} : vector<16x64xbf16>, vector<64x64xbf16>, vector<16x64xf32> -> vector<16x64xf32>
    %46 = arith.addf %41, %45 : vector<16x64xf32>
    %47 = vector.extract_strided_slice %5 {offsets = [2, 0], sizes = [16, 64], strides = [1, 1]} : vector<18x64xbf16> to vector<16x64xbf16>
    %c8 = arith.constant 8 : index
    %c0_36 = arith.constant 0 : index
    %c0_37 = arith.constant 0 : index
    %48 = vector.load %arg5[%c8, %c0_36, %c0_37] : memref<9x64x64xbf16, #tpu.memory_space<vmem>>, vector<1x64x64xbf16>
    %49 = vector.shape_cast %48 : vector<1x64x64xbf16> to vector<64x64xbf16>
    %cst_38 = arith.constant dense<0.000000e+00> : vector<16x64xf32>
    %50 = tpu.matmul %47, %49, %cst_38 {dimension_numbers = #tpu.dot_dimension_numbers<[1], [0], [0], [1], [0, 0, 1, 1], [], []>} : vector<16x64xbf16>, vector<64x64xbf16>, vector<16x64xf32> -> vector<16x64xf32>
    %51 = arith.addf %46, %50 : vector<16x64xf32>
    %c0_39 = arith.constant 0 : index
    %c0_40 = arith.constant 0 : index
    %52 = vector.load %arg6[%c0_39, %c0_40] : memref<1x64xf32, #tpu.memory_space<vmem>>, vector<1x64xf32>
    %53 = vector.broadcast %52 : vector<1x64xf32> to vector<16x64xf32>
    %54 = arith.addf %51, %53 : vector<16x64xf32>
    %cst_41 = arith.constant 0.000000e+00 : f32
    %55 = vector.broadcast %cst_41 : f32 to vector<16x64xf32>
    %56 = arith.maximumf %54, %55 : vector<16x64xf32>
    %57 = arith.truncf %56 : vector<16x64xf32> to vector<16x64xbf16>
    %c0_42 = arith.constant 0 : index
    %c0_43 = arith.constant 0 : index
    %c0_44 = arith.constant 0 : index
    %c0_45 = arith.constant 0 : index
    %58 = vector.load %arg7[%c0_42, %c0_43, %c0_44, %c0_45] : memref<1x1x16x64xbf16, #tpu.memory_space<vmem>>, vector<1x1x16x64xbf16>
    %59 = vector.shape_cast %58 : vector<1x1x16x64xbf16> to vector<16x64xbf16>
    %60 = vector.shape_cast %57 : vector<16x64xbf16> to vector<1x1x16x64xbf16>
    tpu.vector_store %arg7[%c0_42, %c0_43, %c0_44, %c0_45], %60 {strides = array<i32>} : memref<1x1x16x64xbf16, #tpu.memory_space<vmem>>, vector<1x1x16x64xbf16>,
    return
  }
  func.func @transform_0(%arg0: i32, %arg1: i32) -> (i32, i32, i32, i32) {
    %c0_i32 = arith.constant 0 : i32
    %0 = arith.addi %arg1, %c0_i32 : i32
    %c0_i32_0 = arith.constant 0 : i32
    %c0_i32_1 = arith.constant 0 : i32
    %c0_i32_2 = arith.constant 0 : i32
    return %arg0, %0, %c0_i32_0, %c0_i32_1 : i32, i32, i32, i32
  }
  func.func @transform_1(%arg0: i32, %arg1: i32) -> (i32, i32, i32, i32) {
    %c1_i32 = arith.constant 1 : i32
    %0 = arith.addi %arg1, %c1_i32 : i32
    %c0_i32 = arith.constant 0 : i32
    %c0_i32_0 = arith.constant 0 : i32
    %c0_i32_1 = arith.constant 0 : i32
    return %arg0, %0, %c0_i32, %c0_i32_0 : i32, i32, i32, i32
  }
  func.func @transform_2(%arg0: i32, %arg1: i32) -> (i32, i32, i32, i32) {
    %c2_i32 = arith.constant 2 : i32
    %0 = arith.addi %arg1, %c2_i32 : i32
    %c0_i32 = arith.constant 0 : i32
    %c0_i32_0 = arith.constant 0 : i32
    %c0_i32_1 = arith.constant 0 : i32
    return %arg0, %0, %c0_i32, %c0_i32_0 : i32, i32, i32, i32
  }
  func.func @transform_3(%arg0: i32, %arg1: i32) -> (i32, i32, i32) {
    %c0_i32 = arith.constant 0 : i32
    %c0_i32_0 = arith.constant 0 : i32
    %c0_i32_1 = arith.constant 0 : i32
    %c0_i32_2 = arith.constant 0 : i32
    return %c0_i32, %c0_i32_0, %c0_i32_1 : i32, i32, i32
  }
  func.func @transform_4(%arg0: i32, %arg1: i32) -> (i32, i32) {
    %c0_i32 = arith.constant 0 : i32
    %c0_i32_0 = arith.constant 0 : i32
    %c0_i32_1 = arith.constant 0 : i32
    return %c0_i32, %c0_i32_0 : i32, i32
  }
  func.func @transform_5(%arg0: i32, %arg1: i32) -> (i32, i32, i32, i32) {
    %c0_i32 = arith.constant 0 : i32
    %c0_i32_0 = arith.constant 0 : i32
    %c0_i32_1 = arith.constant 0 : i32
    return %arg0, %arg1, %c0_i32, %c0_i32_0 : i32, i32, i32, i32
  }
}

module attributes {stable_mosaic.version = 11 : i64} {
  func.func @_maxpool2x2_kernel(%arg0: i32, %arg1: i32, %arg2: memref<1x2x8x128xbf16, #tpu.memory_space<vmem>>, %arg3: memref<1x1x8x64xbf16, #tpu.memory_space<vmem>>) attributes {dimension_semantics = [#tpu.dimension_semantics<parallel>, #tpu.dimension_semantics<parallel>], iteration_bounds = array<i64: 2, 8>, scalar_prefetch = 0 : i64, scratch_operands = 0 : i64, tpu.core_type = #tpu.core_type<tc>, window_params = [{transform_indices = @transform_0, window_bounds = array<i64: 1, 2, 8, 128>}, {transform_indices = @transform_1, window_bounds = array<i64: 1, 1, 8, 64>}]} {
    %c0 = arith.constant 0 : index
    %c0_0 = arith.constant 0 : index
    %c0_1 = arith.constant 0 : index
    %c0_2 = arith.constant 0 : index
    %0 = vector.load %arg2[%c0, %c0_0, %c0_1, %c0_2] : memref<1x2x8x128xbf16, #tpu.memory_space<vmem>>, vector<1x1x8x128xbf16>
    %1 = vector.shape_cast %0 : vector<1x1x8x128xbf16> to vector<8x128xbf16>
    %c0_3 = arith.constant 0 : index
    %c1 = arith.constant 1 : index
    %c0_4 = arith.constant 0 : index
    %c0_5 = arith.constant 0 : index
    %2 = vector.load %arg2[%c0_3, %c1, %c0_4, %c0_5] : memref<1x2x8x128xbf16, #tpu.memory_space<vmem>>, vector<1x1x8x128xbf16>
    %3 = vector.shape_cast %2 : vector<1x1x8x128xbf16> to vector<8x128xbf16>
    %4 = arith.maximumf %1, %3 : vector<8x128xbf16>
    %5 = vector.extract_strided_slice %4 {offsets = [0, 0], sizes = [8, 64], strides = [1, 1]} : vector<8x128xbf16> to vector<8x64xbf16>
    %6 = vector.extract_strided_slice %4 {offsets = [0, 64], sizes = [8, 64], strides = [1, 1]} : vector<8x128xbf16> to vector<8x64xbf16>
    %7 = arith.maximumf %5, %6 : vector<8x64xbf16>
    %c0_6 = arith.constant 0 : index
    %c0_7 = arith.constant 0 : index
    %c0_8 = arith.constant 0 : index
    %c0_9 = arith.constant 0 : index
    %8 = vector.load %arg3[%c0_6, %c0_7, %c0_8, %c0_9] : memref<1x1x8x64xbf16, #tpu.memory_space<vmem>>, vector<1x1x8x64xbf16>
    %9 = vector.shape_cast %8 : vector<1x1x8x64xbf16> to vector<8x64xbf16>
    %10 = vector.shape_cast %7 : vector<8x64xbf16> to vector<1x1x8x64xbf16>
    tpu.vector_store %arg3[%c0_6, %c0_7, %c0_8, %c0_9], %10 {strides = array<i32>} : memref<1x1x8x64xbf16, #tpu.memory_space<vmem>>, vector<1x1x8x64xbf16>,
    return
  }
  func.func @transform_0(%arg0: i32, %arg1: i32) -> (i32, i32, i32, i32) {
    %c0_i32 = arith.constant 0 : i32
    %c0_i32_0 = arith.constant 0 : i32
    %c0_i32_1 = arith.constant 0 : i32
    return %arg0, %arg1, %c0_i32, %c0_i32_0 : i32, i32, i32, i32
  }
  func.func @transform_1(%arg0: i32, %arg1: i32) -> (i32, i32, i32, i32) {
    %c0_i32 = arith.constant 0 : i32
    %c0_i32_0 = arith.constant 0 : i32
    %c0_i32_1 = arith.constant 0 : i32
    return %arg0, %arg1, %c0_i32, %c0_i32_0 : i32, i32, i32, i32
  }
}

module attributes {stable_mosaic.version = 11 : i64} {
  func.func @_conv3x3_kernel(%arg0: i32, %arg1: i32, %arg2: memref<1x1x10x128xbf16, #tpu.memory_space<vmem>>, %arg3: memref<1x1x10x128xbf16, #tpu.memory_space<vmem>>, %arg4: memref<1x1x10x128xbf16, #tpu.memory_space<vmem>>, %arg5: memref<9x128x128xbf16, #tpu.memory_space<vmem>>, %arg6: memref<1x128xf32, #tpu.memory_space<vmem>>, %arg7: memref<1x1x8x128xbf16, #tpu.memory_space<vmem>>) attributes {dimension_semantics = [#tpu.dimension_semantics<parallel>, #tpu.dimension_semantics<parallel>], iteration_bounds = array<i64: 2, 8>, scalar_prefetch = 0 : i64, scratch_operands = 0 : i64, tpu.core_type = #tpu.core_type<tc>, window_params = [{transform_indices = @transform_0, window_bounds = array<i64: 1, 1, 10, 128>}, {transform_indices = @transform_1, window_bounds = array<i64: 1, 1, 10, 128>}, {transform_indices = @transform_2, window_bounds = array<i64: 1, 1, 10, 128>}, {pipeline_mode = #tpu.pipeline_mode<synchronous>, transform_indices = @transform_3, window_bounds = array<i64: 9, 128, 128>}, {pipeline_mode = #tpu.pipeline_mode<synchronous>, transform_indices = @transform_4, window_bounds = array<i64: 1, 128>}, {transform_indices = @transform_5, window_bounds = array<i64: 1, 1, 8, 128>}]} {
    %c0 = arith.constant 0 : index
    %c0_0 = arith.constant 0 : index
    %c0_1 = arith.constant 0 : index
    %c0_2 = arith.constant 0 : index
    %0 = vector.load %arg2[%c0, %c0_0, %c0_1, %c0_2] : memref<1x1x10x128xbf16, #tpu.memory_space<vmem>>, vector<1x1x10x128xbf16>
    %1 = vector.shape_cast %0 : vector<1x1x10x128xbf16> to vector<10x128xbf16>
    %c0_3 = arith.constant 0 : index
    %c0_4 = arith.constant 0 : index
    %c0_5 = arith.constant 0 : index
    %c0_6 = arith.constant 0 : index
    %2 = vector.load %arg3[%c0_3, %c0_4, %c0_5, %c0_6] : memref<1x1x10x128xbf16, #tpu.memory_space<vmem>>, vector<1x1x10x128xbf16>
    %3 = vector.shape_cast %2 : vector<1x1x10x128xbf16> to vector<10x128xbf16>
    %c0_7 = arith.constant 0 : index
    %c0_8 = arith.constant 0 : index
    %c0_9 = arith.constant 0 : index
    %c0_10 = arith.constant 0 : index
    %4 = vector.load %arg4[%c0_7, %c0_8, %c0_9, %c0_10] : memref<1x1x10x128xbf16, #tpu.memory_space<vmem>>, vector<1x1x10x128xbf16>
    %5 = vector.shape_cast %4 : vector<1x1x10x128xbf16> to vector<10x128xbf16>
    %cst = arith.constant 0.000000e+00 : f32
    %6 = vector.broadcast %cst : f32 to vector<8x128xf32>
    %7 = vector.extract_strided_slice %1 {offsets = [0, 0], sizes = [8, 128], strides = [1, 1]} : vector<10x128xbf16> to vector<8x128xbf16>
    %c0_11 = arith.constant 0 : index
    %c0_12 = arith.constant 0 : index
    %c0_13 = arith.constant 0 : index
    %8 = vector.load %arg5[%c0_11, %c0_12, %c0_13] : memref<9x128x128xbf16, #tpu.memory_space<vmem>>, vector<1x128x128xbf16>
    %9 = vector.shape_cast %8 : vector<1x128x128xbf16> to vector<128x128xbf16>
    %cst_14 = arith.constant dense<0.000000e+00> : vector<8x128xf32>
    %10 = tpu.matmul %7, %9, %cst_14 {dimension_numbers = #tpu.dot_dimension_numbers<[1], [0], [0], [1], [0, 0, 1, 1], [], []>} : vector<8x128xbf16>, vector<128x128xbf16>, vector<8x128xf32> -> vector<8x128xf32>
    %11 = arith.addf %6, %10 : vector<8x128xf32>
    %12 = vector.extract_strided_slice %1 {offsets = [1, 0], sizes = [8, 128], strides = [1, 1]} : vector<10x128xbf16> to vector<8x128xbf16>
    %c1 = arith.constant 1 : index
    %c0_15 = arith.constant 0 : index
    %c0_16 = arith.constant 0 : index
    %13 = vector.load %arg5[%c1, %c0_15, %c0_16] : memref<9x128x128xbf16, #tpu.memory_space<vmem>>, vector<1x128x128xbf16>
    %14 = vector.shape_cast %13 : vector<1x128x128xbf16> to vector<128x128xbf16>
    %cst_17 = arith.constant dense<0.000000e+00> : vector<8x128xf32>
    %15 = tpu.matmul %12, %14, %cst_17 {dimension_numbers = #tpu.dot_dimension_numbers<[1], [0], [0], [1], [0, 0, 1, 1], [], []>} : vector<8x128xbf16>, vector<128x128xbf16>, vector<8x128xf32> -> vector<8x128xf32>
    %16 = arith.addf %11, %15 : vector<8x128xf32>
    %17 = vector.extract_strided_slice %1 {offsets = [2, 0], sizes = [8, 128], strides = [1, 1]} : vector<10x128xbf16> to vector<8x128xbf16>
    %c2 = arith.constant 2 : index
    %c0_18 = arith.constant 0 : index
    %c0_19 = arith.constant 0 : index
    %18 = vector.load %arg5[%c2, %c0_18, %c0_19] : memref<9x128x128xbf16, #tpu.memory_space<vmem>>, vector<1x128x128xbf16>
    %19 = vector.shape_cast %18 : vector<1x128x128xbf16> to vector<128x128xbf16>
    %cst_20 = arith.constant dense<0.000000e+00> : vector<8x128xf32>
    %20 = tpu.matmul %17, %19, %cst_20 {dimension_numbers = #tpu.dot_dimension_numbers<[1], [0], [0], [1], [0, 0, 1, 1], [], []>} : vector<8x128xbf16>, vector<128x128xbf16>, vector<8x128xf32> -> vector<8x128xf32>
    %21 = arith.addf %16, %20 : vector<8x128xf32>
    %22 = vector.extract_strided_slice %3 {offsets = [0, 0], sizes = [8, 128], strides = [1, 1]} : vector<10x128xbf16> to vector<8x128xbf16>
    %c3 = arith.constant 3 : index
    %c0_21 = arith.constant 0 : index
    %c0_22 = arith.constant 0 : index
    %23 = vector.load %arg5[%c3, %c0_21, %c0_22] : memref<9x128x128xbf16, #tpu.memory_space<vmem>>, vector<1x128x128xbf16>
    %24 = vector.shape_cast %23 : vector<1x128x128xbf16> to vector<128x128xbf16>
    %cst_23 = arith.constant dense<0.000000e+00> : vector<8x128xf32>
    %25 = tpu.matmul %22, %24, %cst_23 {dimension_numbers = #tpu.dot_dimension_numbers<[1], [0], [0], [1], [0, 0, 1, 1], [], []>} : vector<8x128xbf16>, vector<128x128xbf16>, vector<8x128xf32> -> vector<8x128xf32>
    %26 = arith.addf %21, %25 : vector<8x128xf32>
    %27 = vector.extract_strided_slice %3 {offsets = [1, 0], sizes = [8, 128], strides = [1, 1]} : vector<10x128xbf16> to vector<8x128xbf16>
    %c4 = arith.constant 4 : index
    %c0_24 = arith.constant 0 : index
    %c0_25 = arith.constant 0 : index
    %28 = vector.load %arg5[%c4, %c0_24, %c0_25] : memref<9x128x128xbf16, #tpu.memory_space<vmem>>, vector<1x128x128xbf16>
    %29 = vector.shape_cast %28 : vector<1x128x128xbf16> to vector<128x128xbf16>
    %cst_26 = arith.constant dense<0.000000e+00> : vector<8x128xf32>
    %30 = tpu.matmul %27, %29, %cst_26 {dimension_numbers = #tpu.dot_dimension_numbers<[1], [0], [0], [1], [0, 0, 1, 1], [], []>} : vector<8x128xbf16>, vector<128x128xbf16>, vector<8x128xf32> -> vector<8x128xf32>
    %31 = arith.addf %26, %30 : vector<8x128xf32>
    %32 = vector.extract_strided_slice %3 {offsets = [2, 0], sizes = [8, 128], strides = [1, 1]} : vector<10x128xbf16> to vector<8x128xbf16>
    %c5 = arith.constant 5 : index
    %c0_27 = arith.constant 0 : index
    %c0_28 = arith.constant 0 : index
    %33 = vector.load %arg5[%c5, %c0_27, %c0_28] : memref<9x128x128xbf16, #tpu.memory_space<vmem>>, vector<1x128x128xbf16>
    %34 = vector.shape_cast %33 : vector<1x128x128xbf16> to vector<128x128xbf16>
    %cst_29 = arith.constant dense<0.000000e+00> : vector<8x128xf32>
    %35 = tpu.matmul %32, %34, %cst_29 {dimension_numbers = #tpu.dot_dimension_numbers<[1], [0], [0], [1], [0, 0, 1, 1], [], []>} : vector<8x128xbf16>, vector<128x128xbf16>, vector<8x128xf32> -> vector<8x128xf32>
    %36 = arith.addf %31, %35 : vector<8x128xf32>
    %37 = vector.extract_strided_slice %5 {offsets = [0, 0], sizes = [8, 128], strides = [1, 1]} : vector<10x128xbf16> to vector<8x128xbf16>
    %c6 = arith.constant 6 : index
    %c0_30 = arith.constant 0 : index
    %c0_31 = arith.constant 0 : index
    %38 = vector.load %arg5[%c6, %c0_30, %c0_31] : memref<9x128x128xbf16, #tpu.memory_space<vmem>>, vector<1x128x128xbf16>
    %39 = vector.shape_cast %38 : vector<1x128x128xbf16> to vector<128x128xbf16>
    %cst_32 = arith.constant dense<0.000000e+00> : vector<8x128xf32>
    %40 = tpu.matmul %37, %39, %cst_32 {dimension_numbers = #tpu.dot_dimension_numbers<[1], [0], [0], [1], [0, 0, 1, 1], [], []>} : vector<8x128xbf16>, vector<128x128xbf16>, vector<8x128xf32> -> vector<8x128xf32>
    %41 = arith.addf %36, %40 : vector<8x128xf32>
    %42 = vector.extract_strided_slice %5 {offsets = [1, 0], sizes = [8, 128], strides = [1, 1]} : vector<10x128xbf16> to vector<8x128xbf16>
    %c7 = arith.constant 7 : index
    %c0_33 = arith.constant 0 : index
    %c0_34 = arith.constant 0 : index
    %43 = vector.load %arg5[%c7, %c0_33, %c0_34] : memref<9x128x128xbf16, #tpu.memory_space<vmem>>, vector<1x128x128xbf16>
    %44 = vector.shape_cast %43 : vector<1x128x128xbf16> to vector<128x128xbf16>
    %cst_35 = arith.constant dense<0.000000e+00> : vector<8x128xf32>
    %45 = tpu.matmul %42, %44, %cst_35 {dimension_numbers = #tpu.dot_dimension_numbers<[1], [0], [0], [1], [0, 0, 1, 1], [], []>} : vector<8x128xbf16>, vector<128x128xbf16>, vector<8x128xf32> -> vector<8x128xf32>
    %46 = arith.addf %41, %45 : vector<8x128xf32>
    %47 = vector.extract_strided_slice %5 {offsets = [2, 0], sizes = [8, 128], strides = [1, 1]} : vector<10x128xbf16> to vector<8x128xbf16>
    %c8 = arith.constant 8 : index
    %c0_36 = arith.constant 0 : index
    %c0_37 = arith.constant 0 : index
    %48 = vector.load %arg5[%c8, %c0_36, %c0_37] : memref<9x128x128xbf16, #tpu.memory_space<vmem>>, vector<1x128x128xbf16>
    %49 = vector.shape_cast %48 : vector<1x128x128xbf16> to vector<128x128xbf16>
    %cst_38 = arith.constant dense<0.000000e+00> : vector<8x128xf32>
    %50 = tpu.matmul %47, %49, %cst_38 {dimension_numbers = #tpu.dot_dimension_numbers<[1], [0], [0], [1], [0, 0, 1, 1], [], []>} : vector<8x128xbf16>, vector<128x128xbf16>, vector<8x128xf32> -> vector<8x128xf32>
    %51 = arith.addf %46, %50 : vector<8x128xf32>
    %c0_39 = arith.constant 0 : index
    %c0_40 = arith.constant 0 : index
    %52 = vector.load %arg6[%c0_39, %c0_40] : memref<1x128xf32, #tpu.memory_space<vmem>>, vector<1x128xf32>
    %53 = vector.broadcast %52 : vector<1x128xf32> to vector<8x128xf32>
    %54 = arith.addf %51, %53 : vector<8x128xf32>
    %cst_41 = arith.constant 0.000000e+00 : f32
    %55 = vector.broadcast %cst_41 : f32 to vector<8x128xf32>
    %56 = arith.maximumf %54, %55 : vector<8x128xf32>
    %57 = arith.truncf %56 : vector<8x128xf32> to vector<8x128xbf16>
    %c0_42 = arith.constant 0 : index
    %c0_43 = arith.constant 0 : index
    %c0_44 = arith.constant 0 : index
    %c0_45 = arith.constant 0 : index
    %58 = vector.load %arg7[%c0_42, %c0_43, %c0_44, %c0_45] : memref<1x1x8x128xbf16, #tpu.memory_space<vmem>>, vector<1x1x8x128xbf16>
    %59 = vector.shape_cast %58 : vector<1x1x8x128xbf16> to vector<8x128xbf16>
    %60 = vector.shape_cast %57 : vector<8x128xbf16> to vector<1x1x8x128xbf16>
    tpu.vector_store %arg7[%c0_42, %c0_43, %c0_44, %c0_45], %60 {strides = array<i32>} : memref<1x1x8x128xbf16, #tpu.memory_space<vmem>>, vector<1x1x8x128xbf16>,
    return
  }
  func.func @transform_0(%arg0: i32, %arg1: i32) -> (i32, i32, i32, i32) {
    %c0_i32 = arith.constant 0 : i32
    %0 = arith.addi %arg1, %c0_i32 : i32
    %c0_i32_0 = arith.constant 0 : i32
    %c0_i32_1 = arith.constant 0 : i32
    %c0_i32_2 = arith.constant 0 : i32
    return %arg0, %0, %c0_i32_0, %c0_i32_1 : i32, i32, i32, i32
  }
  func.func @transform_1(%arg0: i32, %arg1: i32) -> (i32, i32, i32, i32) {
    %c1_i32 = arith.constant 1 : i32
    %0 = arith.addi %arg1, %c1_i32 : i32
    %c0_i32 = arith.constant 0 : i32
    %c0_i32_0 = arith.constant 0 : i32
    %c0_i32_1 = arith.constant 0 : i32
    return %arg0, %0, %c0_i32, %c0_i32_0 : i32, i32, i32, i32
  }
  func.func @transform_2(%arg0: i32, %arg1: i32) -> (i32, i32, i32, i32) {
    %c2_i32 = arith.constant 2 : i32
    %0 = arith.addi %arg1, %c2_i32 : i32
    %c0_i32 = arith.constant 0 : i32
    %c0_i32_0 = arith.constant 0 : i32
    %c0_i32_1 = arith.constant 0 : i32
    return %arg0, %0, %c0_i32, %c0_i32_0 : i32, i32, i32, i32
  }
  func.func @transform_3(%arg0: i32, %arg1: i32) -> (i32, i32, i32) {
    %c0_i32 = arith.constant 0 : i32
    %c0_i32_0 = arith.constant 0 : i32
    %c0_i32_1 = arith.constant 0 : i32
    %c0_i32_2 = arith.constant 0 : i32
    return %c0_i32, %c0_i32_0, %c0_i32_1 : i32, i32, i32
  }
  func.func @transform_4(%arg0: i32, %arg1: i32) -> (i32, i32) {
    %c0_i32 = arith.constant 0 : i32
    %c0_i32_0 = arith.constant 0 : i32
    %c0_i32_1 = arith.constant 0 : i32
    return %c0_i32, %c0_i32_0 : i32, i32
  }
  func.func @transform_5(%arg0: i32, %arg1: i32) -> (i32, i32, i32, i32) {
    %c0_i32 = arith.constant 0 : i32
    %c0_i32_0 = arith.constant 0 : i32
    %c0_i32_1 = arith.constant 0 : i32
    return %arg0, %arg1, %c0_i32, %c0_i32_0 : i32, i32, i32, i32
  }
}

module attributes {stable_mosaic.version = 11 : i64} {
  func.func @_conv3x3_kernel(%arg0: i32, %arg1: i32, %arg2: memref<1x1x10x64xbf16, #tpu.memory_space<vmem>>, %arg3: memref<1x1x10x64xbf16, #tpu.memory_space<vmem>>, %arg4: memref<1x1x10x64xbf16, #tpu.memory_space<vmem>>, %arg5: memref<9x64x128xbf16, #tpu.memory_space<vmem>>, %arg6: memref<1x128xf32, #tpu.memory_space<vmem>>, %arg7: memref<1x1x8x128xbf16, #tpu.memory_space<vmem>>) attributes {dimension_semantics = [#tpu.dimension_semantics<parallel>, #tpu.dimension_semantics<parallel>], iteration_bounds = array<i64: 2, 8>, scalar_prefetch = 0 : i64, scratch_operands = 0 : i64, tpu.core_type = #tpu.core_type<tc>, window_params = [{transform_indices = @transform_0, window_bounds = array<i64: 1, 1, 10, 64>}, {transform_indices = @transform_1, window_bounds = array<i64: 1, 1, 10, 64>}, {transform_indices = @transform_2, window_bounds = array<i64: 1, 1, 10, 64>}, {pipeline_mode = #tpu.pipeline_mode<synchronous>, transform_indices = @transform_3, window_bounds = array<i64: 9, 64, 128>}, {pipeline_mode = #tpu.pipeline_mode<synchronous>, transform_indices = @transform_4, window_bounds = array<i64: 1, 128>}, {transform_indices = @transform_5, window_bounds = array<i64: 1, 1, 8, 128>}]} {
    %c0 = arith.constant 0 : index
    %c0_0 = arith.constant 0 : index
    %c0_1 = arith.constant 0 : index
    %c0_2 = arith.constant 0 : index
    %0 = vector.load %arg2[%c0, %c0_0, %c0_1, %c0_2] : memref<1x1x10x64xbf16, #tpu.memory_space<vmem>>, vector<1x1x10x64xbf16>
    %1 = vector.shape_cast %0 : vector<1x1x10x64xbf16> to vector<10x64xbf16>
    %c0_3 = arith.constant 0 : index
    %c0_4 = arith.constant 0 : index
    %c0_5 = arith.constant 0 : index
    %c0_6 = arith.constant 0 : index
    %2 = vector.load %arg3[%c0_3, %c0_4, %c0_5, %c0_6] : memref<1x1x10x64xbf16, #tpu.memory_space<vmem>>, vector<1x1x10x64xbf16>
    %3 = vector.shape_cast %2 : vector<1x1x10x64xbf16> to vector<10x64xbf16>
    %c0_7 = arith.constant 0 : index
    %c0_8 = arith.constant 0 : index
    %c0_9 = arith.constant 0 : index
    %c0_10 = arith.constant 0 : index
    %4 = vector.load %arg4[%c0_7, %c0_8, %c0_9, %c0_10] : memref<1x1x10x64xbf16, #tpu.memory_space<vmem>>, vector<1x1x10x64xbf16>
    %5 = vector.shape_cast %4 : vector<1x1x10x64xbf16> to vector<10x64xbf16>
    %cst = arith.constant 0.000000e+00 : f32
    %6 = vector.broadcast %cst : f32 to vector<8x128xf32>
    %7 = vector.extract_strided_slice %1 {offsets = [0, 0], sizes = [8, 64], strides = [1, 1]} : vector<10x64xbf16> to vector<8x64xbf16>
    %c0_11 = arith.constant 0 : index
    %c0_12 = arith.constant 0 : index
    %c0_13 = arith.constant 0 : index
    %8 = vector.load %arg5[%c0_11, %c0_12, %c0_13] : memref<9x64x128xbf16, #tpu.memory_space<vmem>>, vector<1x64x128xbf16>
    %9 = vector.shape_cast %8 : vector<1x64x128xbf16> to vector<64x128xbf16>
    %cst_14 = arith.constant dense<0.000000e+00> : vector<8x128xf32>
    %10 = tpu.matmul %7, %9, %cst_14 {dimension_numbers = #tpu.dot_dimension_numbers<[1], [0], [0], [1], [0, 0, 1, 1], [], []>} : vector<8x64xbf16>, vector<64x128xbf16>, vector<8x128xf32> -> vector<8x128xf32>
    %11 = arith.addf %6, %10 : vector<8x128xf32>
    %12 = vector.extract_strided_slice %1 {offsets = [1, 0], sizes = [8, 64], strides = [1, 1]} : vector<10x64xbf16> to vector<8x64xbf16>
    %c1 = arith.constant 1 : index
    %c0_15 = arith.constant 0 : index
    %c0_16 = arith.constant 0 : index
    %13 = vector.load %arg5[%c1, %c0_15, %c0_16] : memref<9x64x128xbf16, #tpu.memory_space<vmem>>, vector<1x64x128xbf16>
    %14 = vector.shape_cast %13 : vector<1x64x128xbf16> to vector<64x128xbf16>
    %cst_17 = arith.constant dense<0.000000e+00> : vector<8x128xf32>
    %15 = tpu.matmul %12, %14, %cst_17 {dimension_numbers = #tpu.dot_dimension_numbers<[1], [0], [0], [1], [0, 0, 1, 1], [], []>} : vector<8x64xbf16>, vector<64x128xbf16>, vector<8x128xf32> -> vector<8x128xf32>
    %16 = arith.addf %11, %15 : vector<8x128xf32>
    %17 = vector.extract_strided_slice %1 {offsets = [2, 0], sizes = [8, 64], strides = [1, 1]} : vector<10x64xbf16> to vector<8x64xbf16>
    %c2 = arith.constant 2 : index
    %c0_18 = arith.constant 0 : index
    %c0_19 = arith.constant 0 : index
    %18 = vector.load %arg5[%c2, %c0_18, %c0_19] : memref<9x64x128xbf16, #tpu.memory_space<vmem>>, vector<1x64x128xbf16>
    %19 = vector.shape_cast %18 : vector<1x64x128xbf16> to vector<64x128xbf16>
    %cst_20 = arith.constant dense<0.000000e+00> : vector<8x128xf32>
    %20 = tpu.matmul %17, %19, %cst_20 {dimension_numbers = #tpu.dot_dimension_numbers<[1], [0], [0], [1], [0, 0, 1, 1], [], []>} : vector<8x64xbf16>, vector<64x128xbf16>, vector<8x128xf32> -> vector<8x128xf32>
    %21 = arith.addf %16, %20 : vector<8x128xf32>
    %22 = vector.extract_strided_slice %3 {offsets = [0, 0], sizes = [8, 64], strides = [1, 1]} : vector<10x64xbf16> to vector<8x64xbf16>
    %c3 = arith.constant 3 : index
    %c0_21 = arith.constant 0 : index
    %c0_22 = arith.constant 0 : index
    %23 = vector.load %arg5[%c3, %c0_21, %c0_22] : memref<9x64x128xbf16, #tpu.memory_space<vmem>>, vector<1x64x128xbf16>
    %24 = vector.shape_cast %23 : vector<1x64x128xbf16> to vector<64x128xbf16>
    %cst_23 = arith.constant dense<0.000000e+00> : vector<8x128xf32>
    %25 = tpu.matmul %22, %24, %cst_23 {dimension_numbers = #tpu.dot_dimension_numbers<[1], [0], [0], [1], [0, 0, 1, 1], [], []>} : vector<8x64xbf16>, vector<64x128xbf16>, vector<8x128xf32> -> vector<8x128xf32>
    %26 = arith.addf %21, %25 : vector<8x128xf32>
    %27 = vector.extract_strided_slice %3 {offsets = [1, 0], sizes = [8, 64], strides = [1, 1]} : vector<10x64xbf16> to vector<8x64xbf16>
    %c4 = arith.constant 4 : index
    %c0_24 = arith.constant 0 : index
    %c0_25 = arith.constant 0 : index
    %28 = vector.load %arg5[%c4, %c0_24, %c0_25] : memref<9x64x128xbf16, #tpu.memory_space<vmem>>, vector<1x64x128xbf16>
    %29 = vector.shape_cast %28 : vector<1x64x128xbf16> to vector<64x128xbf16>
    %cst_26 = arith.constant dense<0.000000e+00> : vector<8x128xf32>
    %30 = tpu.matmul %27, %29, %cst_26 {dimension_numbers = #tpu.dot_dimension_numbers<[1], [0], [0], [1], [0, 0, 1, 1], [], []>} : vector<8x64xbf16>, vector<64x128xbf16>, vector<8x128xf32> -> vector<8x128xf32>
    %31 = arith.addf %26, %30 : vector<8x128xf32>
    %32 = vector.extract_strided_slice %3 {offsets = [2, 0], sizes = [8, 64], strides = [1, 1]} : vector<10x64xbf16> to vector<8x64xbf16>
    %c5 = arith.constant 5 : index
    %c0_27 = arith.constant 0 : index
    %c0_28 = arith.constant 0 : index
    %33 = vector.load %arg5[%c5, %c0_27, %c0_28] : memref<9x64x128xbf16, #tpu.memory_space<vmem>>, vector<1x64x128xbf16>
    %34 = vector.shape_cast %33 : vector<1x64x128xbf16> to vector<64x128xbf16>
    %cst_29 = arith.constant dense<0.000000e+00> : vector<8x128xf32>
    %35 = tpu.matmul %32, %34, %cst_29 {dimension_numbers = #tpu.dot_dimension_numbers<[1], [0], [0], [1], [0, 0, 1, 1], [], []>} : vector<8x64xbf16>, vector<64x128xbf16>, vector<8x128xf32> -> vector<8x128xf32>
    %36 = arith.addf %31, %35 : vector<8x128xf32>
    %37 = vector.extract_strided_slice %5 {offsets = [0, 0], sizes = [8, 64], strides = [1, 1]} : vector<10x64xbf16> to vector<8x64xbf16>
    %c6 = arith.constant 6 : index
    %c0_30 = arith.constant 0 : index
    %c0_31 = arith.constant 0 : index
    %38 = vector.load %arg5[%c6, %c0_30, %c0_31] : memref<9x64x128xbf16, #tpu.memory_space<vmem>>, vector<1x64x128xbf16>
    %39 = vector.shape_cast %38 : vector<1x64x128xbf16> to vector<64x128xbf16>
    %cst_32 = arith.constant dense<0.000000e+00> : vector<8x128xf32>
    %40 = tpu.matmul %37, %39, %cst_32 {dimension_numbers = #tpu.dot_dimension_numbers<[1], [0], [0], [1], [0, 0, 1, 1], [], []>} : vector<8x64xbf16>, vector<64x128xbf16>, vector<8x128xf32> -> vector<8x128xf32>
    %41 = arith.addf %36, %40 : vector<8x128xf32>
    %42 = vector.extract_strided_slice %5 {offsets = [1, 0], sizes = [8, 64], strides = [1, 1]} : vector<10x64xbf16> to vector<8x64xbf16>
    %c7 = arith.constant 7 : index
    %c0_33 = arith.constant 0 : index
    %c0_34 = arith.constant 0 : index
    %43 = vector.load %arg5[%c7, %c0_33, %c0_34] : memref<9x64x128xbf16, #tpu.memory_space<vmem>>, vector<1x64x128xbf16>
    %44 = vector.shape_cast %43 : vector<1x64x128xbf16> to vector<64x128xbf16>
    %cst_35 = arith.constant dense<0.000000e+00> : vector<8x128xf32>
    %45 = tpu.matmul %42, %44, %cst_35 {dimension_numbers = #tpu.dot_dimension_numbers<[1], [0], [0], [1], [0, 0, 1, 1], [], []>} : vector<8x64xbf16>, vector<64x128xbf16>, vector<8x128xf32> -> vector<8x128xf32>
    %46 = arith.addf %41, %45 : vector<8x128xf32>
    %47 = vector.extract_strided_slice %5 {offsets = [2, 0], sizes = [8, 64], strides = [1, 1]} : vector<10x64xbf16> to vector<8x64xbf16>
    %c8 = arith.constant 8 : index
    %c0_36 = arith.constant 0 : index
    %c0_37 = arith.constant 0 : index
    %48 = vector.load %arg5[%c8, %c0_36, %c0_37] : memref<9x64x128xbf16, #tpu.memory_space<vmem>>, vector<1x64x128xbf16>
    %49 = vector.shape_cast %48 : vector<1x64x128xbf16> to vector<64x128xbf16>
    %cst_38 = arith.constant dense<0.000000e+00> : vector<8x128xf32>
    %50 = tpu.matmul %47, %49, %cst_38 {dimension_numbers = #tpu.dot_dimension_numbers<[1], [0], [0], [1], [0, 0, 1, 1], [], []>} : vector<8x64xbf16>, vector<64x128xbf16>, vector<8x128xf32> -> vector<8x128xf32>
    %51 = arith.addf %46, %50 : vector<8x128xf32>
    %c0_39 = arith.constant 0 : index
    %c0_40 = arith.constant 0 : index
    %52 = vector.load %arg6[%c0_39, %c0_40] : memref<1x128xf32, #tpu.memory_space<vmem>>, vector<1x128xf32>
    %53 = vector.broadcast %52 : vector<1x128xf32> to vector<8x128xf32>
    %54 = arith.addf %51, %53 : vector<8x128xf32>
    %cst_41 = arith.constant 0.000000e+00 : f32
    %55 = vector.broadcast %cst_41 : f32 to vector<8x128xf32>
    %56 = arith.maximumf %54, %55 : vector<8x128xf32>
    %57 = arith.truncf %56 : vector<8x128xf32> to vector<8x128xbf16>
    %c0_42 = arith.constant 0 : index
    %c0_43 = arith.constant 0 : index
    %c0_44 = arith.constant 0 : index
    %c0_45 = arith.constant 0 : index
    %58 = vector.load %arg7[%c0_42, %c0_43, %c0_44, %c0_45] : memref<1x1x8x128xbf16, #tpu.memory_space<vmem>>, vector<1x1x8x128xbf16>
    %59 = vector.shape_cast %58 : vector<1x1x8x128xbf16> to vector<8x128xbf16>
    %60 = vector.shape_cast %57 : vector<8x128xbf16> to vector<1x1x8x128xbf16>
    tpu.vector_store %arg7[%c0_42, %c0_43, %c0_44, %c0_45], %60 {strides = array<i32>} : memref<1x1x8x128xbf16, #tpu.memory_space<vmem>>, vector<1x1x8x128xbf16>,
    return
  }
  func.func @transform_0(%arg0: i32, %arg1: i32) -> (i32, i32, i32, i32) {
    %c0_i32 = arith.constant 0 : i32
    %0 = arith.addi %arg1, %c0_i32 : i32
    %c0_i32_0 = arith.constant 0 : i32
    %c0_i32_1 = arith.constant 0 : i32
    %c0_i32_2 = arith.constant 0 : i32
    return %arg0, %0, %c0_i32_0, %c0_i32_1 : i32, i32, i32, i32
  }
  func.func @transform_1(%arg0: i32, %arg1: i32) -> (i32, i32, i32, i32) {
    %c1_i32 = arith.constant 1 : i32
    %0 = arith.addi %arg1, %c1_i32 : i32
    %c0_i32 = arith.constant 0 : i32
    %c0_i32_0 = arith.constant 0 : i32
    %c0_i32_1 = arith.constant 0 : i32
    return %arg0, %0, %c0_i32, %c0_i32_0 : i32, i32, i32, i32
  }
  func.func @transform_2(%arg0: i32, %arg1: i32) -> (i32, i32, i32, i32) {
    %c2_i32 = arith.constant 2 : i32
    %0 = arith.addi %arg1, %c2_i32 : i32
    %c0_i32 = arith.constant 0 : i32
    %c0_i32_0 = arith.constant 0 : i32
    %c0_i32_1 = arith.constant 0 : i32
    return %arg0, %0, %c0_i32, %c0_i32_0 : i32, i32, i32, i32
  }
  func.func @transform_3(%arg0: i32, %arg1: i32) -> (i32, i32, i32) {
    %c0_i32 = arith.constant 0 : i32
    %c0_i32_0 = arith.constant 0 : i32
    %c0_i32_1 = arith.constant 0 : i32
    %c0_i32_2 = arith.constant 0 : i32
    return %c0_i32, %c0_i32_0, %c0_i32_1 : i32, i32, i32
  }
  func.func @transform_4(%arg0: i32, %arg1: i32) -> (i32, i32) {
    %c0_i32 = arith.constant 0 : i32
    %c0_i32_0 = arith.constant 0 : i32
    %c0_i32_1 = arith.constant 0 : i32
    return %c0_i32, %c0_i32_0 : i32, i32
  }
  func.func @transform_5(%arg0: i32, %arg1: i32) -> (i32, i32, i32, i32) {
    %c0_i32 = arith.constant 0 : i32
    %c0_i32_0 = arith.constant 0 : i32
    %c0_i32_1 = arith.constant 0 : i32
    return %arg0, %arg1, %c0_i32, %c0_i32_0 : i32, i32, i32, i32
  }
}

module attributes {stable_mosaic.version = 11 : i64} {
  func.func @_maxpool2x2_kernel(%arg0: i32, %arg1: i32, %arg2: memref<1x2x4x256xbf16, #tpu.memory_space<vmem>>, %arg3: memref<1x1x4x128xbf16, #tpu.memory_space<vmem>>) attributes {dimension_semantics = [#tpu.dimension_semantics<parallel>, #tpu.dimension_semantics<parallel>], iteration_bounds = array<i64: 2, 4>, scalar_prefetch = 0 : i64, scratch_operands = 0 : i64, tpu.core_type = #tpu.core_type<tc>, window_params = [{transform_indices = @transform_0, window_bounds = array<i64: 1, 2, 4, 256>}, {transform_indices = @transform_1, window_bounds = array<i64: 1, 1, 4, 128>}]} {
    %c0 = arith.constant 0 : index
    %c0_0 = arith.constant 0 : index
    %c0_1 = arith.constant 0 : index
    %c0_2 = arith.constant 0 : index
    %0 = vector.load %arg2[%c0, %c0_0, %c0_1, %c0_2] : memref<1x2x4x256xbf16, #tpu.memory_space<vmem>>, vector<1x1x4x256xbf16>
    %1 = vector.shape_cast %0 : vector<1x1x4x256xbf16> to vector<4x256xbf16>
    %c0_3 = arith.constant 0 : index
    %c1 = arith.constant 1 : index
    %c0_4 = arith.constant 0 : index
    %c0_5 = arith.constant 0 : index
    %2 = vector.load %arg2[%c0_3, %c1, %c0_4, %c0_5] : memref<1x2x4x256xbf16, #tpu.memory_space<vmem>>, vector<1x1x4x256xbf16>
    %3 = vector.shape_cast %2 : vector<1x1x4x256xbf16> to vector<4x256xbf16>
    %4 = arith.maximumf %1, %3 : vector<4x256xbf16>
    %5 = vector.extract_strided_slice %4 {offsets = [0, 0], sizes = [4, 128], strides = [1, 1]} : vector<4x256xbf16> to vector<4x128xbf16>
    %6 = vector.extract_strided_slice %4 {offsets = [0, 128], sizes = [4, 128], strides = [1, 1]} : vector<4x256xbf16> to vector<4x128xbf16>
    %7 = arith.maximumf %5, %6 : vector<4x128xbf16>
    %c0_6 = arith.constant 0 : index
    %c0_7 = arith.constant 0 : index
    %c0_8 = arith.constant 0 : index
    %c0_9 = arith.constant 0 : index
    %8 = vector.load %arg3[%c0_6, %c0_7, %c0_8, %c0_9] : memref<1x1x4x128xbf16, #tpu.memory_space<vmem>>, vector<1x1x4x128xbf16>
    %9 = vector.shape_cast %8 : vector<1x1x4x128xbf16> to vector<4x128xbf16>
    %10 = vector.shape_cast %7 : vector<4x128xbf16> to vector<1x1x4x128xbf16>
    tpu.vector_store %arg3[%c0_6, %c0_7, %c0_8, %c0_9], %10 {strides = array<i32>} : memref<1x1x4x128xbf16, #tpu.memory_space<vmem>>, vector<1x1x4x128xbf16>,
    return
  }
  func.func @transform_0(%arg0: i32, %arg1: i32) -> (i32, i32, i32, i32) {
    %c0_i32 = arith.constant 0 : i32
    %c0_i32_0 = arith.constant 0 : i32
    %c0_i32_1 = arith.constant 0 : i32
    return %arg0, %arg1, %c0_i32, %c0_i32_0 : i32, i32, i32, i32
  }
  func.func @transform_1(%arg0: i32, %arg1: i32) -> (i32, i32, i32, i32) {
    %c0_i32 = arith.constant 0 : i32
    %c0_i32_0 = arith.constant 0 : i32
    %c0_i32_1 = arith.constant 0 : i32
    return %arg0, %arg1, %c0_i32, %c0_i32_0 : i32, i32, i32, i32
  }
}

module attributes {stable_mosaic.version = 11 : i64} {
  func.func @_conv3x3_kernel(%arg0: i32, %arg1: i32, %arg2: memref<1x1x6x128xbf16, #tpu.memory_space<vmem>>, %arg3: memref<1x1x6x128xbf16, #tpu.memory_space<vmem>>, %arg4: memref<1x1x6x128xbf16, #tpu.memory_space<vmem>>, %arg5: memref<9x128x256xbf16, #tpu.memory_space<vmem>>, %arg6: memref<1x256xf32, #tpu.memory_space<vmem>>, %arg7: memref<1x1x4x256xbf16, #tpu.memory_space<vmem>>) attributes {dimension_semantics = [#tpu.dimension_semantics<parallel>, #tpu.dimension_semantics<parallel>], iteration_bounds = array<i64: 2, 4>, scalar_prefetch = 0 : i64, scratch_operands = 0 : i64, tpu.core_type = #tpu.core_type<tc>, window_params = [{transform_indices = @transform_0, window_bounds = array<i64: 1, 1, 6, 128>}, {transform_indices = @transform_1, window_bounds = array<i64: 1, 1, 6, 128>}, {transform_indices = @transform_2, window_bounds = array<i64: 1, 1, 6, 128>}, {pipeline_mode = #tpu.pipeline_mode<synchronous>, transform_indices = @transform_3, window_bounds = array<i64: 9, 128, 256>}, {pipeline_mode = #tpu.pipeline_mode<synchronous>, transform_indices = @transform_4, window_bounds = array<i64: 1, 256>}, {transform_indices = @transform_5, window_bounds = array<i64: 1, 1, 4, 256>}]} {
    %c0 = arith.constant 0 : index
    %c0_0 = arith.constant 0 : index
    %c0_1 = arith.constant 0 : index
    %c0_2 = arith.constant 0 : index
    %0 = vector.load %arg2[%c0, %c0_0, %c0_1, %c0_2] : memref<1x1x6x128xbf16, #tpu.memory_space<vmem>>, vector<1x1x6x128xbf16>
    %1 = vector.shape_cast %0 : vector<1x1x6x128xbf16> to vector<6x128xbf16>
    %c0_3 = arith.constant 0 : index
    %c0_4 = arith.constant 0 : index
    %c0_5 = arith.constant 0 : index
    %c0_6 = arith.constant 0 : index
    %2 = vector.load %arg3[%c0_3, %c0_4, %c0_5, %c0_6] : memref<1x1x6x128xbf16, #tpu.memory_space<vmem>>, vector<1x1x6x128xbf16>
    %3 = vector.shape_cast %2 : vector<1x1x6x128xbf16> to vector<6x128xbf16>
    %c0_7 = arith.constant 0 : index
    %c0_8 = arith.constant 0 : index
    %c0_9 = arith.constant 0 : index
    %c0_10 = arith.constant 0 : index
    %4 = vector.load %arg4[%c0_7, %c0_8, %c0_9, %c0_10] : memref<1x1x6x128xbf16, #tpu.memory_space<vmem>>, vector<1x1x6x128xbf16>
    %5 = vector.shape_cast %4 : vector<1x1x6x128xbf16> to vector<6x128xbf16>
    %cst = arith.constant 0.000000e+00 : f32
    %6 = vector.broadcast %cst : f32 to vector<4x256xf32>
    %7 = vector.extract_strided_slice %1 {offsets = [0, 0], sizes = [4, 128], strides = [1, 1]} : vector<6x128xbf16> to vector<4x128xbf16>
    %c0_11 = arith.constant 0 : index
    %c0_12 = arith.constant 0 : index
    %c0_13 = arith.constant 0 : index
    %8 = vector.load %arg5[%c0_11, %c0_12, %c0_13] : memref<9x128x256xbf16, #tpu.memory_space<vmem>>, vector<1x128x256xbf16>
    %9 = vector.shape_cast %8 : vector<1x128x256xbf16> to vector<128x256xbf16>
    %cst_14 = arith.constant dense<0.000000e+00> : vector<4x256xf32>
    %10 = tpu.matmul %7, %9, %cst_14 {dimension_numbers = #tpu.dot_dimension_numbers<[1], [0], [0], [1], [0, 0, 1, 1], [], []>} : vector<4x128xbf16>, vector<128x256xbf16>, vector<4x256xf32> -> vector<4x256xf32>
    %11 = arith.addf %6, %10 : vector<4x256xf32>
    %12 = vector.extract_strided_slice %1 {offsets = [1, 0], sizes = [4, 128], strides = [1, 1]} : vector<6x128xbf16> to vector<4x128xbf16>
    %c1 = arith.constant 1 : index
    %c0_15 = arith.constant 0 : index
    %c0_16 = arith.constant 0 : index
    %13 = vector.load %arg5[%c1, %c0_15, %c0_16] : memref<9x128x256xbf16, #tpu.memory_space<vmem>>, vector<1x128x256xbf16>
    %14 = vector.shape_cast %13 : vector<1x128x256xbf16> to vector<128x256xbf16>
    %cst_17 = arith.constant dense<0.000000e+00> : vector<4x256xf32>
    %15 = tpu.matmul %12, %14, %cst_17 {dimension_numbers = #tpu.dot_dimension_numbers<[1], [0], [0], [1], [0, 0, 1, 1], [], []>} : vector<4x128xbf16>, vector<128x256xbf16>, vector<4x256xf32> -> vector<4x256xf32>
    %16 = arith.addf %11, %15 : vector<4x256xf32>
    %17 = vector.extract_strided_slice %1 {offsets = [2, 0], sizes = [4, 128], strides = [1, 1]} : vector<6x128xbf16> to vector<4x128xbf16>
    %c2 = arith.constant 2 : index
    %c0_18 = arith.constant 0 : index
    %c0_19 = arith.constant 0 : index
    %18 = vector.load %arg5[%c2, %c0_18, %c0_19] : memref<9x128x256xbf16, #tpu.memory_space<vmem>>, vector<1x128x256xbf16>
    %19 = vector.shape_cast %18 : vector<1x128x256xbf16> to vector<128x256xbf16>
    %cst_20 = arith.constant dense<0.000000e+00> : vector<4x256xf32>
    %20 = tpu.matmul %17, %19, %cst_20 {dimension_numbers = #tpu.dot_dimension_numbers<[1], [0], [0], [1], [0, 0, 1, 1], [], []>} : vector<4x128xbf16>, vector<128x256xbf16>, vector<4x256xf32> -> vector<4x256xf32>
    %21 = arith.addf %16, %20 : vector<4x256xf32>
    %22 = vector.extract_strided_slice %3 {offsets = [0, 0], sizes = [4, 128], strides = [1, 1]} : vector<6x128xbf16> to vector<4x128xbf16>
    %c3 = arith.constant 3 : index
    %c0_21 = arith.constant 0 : index
    %c0_22 = arith.constant 0 : index
    %23 = vector.load %arg5[%c3, %c0_21, %c0_22] : memref<9x128x256xbf16, #tpu.memory_space<vmem>>, vector<1x128x256xbf16>
    %24 = vector.shape_cast %23 : vector<1x128x256xbf16> to vector<128x256xbf16>
    %cst_23 = arith.constant dense<0.000000e+00> : vector<4x256xf32>
    %25 = tpu.matmul %22, %24, %cst_23 {dimension_numbers = #tpu.dot_dimension_numbers<[1], [0], [0], [1], [0, 0, 1, 1], [], []>} : vector<4x128xbf16>, vector<128x256xbf16>, vector<4x256xf32> -> vector<4x256xf32>
    %26 = arith.addf %21, %25 : vector<4x256xf32>
    %27 = vector.extract_strided_slice %3 {offsets = [1, 0], sizes = [4, 128], strides = [1, 1]} : vector<6x128xbf16> to vector<4x128xbf16>
    %c4 = arith.constant 4 : index
    %c0_24 = arith.constant 0 : index
    %c0_25 = arith.constant 0 : index
    %28 = vector.load %arg5[%c4, %c0_24, %c0_25] : memref<9x128x256xbf16, #tpu.memory_space<vmem>>, vector<1x128x256xbf16>
    %29 = vector.shape_cast %28 : vector<1x128x256xbf16> to vector<128x256xbf16>
    %cst_26 = arith.constant dense<0.000000e+00> : vector<4x256xf32>
    %30 = tpu.matmul %27, %29, %cst_26 {dimension_numbers = #tpu.dot_dimension_numbers<[1], [0], [0], [1], [0, 0, 1, 1], [], []>} : vector<4x128xbf16>, vector<128x256xbf16>, vector<4x256xf32> -> vector<4x256xf32>
    %31 = arith.addf %26, %30 : vector<4x256xf32>
    %32 = vector.extract_strided_slice %3 {offsets = [2, 0], sizes = [4, 128], strides = [1, 1]} : vector<6x128xbf16> to vector<4x128xbf16>
    %c5 = arith.constant 5 : index
    %c0_27 = arith.constant 0 : index
    %c0_28 = arith.constant 0 : index
    %33 = vector.load %arg5[%c5, %c0_27, %c0_28] : memref<9x128x256xbf16, #tpu.memory_space<vmem>>, vector<1x128x256xbf16>
    %34 = vector.shape_cast %33 : vector<1x128x256xbf16> to vector<128x256xbf16>
    %cst_29 = arith.constant dense<0.000000e+00> : vector<4x256xf32>
    %35 = tpu.matmul %32, %34, %cst_29 {dimension_numbers = #tpu.dot_dimension_numbers<[1], [0], [0], [1], [0, 0, 1, 1], [], []>} : vector<4x128xbf16>, vector<128x256xbf16>, vector<4x256xf32> -> vector<4x256xf32>
    %36 = arith.addf %31, %35 : vector<4x256xf32>
    %37 = vector.extract_strided_slice %5 {offsets = [0, 0], sizes = [4, 128], strides = [1, 1]} : vector<6x128xbf16> to vector<4x128xbf16>
    %c6 = arith.constant 6 : index
    %c0_30 = arith.constant 0 : index
    %c0_31 = arith.constant 0 : index
    %38 = vector.load %arg5[%c6, %c0_30, %c0_31] : memref<9x128x256xbf16, #tpu.memory_space<vmem>>, vector<1x128x256xbf16>
    %39 = vector.shape_cast %38 : vector<1x128x256xbf16> to vector<128x256xbf16>
    %cst_32 = arith.constant dense<0.000000e+00> : vector<4x256xf32>
    %40 = tpu.matmul %37, %39, %cst_32 {dimension_numbers = #tpu.dot_dimension_numbers<[1], [0], [0], [1], [0, 0, 1, 1], [], []>} : vector<4x128xbf16>, vector<128x256xbf16>, vector<4x256xf32> -> vector<4x256xf32>
    %41 = arith.addf %36, %40 : vector<4x256xf32>
    %42 = vector.extract_strided_slice %5 {offsets = [1, 0], sizes = [4, 128], strides = [1, 1]} : vector<6x128xbf16> to vector<4x128xbf16>
    %c7 = arith.constant 7 : index
    %c0_33 = arith.constant 0 : index
    %c0_34 = arith.constant 0 : index
    %43 = vector.load %arg5[%c7, %c0_33, %c0_34] : memref<9x128x256xbf16, #tpu.memory_space<vmem>>, vector<1x128x256xbf16>
    %44 = vector.shape_cast %43 : vector<1x128x256xbf16> to vector<128x256xbf16>
    %cst_35 = arith.constant dense<0.000000e+00> : vector<4x256xf32>
    %45 = tpu.matmul %42, %44, %cst_35 {dimension_numbers = #tpu.dot_dimension_numbers<[1], [0], [0], [1], [0, 0, 1, 1], [], []>} : vector<4x128xbf16>, vector<128x256xbf16>, vector<4x256xf32> -> vector<4x256xf32>
    %46 = arith.addf %41, %45 : vector<4x256xf32>
    %47 = vector.extract_strided_slice %5 {offsets = [2, 0], sizes = [4, 128], strides = [1, 1]} : vector<6x128xbf16> to vector<4x128xbf16>
    %c8 = arith.constant 8 : index
    %c0_36 = arith.constant 0 : index
    %c0_37 = arith.constant 0 : index
    %48 = vector.load %arg5[%c8, %c0_36, %c0_37] : memref<9x128x256xbf16, #tpu.memory_space<vmem>>, vector<1x128x256xbf16>
    %49 = vector.shape_cast %48 : vector<1x128x256xbf16> to vector<128x256xbf16>
    %cst_38 = arith.constant dense<0.000000e+00> : vector<4x256xf32>
    %50 = tpu.matmul %47, %49, %cst_38 {dimension_numbers = #tpu.dot_dimension_numbers<[1], [0], [0], [1], [0, 0, 1, 1], [], []>} : vector<4x128xbf16>, vector<128x256xbf16>, vector<4x256xf32> -> vector<4x256xf32>
    %51 = arith.addf %46, %50 : vector<4x256xf32>
    %c0_39 = arith.constant 0 : index
    %c0_40 = arith.constant 0 : index
    %52 = vector.load %arg6[%c0_39, %c0_40] : memref<1x256xf32, #tpu.memory_space<vmem>>, vector<1x256xf32>
    %53 = vector.broadcast %52 : vector<1x256xf32> to vector<4x256xf32>
    %54 = arith.addf %51, %53 : vector<4x256xf32>
    %cst_41 = arith.constant 0.000000e+00 : f32
    %55 = vector.broadcast %cst_41 : f32 to vector<4x256xf32>
    %56 = arith.maximumf %54, %55 : vector<4x256xf32>
    %57 = arith.truncf %56 : vector<4x256xf32> to vector<4x256xbf16>
    %c0_42 = arith.constant 0 : index
    %c0_43 = arith.constant 0 : index
    %c0_44 = arith.constant 0 : index
    %c0_45 = arith.constant 0 : index
    %58 = vector.load %arg7[%c0_42, %c0_43, %c0_44, %c0_45] : memref<1x1x4x256xbf16, #tpu.memory_space<vmem>>, vector<1x1x4x256xbf16>
    %59 = vector.shape_cast %58 : vector<1x1x4x256xbf16> to vector<4x256xbf16>
    %60 = vector.shape_cast %57 : vector<4x256xbf16> to vector<1x1x4x256xbf16>
    tpu.vector_store %arg7[%c0_42, %c0_43, %c0_44, %c0_45], %60 {strides = array<i32>} : memref<1x1x4x256xbf16, #tpu.memory_space<vmem>>, vector<1x1x4x256xbf16>,
    return
  }
  func.func @transform_0(%arg0: i32, %arg1: i32) -> (i32, i32, i32, i32) {
    %c0_i32 = arith.constant 0 : i32
    %0 = arith.addi %arg1, %c0_i32 : i32
    %c0_i32_0 = arith.constant 0 : i32
    %c0_i32_1 = arith.constant 0 : i32
    %c0_i32_2 = arith.constant 0 : i32
    return %arg0, %0, %c0_i32_0, %c0_i32_1 : i32, i32, i32, i32
  }
  func.func @transform_1(%arg0: i32, %arg1: i32) -> (i32, i32, i32, i32) {
    %c1_i32 = arith.constant 1 : i32
    %0 = arith.addi %arg1, %c1_i32 : i32
    %c0_i32 = arith.constant 0 : i32
    %c0_i32_0 = arith.constant 0 : i32
    %c0_i32_1 = arith.constant 0 : i32
    return %arg0, %0, %c0_i32, %c0_i32_0 : i32, i32, i32, i32
  }
  func.func @transform_2(%arg0: i32, %arg1: i32) -> (i32, i32, i32, i32) {
    %c2_i32 = arith.constant 2 : i32
    %0 = arith.addi %arg1, %c2_i32 : i32
    %c0_i32 = arith.constant 0 : i32
    %c0_i32_0 = arith.constant 0 : i32
    %c0_i32_1 = arith.constant 0 : i32
    return %arg0, %0, %c0_i32, %c0_i32_0 : i32, i32, i32, i32
  }
  func.func @transform_3(%arg0: i32, %arg1: i32) -> (i32, i32, i32) {
    %c0_i32 = arith.constant 0 : i32
    %c0_i32_0 = arith.constant 0 : i32
    %c0_i32_1 = arith.constant 0 : i32
    %c0_i32_2 = arith.constant 0 : i32
    return %c0_i32, %c0_i32_0, %c0_i32_1 : i32, i32, i32
  }
  func.func @transform_4(%arg0: i32, %arg1: i32) -> (i32, i32) {
    %c0_i32 = arith.constant 0 : i32
    %c0_i32_0 = arith.constant 0 : i32
    %c0_i32_1 = arith.constant 0 : i32
    return %c0_i32, %c0_i32_0 : i32, i32
  }
  func.func @transform_5(%arg0: i32, %arg1: i32) -> (i32, i32, i32, i32) {
    %c0_i32 = arith.constant 0 : i32
    %c0_i32_0 = arith.constant 0 : i32
    %c0_i32_1 = arith.constant 0 : i32
    return %arg0, %arg1, %c0_i32, %c0_i32_0 : i32, i32, i32, i32
  }
}

module attributes {stable_mosaic.version = 11 : i64} {
  func.func @_conv3x3_kernel(%arg0: i32, %arg1: i32, %arg2: memref<1x1x6x256xbf16, #tpu.memory_space<vmem>>, %arg3: memref<1x1x6x256xbf16, #tpu.memory_space<vmem>>, %arg4: memref<1x1x6x256xbf16, #tpu.memory_space<vmem>>, %arg5: memref<9x256x256xbf16, #tpu.memory_space<vmem>>, %arg6: memref<1x256xf32, #tpu.memory_space<vmem>>, %arg7: memref<1x1x4x256xbf16, #tpu.memory_space<vmem>>) attributes {dimension_semantics = [#tpu.dimension_semantics<parallel>, #tpu.dimension_semantics<parallel>], iteration_bounds = array<i64: 2, 4>, scalar_prefetch = 0 : i64, scratch_operands = 0 : i64, tpu.core_type = #tpu.core_type<tc>, window_params = [{transform_indices = @transform_0, window_bounds = array<i64: 1, 1, 6, 256>}, {transform_indices = @transform_1, window_bounds = array<i64: 1, 1, 6, 256>}, {transform_indices = @transform_2, window_bounds = array<i64: 1, 1, 6, 256>}, {pipeline_mode = #tpu.pipeline_mode<synchronous>, transform_indices = @transform_3, window_bounds = array<i64: 9, 256, 256>}, {pipeline_mode = #tpu.pipeline_mode<synchronous>, transform_indices = @transform_4, window_bounds = array<i64: 1, 256>}, {transform_indices = @transform_5, window_bounds = array<i64: 1, 1, 4, 256>}]} {
    %c0 = arith.constant 0 : index
    %c0_0 = arith.constant 0 : index
    %c0_1 = arith.constant 0 : index
    %c0_2 = arith.constant 0 : index
    %0 = vector.load %arg2[%c0, %c0_0, %c0_1, %c0_2] : memref<1x1x6x256xbf16, #tpu.memory_space<vmem>>, vector<1x1x6x256xbf16>
    %1 = vector.shape_cast %0 : vector<1x1x6x256xbf16> to vector<6x256xbf16>
    %c0_3 = arith.constant 0 : index
    %c0_4 = arith.constant 0 : index
    %c0_5 = arith.constant 0 : index
    %c0_6 = arith.constant 0 : index
    %2 = vector.load %arg3[%c0_3, %c0_4, %c0_5, %c0_6] : memref<1x1x6x256xbf16, #tpu.memory_space<vmem>>, vector<1x1x6x256xbf16>
    %3 = vector.shape_cast %2 : vector<1x1x6x256xbf16> to vector<6x256xbf16>
    %c0_7 = arith.constant 0 : index
    %c0_8 = arith.constant 0 : index
    %c0_9 = arith.constant 0 : index
    %c0_10 = arith.constant 0 : index
    %4 = vector.load %arg4[%c0_7, %c0_8, %c0_9, %c0_10] : memref<1x1x6x256xbf16, #tpu.memory_space<vmem>>, vector<1x1x6x256xbf16>
    %5 = vector.shape_cast %4 : vector<1x1x6x256xbf16> to vector<6x256xbf16>
    %cst = arith.constant 0.000000e+00 : f32
    %6 = vector.broadcast %cst : f32 to vector<4x256xf32>
    %7 = vector.extract_strided_slice %1 {offsets = [0, 0], sizes = [4, 256], strides = [1, 1]} : vector<6x256xbf16> to vector<4x256xbf16>
    %c0_11 = arith.constant 0 : index
    %c0_12 = arith.constant 0 : index
    %c0_13 = arith.constant 0 : index
    %8 = vector.load %arg5[%c0_11, %c0_12, %c0_13] : memref<9x256x256xbf16, #tpu.memory_space<vmem>>, vector<1x256x256xbf16>
    %9 = vector.shape_cast %8 : vector<1x256x256xbf16> to vector<256x256xbf16>
    %cst_14 = arith.constant dense<0.000000e+00> : vector<4x256xf32>
    %10 = tpu.matmul %7, %9, %cst_14 {dimension_numbers = #tpu.dot_dimension_numbers<[1], [0], [0], [1], [0, 0, 1, 1], [], []>} : vector<4x256xbf16>, vector<256x256xbf16>, vector<4x256xf32> -> vector<4x256xf32>
    %11 = arith.addf %6, %10 : vector<4x256xf32>
    %12 = vector.extract_strided_slice %1 {offsets = [1, 0], sizes = [4, 256], strides = [1, 1]} : vector<6x256xbf16> to vector<4x256xbf16>
    %c1 = arith.constant 1 : index
    %c0_15 = arith.constant 0 : index
    %c0_16 = arith.constant 0 : index
    %13 = vector.load %arg5[%c1, %c0_15, %c0_16] : memref<9x256x256xbf16, #tpu.memory_space<vmem>>, vector<1x256x256xbf16>
    %14 = vector.shape_cast %13 : vector<1x256x256xbf16> to vector<256x256xbf16>
    %cst_17 = arith.constant dense<0.000000e+00> : vector<4x256xf32>
    %15 = tpu.matmul %12, %14, %cst_17 {dimension_numbers = #tpu.dot_dimension_numbers<[1], [0], [0], [1], [0, 0, 1, 1], [], []>} : vector<4x256xbf16>, vector<256x256xbf16>, vector<4x256xf32> -> vector<4x256xf32>
    %16 = arith.addf %11, %15 : vector<4x256xf32>
    %17 = vector.extract_strided_slice %1 {offsets = [2, 0], sizes = [4, 256], strides = [1, 1]} : vector<6x256xbf16> to vector<4x256xbf16>
    %c2 = arith.constant 2 : index
    %c0_18 = arith.constant 0 : index
    %c0_19 = arith.constant 0 : index
    %18 = vector.load %arg5[%c2, %c0_18, %c0_19] : memref<9x256x256xbf16, #tpu.memory_space<vmem>>, vector<1x256x256xbf16>
    %19 = vector.shape_cast %18 : vector<1x256x256xbf16> to vector<256x256xbf16>
    %cst_20 = arith.constant dense<0.000000e+00> : vector<4x256xf32>
    %20 = tpu.matmul %17, %19, %cst_20 {dimension_numbers = #tpu.dot_dimension_numbers<[1], [0], [0], [1], [0, 0, 1, 1], [], []>} : vector<4x256xbf16>, vector<256x256xbf16>, vector<4x256xf32> -> vector<4x256xf32>
    %21 = arith.addf %16, %20 : vector<4x256xf32>
    %22 = vector.extract_strided_slice %3 {offsets = [0, 0], sizes = [4, 256], strides = [1, 1]} : vector<6x256xbf16> to vector<4x256xbf16>
    %c3 = arith.constant 3 : index
    %c0_21 = arith.constant 0 : index
    %c0_22 = arith.constant 0 : index
    %23 = vector.load %arg5[%c3, %c0_21, %c0_22] : memref<9x256x256xbf16, #tpu.memory_space<vmem>>, vector<1x256x256xbf16>
    %24 = vector.shape_cast %23 : vector<1x256x256xbf16> to vector<256x256xbf16>
    %cst_23 = arith.constant dense<0.000000e+00> : vector<4x256xf32>
    %25 = tpu.matmul %22, %24, %cst_23 {dimension_numbers = #tpu.dot_dimension_numbers<[1], [0], [0], [1], [0, 0, 1, 1], [], []>} : vector<4x256xbf16>, vector<256x256xbf16>, vector<4x256xf32> -> vector<4x256xf32>
    %26 = arith.addf %21, %25 : vector<4x256xf32>
    %27 = vector.extract_strided_slice %3 {offsets = [1, 0], sizes = [4, 256], strides = [1, 1]} : vector<6x256xbf16> to vector<4x256xbf16>
    %c4 = arith.constant 4 : index
    %c0_24 = arith.constant 0 : index
    %c0_25 = arith.constant 0 : index
    %28 = vector.load %arg5[%c4, %c0_24, %c0_25] : memref<9x256x256xbf16, #tpu.memory_space<vmem>>, vector<1x256x256xbf16>
    %29 = vector.shape_cast %28 : vector<1x256x256xbf16> to vector<256x256xbf16>
    %cst_26 = arith.constant dense<0.000000e+00> : vector<4x256xf32>
    %30 = tpu.matmul %27, %29, %cst_26 {dimension_numbers = #tpu.dot_dimension_numbers<[1], [0], [0], [1], [0, 0, 1, 1], [], []>} : vector<4x256xbf16>, vector<256x256xbf16>, vector<4x256xf32> -> vector<4x256xf32>
    %31 = arith.addf %26, %30 : vector<4x256xf32>
    %32 = vector.extract_strided_slice %3 {offsets = [2, 0], sizes = [4, 256], strides = [1, 1]} : vector<6x256xbf16> to vector<4x256xbf16>
    %c5 = arith.constant 5 : index
    %c0_27 = arith.constant 0 : index
    %c0_28 = arith.constant 0 : index
    %33 = vector.load %arg5[%c5, %c0_27, %c0_28] : memref<9x256x256xbf16, #tpu.memory_space<vmem>>, vector<1x256x256xbf16>
    %34 = vector.shape_cast %33 : vector<1x256x256xbf16> to vector<256x256xbf16>
    %cst_29 = arith.constant dense<0.000000e+00> : vector<4x256xf32>
    %35 = tpu.matmul %32, %34, %cst_29 {dimension_numbers = #tpu.dot_dimension_numbers<[1], [0], [0], [1], [0, 0, 1, 1], [], []>} : vector<4x256xbf16>, vector<256x256xbf16>, vector<4x256xf32> -> vector<4x256xf32>
    %36 = arith.addf %31, %35 : vector<4x256xf32>
    %37 = vector.extract_strided_slice %5 {offsets = [0, 0], sizes = [4, 256], strides = [1, 1]} : vector<6x256xbf16> to vector<4x256xbf16>
    %c6 = arith.constant 6 : index
    %c0_30 = arith.constant 0 : index
    %c0_31 = arith.constant 0 : index
    %38 = vector.load %arg5[%c6, %c0_30, %c0_31] : memref<9x256x256xbf16, #tpu.memory_space<vmem>>, vector<1x256x256xbf16>
    %39 = vector.shape_cast %38 : vector<1x256x256xbf16> to vector<256x256xbf16>
    %cst_32 = arith.constant dense<0.000000e+00> : vector<4x256xf32>
    %40 = tpu.matmul %37, %39, %cst_32 {dimension_numbers = #tpu.dot_dimension_numbers<[1], [0], [0], [1], [0, 0, 1, 1], [], []>} : vector<4x256xbf16>, vector<256x256xbf16>, vector<4x256xf32> -> vector<4x256xf32>
    %41 = arith.addf %36, %40 : vector<4x256xf32>
    %42 = vector.extract_strided_slice %5 {offsets = [1, 0], sizes = [4, 256], strides = [1, 1]} : vector<6x256xbf16> to vector<4x256xbf16>
    %c7 = arith.constant 7 : index
    %c0_33 = arith.constant 0 : index
    %c0_34 = arith.constant 0 : index
    %43 = vector.load %arg5[%c7, %c0_33, %c0_34] : memref<9x256x256xbf16, #tpu.memory_space<vmem>>, vector<1x256x256xbf16>
    %44 = vector.shape_cast %43 : vector<1x256x256xbf16> to vector<256x256xbf16>
    %cst_35 = arith.constant dense<0.000000e+00> : vector<4x256xf32>
    %45 = tpu.matmul %42, %44, %cst_35 {dimension_numbers = #tpu.dot_dimension_numbers<[1], [0], [0], [1], [0, 0, 1, 1], [], []>} : vector<4x256xbf16>, vector<256x256xbf16>, vector<4x256xf32> -> vector<4x256xf32>
    %46 = arith.addf %41, %45 : vector<4x256xf32>
    %47 = vector.extract_strided_slice %5 {offsets = [2, 0], sizes = [4, 256], strides = [1, 1]} : vector<6x256xbf16> to vector<4x256xbf16>
    %c8 = arith.constant 8 : index
    %c0_36 = arith.constant 0 : index
    %c0_37 = arith.constant 0 : index
    %48 = vector.load %arg5[%c8, %c0_36, %c0_37] : memref<9x256x256xbf16, #tpu.memory_space<vmem>>, vector<1x256x256xbf16>
    %49 = vector.shape_cast %48 : vector<1x256x256xbf16> to vector<256x256xbf16>
    %cst_38 = arith.constant dense<0.000000e+00> : vector<4x256xf32>
    %50 = tpu.matmul %47, %49, %cst_38 {dimension_numbers = #tpu.dot_dimension_numbers<[1], [0], [0], [1], [0, 0, 1, 1], [], []>} : vector<4x256xbf16>, vector<256x256xbf16>, vector<4x256xf32> -> vector<4x256xf32>
    %51 = arith.addf %46, %50 : vector<4x256xf32>
    %c0_39 = arith.constant 0 : index
    %c0_40 = arith.constant 0 : index
    %52 = vector.load %arg6[%c0_39, %c0_40] : memref<1x256xf32, #tpu.memory_space<vmem>>, vector<1x256xf32>
    %53 = vector.broadcast %52 : vector<1x256xf32> to vector<4x256xf32>
    %54 = arith.addf %51, %53 : vector<4x256xf32>
    %cst_41 = arith.constant 0.000000e+00 : f32
    %55 = vector.broadcast %cst_41 : f32 to vector<4x256xf32>
    %56 = arith.maximumf %54, %55 : vector<4x256xf32>
    %57 = arith.truncf %56 : vector<4x256xf32> to vector<4x256xbf16>
    %c0_42 = arith.constant 0 : index
    %c0_43 = arith.constant 0 : index
    %c0_44 = arith.constant 0 : index
    %c0_45 = arith.constant 0 : index
    %58 = vector.load %arg7[%c0_42, %c0_43, %c0_44, %c0_45] : memref<1x1x4x256xbf16, #tpu.memory_space<vmem>>, vector<1x1x4x256xbf16>
    %59 = vector.shape_cast %58 : vector<1x1x4x256xbf16> to vector<4x256xbf16>
    %60 = vector.shape_cast %57 : vector<4x256xbf16> to vector<1x1x4x256xbf16>
    tpu.vector_store %arg7[%c0_42, %c0_43, %c0_44, %c0_45], %60 {strides = array<i32>} : memref<1x1x4x256xbf16, #tpu.memory_space<vmem>>, vector<1x1x4x256xbf16>,
    return
  }
  func.func @transform_0(%arg0: i32, %arg1: i32) -> (i32, i32, i32, i32) {
    %c0_i32 = arith.constant 0 : i32
    %0 = arith.addi %arg1, %c0_i32 : i32
    %c0_i32_0 = arith.constant 0 : i32
    %c0_i32_1 = arith.constant 0 : i32
    %c0_i32_2 = arith.constant 0 : i32
    return %arg0, %0, %c0_i32_0, %c0_i32_1 : i32, i32, i32, i32
  }
  func.func @transform_1(%arg0: i32, %arg1: i32) -> (i32, i32, i32, i32) {
    %c1_i32 = arith.constant 1 : i32
    %0 = arith.addi %arg1, %c1_i32 : i32
    %c0_i32 = arith.constant 0 : i32
    %c0_i32_0 = arith.constant 0 : i32
    %c0_i32_1 = arith.constant 0 : i32
    return %arg0, %0, %c0_i32, %c0_i32_0 : i32, i32, i32, i32
  }
  func.func @transform_2(%arg0: i32, %arg1: i32) -> (i32, i32, i32, i32) {
    %c2_i32 = arith.constant 2 : i32
    %0 = arith.addi %arg1, %c2_i32 : i32
    %c0_i32 = arith.constant 0 : i32
    %c0_i32_0 = arith.constant 0 : i32
    %c0_i32_1 = arith.constant 0 : i32
    return %arg0, %0, %c0_i32, %c0_i32_0 : i32, i32, i32, i32
  }
  func.func @transform_3(%arg0: i32, %arg1: i32) -> (i32, i32, i32) {
    %c0_i32 = arith.constant 0 : i32
    %c0_i32_0 = arith.constant 0 : i32
    %c0_i32_1 = arith.constant 0 : i32
    %c0_i32_2 = arith.constant 0 : i32
    return %c0_i32, %c0_i32_0, %c0_i32_1 : i32, i32, i32
  }
  func.func @transform_4(%arg0: i32, %arg1: i32) -> (i32, i32) {
    %c0_i32 = arith.constant 0 : i32
    %c0_i32_0 = arith.constant 0 : i32
    %c0_i32_1 = arith.constant 0 : i32
    return %c0_i32, %c0_i32_0 : i32, i32
  }
  func.func @transform_5(%arg0: i32, %arg1: i32) -> (i32, i32, i32, i32) {
    %c0_i32 = arith.constant 0 : i32
    %c0_i32_0 = arith.constant 0 : i32
    %c0_i32_1 = arith.constant 0 : i32
    return %arg0, %arg1, %c0_i32, %c0_i32_0 : i32, i32, i32, i32
  }
}

</mosaic_0001>

<bundles_post_ra>
// kernel: _lambda_.11
= control target key start
LH: loop header
LB: loop body
LE: loop exit
PB: predicated region body
PF: predicated region fallthrough
CT: control target
= control target key end

     0   :  { %s355_s6 = smov 0   ;;  %s357_s7 = smov 0   ;;  %s411_s0 = inlined_call_operand.vmem [shape: bf16[2,16,8,128], index: 0, kind: input, shape index: {}]   ;;  %s412_s1 = inlined_call_operand.vmem [shape: bf16[2,8,8,64], index: 1, kind: output, shape index: {}]  }
   0x1   :  { %s359_s8 = smov 0   ;;  %s361_s9 = smov 0  }
   0x2   :  { %s363_s10 = smov 0  }
   0x3 LB: > { %s20_s11 = sadd.s32 1, %s334_s8  ;;  %s23_s12 = sadd.s32 1, %s338_s9  ;;  %s342_s10 = sphi %s363_s10, %s11_s10   ;;  %s338_s9 = sphi %s361_s9, %s416_s9   ;;  %s334_s8 = sphi %s359_s8, %s415_s8   ;;  %s330_s7 = sphi %s357_s7, %s414_s7   ;;  %s326_s6 = sphi %s355_s6, %s413_s6  }
   0x4   : > { %p21_p0 = scmp.ge.s32.totalorder %s20_s11, 8  ;;  %p254_p1 = scmp.ge.s32.totalorder %s342_s10, 1 }
   0x5   : > { %p108_p2 = scmp.lt.s32.totalorder %s342_s10, 17 }
   0x6   : > { %s418_s11 = smov (%p21_p0, %s20_s11), 0  ;;  %s420_s12 = smov (!%p21_p0, %s23_s12), %s338_s9 }
   0x7   : > { %p109_p3 = pnand %p254_p1, %p108_p2  ;;  %p25_p4 = scmp.ge.s32.totalorder %s420_s12, 2 }
   0x8   : > { %s255_s13 = sshll.u32 (!%p109_p3), %s326_s6, 1  ;;  %p136_p5 = scmp.lt.s32.totalorder (!%p109_p3), %s330_s7, 1  ;;  %vm162_vm0 = vcmask (!%p109_p3), 519168  }
   0x9   : > { %s422_s12 = smov (%p25_p4, %s420_s12), 0  ;;  %112 = sbr.rel (%p109_p3) target bundleno = 142 (0x8e), region = 24 }
   0xa   : > { %p138_p6 = scmp.lt.s32.totalorder (!%p109_p3), %s255_s13, 15  ;;  %s344_s20 = smov (!%p109_p3), 64  }
   0xb   : > { %p147_p7 = scmp.lt.s32.totalorder (!%p109_p3), %s326_s6, 7 }
  0x10   : > { %s424_s7 = smov (!%p136_p5, %s330_s7), 1  ;;  %s426_s13 = smov (!%p138_p6, %s255_s13), 15 }
  0x11   : > { %s256_s14 = sshll.u32 %s424_s7, 4  ;;  %s428_s6 = smov (!%p147_p7, %s326_s6), 7 }
  0x12   : > { %s141_s15 = sadd.s32 %s256_s14, %s426_s13  ;;  %s258_s21 = sshll.u32 %s424_s7, 3 }
  0x13   : > { %s257_s16 = sshll.u32 %s141_s15, 2  ;;  %s150_s22 = sadd.s32 %s258_s21, %s428_s6 }
  0x14   : > { %s143_s19 = scalar_lea.vmem %s411_s0, %s257_s16  ;;  %s259_s23 = sshll.u32 %s150_s22, 2 }
  0x15   : > { %v153_v0 = vld [vmem:[%s143_s19] sm:$0xf]  ;;  %v260_v1 = vld [vmem:[%s143_s19 + $0x4] sm:$0xf]  ;;  %s152_s26 = scalar_lea.vmem %s412_s1, %s259_s23 }
  0x16   : > { %v156_v2 = vmax.bf16 %v260_v1, %v153_v0 }
  0x18   : > { %158 = vrot.lane.b32.xlu0 %v156_v2, %s344_s20 }
  0x8a   : > { %v159_v3 = vpop.permute.xlu0 %158 }
  0x8b   : > { %v161_v4 = vmax.bf16 %v159_v3, %v156_v2 }
  0x8d   : > { %163 = vst.msk [vmem:[%s152_s26] sm:$0xf] %vm162_vm0, %v161_v4 }
  0x8e PF: > { %s11_s10 = sadd.s32 1, %s342_s10   ;;  %s413_s6 = smov %s334_s8 }
  0x8f   : > { %p8_p8 = scmp.ge.s32.totalorder %s11_s10, 18   ;;  %s414_s7 = smov %s338_s9 }
  0x90   : > { %s415_s8 = smov %s418_s11  ;;  %s416_s9 = smov %s422_s12 }
  0x91   :  { %10 = sbr.rel (!%p8_p8) target bundleno = 3 (0x3), region = 55 }

// kernel: _lambda_.9
= control target key start
LH: loop header
LB: loop body
LE: loop exit
PB: predicated region body
PF: predicated region fallthrough
CT: control target
= control target key end

     0   :  { %10 = vsyncpa [#allocation3], 0  ;;  %s1609_s0 = inlined_call_operand.vmem [shape: bf16[2,18,18,8], index: 0, kind: input, shape index: {}, may-alias: {0,1,2}]   ;;  %s1610_s1 = inlined_call_operand.vmem [shape: bf16[2,18,18,8], index: 1, kind: input, shape index: {}, may-alias: {0,1,2}]   ;;  %s1611_s2 = inlined_call_operand.vmem [shape: bf16[2,18,18,8], index: 2, kind: input, shape index: {}, may-alias: {0,1,2}]   ;;  %s1612_s3 = inlined_call_operand.hbm [shape: bf16[9,8,64], index: 3, kind: input, shape index: {}]   ;;  %s1613_s4 = inlined_call_operand.hbm [shape: f32[1,64], index: 4, kind: input, shape index: {}]   ;;  %s1614_s5 = inlined_call_operand.vmem [shape: bf16[2,16,16,64], index: 5, kind: output, shape index: {}]  }
   0x1   :  { %11 = vsyncpa [#allocation5], 0  ;;  %s1411_s18 = smov 0   ;;  %s1413_s19 = smov 0  }
   0x2   :  { %s1415_s20 = smov 0   ;;  %s1417_s21 = smov 0  }
   0x3   :  { %s1419_s22 = smov 0  }
   0x4 LB: > { %s1087_s23 = sadd.s32 4294967295, %s1373_s22   ;;  %s26_s24 = sadd.s32 1, %s1365_s20  ;;  %s1373_s22 = sphi %s1419_s22, %s17_s22   ;;  %s1369_s21 = sphi %s1417_s21, %s1626_s21   ;;  %s1365_s20 = sphi %s1415_s20, %s1625_s20   ;;  %s1361_s19 = sphi %s1413_s19, %s1624_s19   ;;  %s1357_s18 = sphi %s1411_s18, %s1623_s18  }
   0x5   : > { %p27_p0 = scmp.ge.s32.totalorder %s26_s24, 16  ;;  %s29_s25 = sadd.s32 1, %s1369_s21 }
   0x6   : > { %p1089_p1 = scmp.ge.s32.totalorder %s1373_s22, 1  ;;  %p192_p2 = scmp.lt.s32.totalorder %s1373_s22, 33 }
   0x7   : > { %s1628_s24 = smov (%p27_p0, %s26_s24), 0  ;;  %s1630_s25 = smov (!%p27_p0, %s29_s25), %s1369_s21 }
   0x8   : > { %p1444_p3 = pnand %p1089_p1, %p192_p2  ;;  %p31_p4 = scmp.ge.s32.totalorder %s1630_s25, 2 }
   0x9   : > { %p1448_p5 = scmp.eq.s32.totalorder %s1087_s23, 0  ;;  %s1375_s28 = smov [#allocation2]  }
   0xa   : > { %s1618_s26 = scalar_select %p1444_p3, 1, 0 }
   0xb   : > { %s1619_s27 = scalar_select %p1448_p5, 1, 0 }
   0xc   : > { %p1208_p6 = pneg %p1444_p3  ;;  %s1632_s25 = smov (%p31_p4, %s1630_s25), 0 }
   0xd   : > { %s204_s29 = sshll.u32 %s1375_s28, 4  ;;  %s1271_s8 = scalar_lea.hbm %s1612_s3, 576  ;;  %s205_s29 = int_to_ptr.vmem [resolvable:$true] %s204_s29 }
   0xe   : > { %p1458_p7 = pnand %p1448_p5, %p1208_p6  ;;  %p1272_p8 = scmp.ne.s32.totalorder %s1612_s3, %s1271_s8 }
   0xf   : > { %p1278_p12 = scmp.lt.u32.totalorder %s1271_s8, %s1612_s3 }
  0x10   : > { %p1273_p9 = pneg %p1458_p7 }
  0x12   : > { %p1274_p10 = pnand %p1273_p9, %p1272_p8 }
  0x14   : > { %p1275_p11 = pneg %p1274_p10 }
  0x16   : > { %p1280_p13 = pnand %p1278_p12, %p1275_p11 }
  0x18   : > { %1283 = shalt.err (!%p1280_p13)
}
  0x19   : > { %s1284_s13 = scalar_lea.vmem %s205_s29, 576  ;;  %p1292_p4 = scmp.lt.s32.totalorder %s205_s29, %s205_s29 }
  0x1a   : > { %p1285_p0 = scmp.ne.s32.totalorder %s205_s29, %s1284_s13  ;;  %p1293_p6 = scmp.lt.s32.totalorder %s1284_s13, %s1284_s13 }
  0x1c   : > { %p1287_p1 = pnand %p1285_p0, %p1273_p9  ;;  %p1294_p5 = por %p1293_p6, %p1292_p4 }
  0x1e   : > { %p1288_p2 = pneg %p1287_p1 }
  0x20   : > { %p1295_p3 = pnand %p1294_p5, %p1288_p2 }
  0x22   : > { %1298 = shalt.err (!%p1295_p3)
}
  0x23   : > { %s1376_s14 = smov 64   ;;  %s1377_s15 = smov 4  }
  0x24   : > { %1211 = dma.hbm_to_vmem [thread:$0]  (!%p1458_p7), %s1612_s3, 576, %s205_s29, [#allocation3], %s1376_s14, %s1376_s14, %s1377_s15  }
  0x25   : > { %s1378_s23 = smov [#allocation4]   ;;  %s1299_s8 = scalar_lea.hbm %s1613_s4, 16 }
  0x26   : > { %s218_s28 = sshll.u32 %s1378_s23, 4  ;;  %p1300_p3 = scmp.ne.s32.totalorder %s1613_s4, %s1299_s8  ;;  %s219_s28 = int_to_ptr.vmem [resolvable:$true] %s218_s28 }
  0x27   : > { %p1306_p10 = scmp.lt.u32.totalorder %s1299_s8, %s1613_s4 }
  0x28   : > { %p1302_p5 = pnand %p1300_p3, %p1273_p9 }
  0x2a   : > { %p1303_p8 = pneg %p1302_p5 }
  0x2c   : > { %p1308_p11 = pnand %p1306_p10, %p1303_p8 }
  0x2e   : > { %1311 = shalt.err (!%p1308_p11)
}
  0x2f   : > { %s1312_s29 = scalar_lea.vmem %s219_s28, 16  ;;  %s1319_s13 = scalar_lea.vmem %s219_s28, 32 }
  0x30   : > { %p1313_p12 = scmp.ne.s32.totalorder %s219_s28, %s1312_s29  ;;  %p1320_p1 = scmp.lt.s32.totalorder %s219_s28, %s219_s28 }
  0x31   : > { %p1321_p2 = scmp.lt.s32.totalorder %s1319_s13, %s1312_s29 }
  0x32   : > { %p1315_p13 = pnand %p1313_p12, %p1273_p9 }
  0x33   : > { %p1322_p4 = por %p1321_p2, %p1320_p1 }
  0x34   : > { %p1316_p0 = pneg %p1315_p13 }
  0x36   : > { %p1323_p6 = pnand %p1322_p4, %p1316_p0 }
  0x38   : > { %1326 = shalt.err (!%p1323_p6)
}
  0x39   : > { %1214 = dma.hbm_to_vmem [thread:$0]  (!%p1458_p7), %s1613_s4, 16, %s219_s28, [#allocation5]  }
  0x3a   : > { %p1621_p3 = scmp.ne.s32.totalorder %s1618_s26, 0 }
  0x3b   : > { %p1622_p5 = scmp.ne.s32.totalorder (!%p1621_p3), %s1619_s27, 0 }
  0x3c   : > { %271 = sbr.rel (%p1621_p3) target bundleno = 343 (0x157), region = 40 }
  0x43   : > { %1348 = dma.done.wait (%p1622_p5), [#allocation3], 576  }
  0x44   : > { %1350 = vsyncadd (%p1622_p5), [#allocation3], 4294966720 }
  0x45   : > { %1352 = dma.done.wait (%p1622_p5), [#allocation5], 16  }
  0x46   : > { %1354 = vsyncadd (%p1622_p5), [#allocation5], 4294967280  ;;  %p331_p7 = scmp.lt.s32.totalorder %s1361_s19, 1  ;;  %v1379_v0 = vmov 0.0   ;;  %p333_p9 = scmp.lt.s32.totalorder %s1357_s18, 17  ;;  %vm1380_vm0 = vmmov 0  }
  0x47   : > { %1142 = vmatprep.subr.bf16.mxu0 %v1379_v0  ;;  %1148 = vmatprep.subr.bf16.mxu1 %v1379_v0  ;;  %s340_s26 = sadd.s32 1, %s1357_s18  ;;  %vm409_vm1 = vcmask 1043456   ;;  %v383_v1 = vld [vmem:[#allocation2 + $0x4] sm:$0xf]  ;;  %v381_v2 = vld [vmem:[#allocation2] sm:$0xf] }
  0x48   : > { %1144 = vmatprep.mubr.msk.bf16.mxu0 %vm1380_vm0, %v1379_v0  ;;  %1150 = vmatprep.mubr.msk.bf16.mxu1 %vm1380_vm0, %v1379_v0  ;;  %s1634_s19 = smov (!%p331_p7, %s1361_s19), 1  ;;  %p343_p8 = scmp.lt.s32.totalorder %s340_s26, 17  ;;  %v411_v3 = vsel %vm409_vm1, %v383_v1, 0  ;;  %v457_v4 = vsel %vm409_vm1, %v381_v2, 0  ;;  %v556_v5 = vld [vmem:[#allocation2 + $0xc] sm:$0xf] }
  0x49   : > { %s334_s27 = scalar_select %p333_p9, %s1357_s18, 17  ;;  %1143 = vmatpush3.bf16.msra.mxu0 %v411_v3  ;;  %1149 = vmatpush3.bf16.msra.mxu1 %v457_v4  ;;  %vm405_vm2 = vcmask 64512   ;;  %v566_v8 = vsel %vm409_vm1, %v556_v5, 0  ;;  %v501_v14 = vld [vmem:[#allocation2 + $0x8] sm:$0xf]  ;;  %vm502_vm4 = vcmask 1046528  }
  0x4a   : > { %s1528_s30 = smul.u32 54, %s1634_s19  ;;  %s1636_s26 = smov (!%p343_p8, %s340_s26), 17  ;;  %1154 = vmatprep.subr.bf16.mxu0 %v1379_v0  ;;  %1160 = vmatprep.subr.bf16.mxu1 %v1379_v0  ;;  %vm392_vm3 = vsmask.f32 7424  ;;  %v677_v17 = vld [vmem:[#allocation2 + $0x14] sm:$0xf] }
  0x4b   : > { %s1196_s16 = smul.u32 3, %s334_s27  ;;  %s351_s28 = sadd.s32 2, %s1357_s18  ;;  %v510_v18 = vsel %vm409_vm1, %v501_v14, 0  ;;  %v685_v20 = vsel %vm409_vm1, %v677_v17, 0  ;;  %v612_v25 = vld [vmem:[#allocation2 + $0x10] sm:$0xf] }
  0x4c   : > { %s1198_s9 = smul.u32 3, %s1636_s26  ;;  %p354_p10 = scmp.lt.s32.totalorder %s351_s28, 17  ;;  %v787_v29 = vld [vmem:[#allocation2 + $0x1c] sm:$0xf]  ;;  %v631_v35 = vsel %vm409_vm1, %v612_v25, 0  ;;  %vm924_vm5 = vcmask 519168  }
  0x4d   : > { %s337_s17 = sadd.s32 %s1528_s30, %s1196_s16  ;;  %v806_v40 = vsel %vm409_vm1, %v787_v29, 0  ;;  %v731_v44 = vld [vmem:[#allocation2 + $0x18] sm:$0xf]  ;;  %v852_v50 = vld [vmem:[#allocation2 + $0x20] sm:$0xf]  ;;  %p364_p11 = scmp.lt.s32.totalorder %s1357_s18, 15 }
  0x4e   : > { %s1096_s23 = sshll.u32 %s337_s17, 2  ;;  %s347_s10 = sadd.s32 %s1198_s9, %s1528_s30  ;;  %v741_v48 = vsel %vm409_vm1, %v731_v44, 0  ;;  %v860_v51 = vsel %vm409_vm1, %v852_v50, 0 }
  0x4f   : > { %s339_s8 = scalar_lea.vmem %s1609_s0, %s1096_s23  ;;  %s1097_s11 = sshll.u32 %s347_s10, 2 }
  0x50   : > { %v1265_v6 = vld [vmem:[%s339_s8] sm:$0xff]   ;;  %v1266_v7 = vld [vmem:[%s339_s8 + $0x8] ss:$0 sps:$4 sm:$0x11]   ;;  %s349_s13 = scalar_lea.vmem %s1610_s1, %s1097_s11  ;;  %s1638_s28 = smov (!%p354_p10, %s351_s28), 17 }
  0x51   : > { %v394_v9 = vshrl.u32 %v1265_v6, 16  ;;  %v396_v10 = vshll.u32 %v1265_v6, 16  ;;  %v401_v11 = vshll.u32 %v1266_v7, 16  ;;  %1151 = vmatmul.mubr.msk.bf16.vlgmr.msra.gmra.mrb[0].mxu1 %vm405_vm2, %v1265_v6  ;;  %v1267_v15 = vld [vmem:[%s349_s13] sm:$0xff]   ;;  %s1199_s14 = smul.u32 3, %s1638_s28  ;;  %v503_v22 = vrot.slane %v1265_v6, 1 }
  0x52   : > { %1161 = vmatpush3.bf16.msra.mxu1 %v566_v8  ;;  %1162 = vmatprep.mubr.msk.bf16.mxu1 %vm1380_vm0, %v1379_v0  ;;  %v618_v21 = vshll.u32 %v1267_v15, 16  ;;  %v504_v23 = vrot.slane %v1266_v7, 1  ;;  %v1268_v24 = vld [vmem:[%s349_s13 + $0x8] ss:$0 sps:$4 sm:$0x11]   ;;  %v616_v26 = vshrl.u32 %v1267_v15, 16 }
  0x53   : > { %v398_v12 = vrot.slane %v396_v10, 1  ;;  %v403_v13 = vrot.slane %v401_v11, 1  ;;  %1172 = vmatprep.subr.bf16.mxu1 %v1379_v0  ;;  %s358_s15 = sadd.s32 %s1199_s14, %s1528_s30  ;;  %v678_v27 = vrot.slane %v1267_v15, 1  ;;  %v679_v28 = vrot.slane %v1268_v24, 1  ;;  %s1640_s18 = smov (!%p364_p11, %s1357_s18), 15 }
  0x54   : > { %s1098_s26 = sshll.u32 %s358_s15, 2  ;;  %v620_v30 = vrot.slane %v618_v21, 1  ;;  %v505_v32 = vsel %vm502_vm4, %v503_v22, %v504_v23  ;;  %v623_v33 = vshll.u32 %v1268_v24, 16  ;;  %s1099_s30 = sshll.u32 %s1640_s18, 1 }
  0x55   : > { %v399_v16 = vor.u32 %v398_v12, %v394_v9  ;;  %s360_s17 = scalar_lea.vmem %s1611_s2, %s1098_s26  ;;  %v680_v37 = vsel %vm502_vm4, %v678_v27, %v679_v28  ;;  %s1100_s23 = sshll.u32 %s1634_s19, 5 }
  0x56   : > { %v1269_v31 = vld [vmem:[%s360_s17] sm:$0xff]   ;;  %v1270_v34 = vld [vmem:[%s360_s17 + $0x8] ss:$0 sps:$4 sm:$0x11]   ;;  %v621_v42 = vor.u32 %v620_v30, %v616_v26  ;;  %v625_v43 = vrot.slane %v623_v33, 1  ;;  %s368_s28 = sadd.s32 %s1100_s23, %s1099_s30 }
  0x57   : > { %v404_v19 = vsel %vm392_vm3, %v399_v16, %v403_v13  ;;  %v793_v36 = vshll.u32 %v1269_v31, 16  ;;  %v791_v38 = vshrl.u32 %v1269_v31, 16  ;;  %v798_v39 = vshll.u32 %v1270_v34, 16  ;;  %s1101_s6 = sshll.u32 %s368_s28, 2 }
  0x58   : > { %1145 = vmatmul.mubr.msk.bf16.vlgmr.msra.gmra.mrb[0].mxu0 %vm405_vm2, %v404_v19  ;;  %v626_v47 = vsel %vm392_vm3, %v621_v42, %v625_v43  ;;  %v853_v52 = vrot.slane %v1269_v31, 1  ;;  %v854_v53 = vrot.slane %v1270_v34, 1  ;;  %s370_s9 = scalar_lea.vmem %s1614_s5, %s1101_s6 }
  0x59   : > { %1155 = vmatpush3.bf16.msra.mxu0 %v510_v18  ;;  %1156 = vmatprep.mubr.msk.bf16.mxu0 %vm1380_vm0, %v1379_v0  ;;  %v795_v41 = vrot.slane %v793_v36, 1  ;;  %v800_v46 = vrot.slane %v798_v39, 1 }
  0x5a   : > { %1166 = vmatprep.subr.bf16.mxu0 %v1379_v0  ;;  %1163 = vmatmul.mubr.msk.bf16.vlgmr.msra.gmra.mrb[4].mxu1 %vm405_vm2, %v1267_v15  ;;  %v855_v54 = vsel %vm502_vm4, %v853_v52, %v854_v53 }
  0x5b   : > { %1173 = vmatpush3.bf16.msra.mxu1 %v685_v20  ;;  %1174 = vmatprep.mubr.msk.bf16.mxu1 %vm1380_vm0, %v1379_v0  ;;  %v796_v45 = vor.u32 %v795_v41, %v791_v38  ;;  %v1117_v38 = vld [vmem:[#allocation4] ss:$0 sm:$0xff] }
  0x5c   : > { %1184 = vmatprep.subr.bf16.mxu1 %v1379_v0 }
  0x5d   : > { %v801_v49 = vsel %vm392_vm3, %v796_v45, %v800_v46 }
  0x60   : > { %1157 = vmatmul.mubr.msk.bf16.vlgmr.msra.gmra.mrb[4].mxu0 %vm405_vm2, %v505_v32 }
  0x61   : > { %1167 = vmatpush3.bf16.msra.mxu0 %v631_v35  ;;  %1168 = vmatprep.mubr.msk.bf16.mxu0 %vm1380_vm0, %v1379_v0 }
  0x62   : > { %1178 = vmatprep.subr.bf16.mxu0 %v1379_v0  ;;  %1175 = vmatmul.mubr.msk.bf16.vlgmr.msra.gmra.mrb[8].mxu1 %vm405_vm2, %v680_v37 }
  0x63   : > { %1185 = vmatpush3.bf16.msra.mxu1 %v806_v40  ;;  %1186 = vmatprep.mubr.msk.bf16.mxu1 %vm1380_vm0, %v1379_v0 }
  0x68   : > { %1169 = vmatmul.mubr.msk.bf16.vlgmr.msra.gmra.mrb[8].mxu0 %vm405_vm2, %v626_v47 }
  0x69   : > { %1179 = vmatpush3.bf16.msra.mxu0 %v741_v48  ;;  %1180 = vmatprep.mubr.msk.bf16.mxu0 %vm1380_vm0, %v1379_v0 }
  0x6a   : > { %1190 = vmatprep.subr.bf16.mxu0 %v1379_v0  ;;  %1187 = vmatmul.mubr.msk.bf16.vlgmr.msra.gmra.mrb[12].mxu1 %vm405_vm2, %v801_v49 }
  0x70   : > { %1181 = vmatmul.mubr.msk.bf16.vlgmr.msra.gmra.mrb[12].mxu0 %vm405_vm2, %v1269_v31 }
  0x71   : > { %1191 = vmatpush3.bf16.msra.mxu0 %v860_v51  ;;  %1192 = vmatprep.mubr.msk.bf16.mxu0 %vm1380_vm0, %v1379_v0 }
  0x78   : > { %1193 = vmatmul.mubr.msk.bf16.vlgmr.msra.gmra.mrb[16].mxu0 %vm405_vm2, %v855_v54 }
 0x124   : > { %v493_v55 = vpop.f32.mrb[0].mxu1 }
 0x125   : > { %v1152_v56 = vpop.f32.mrb[1].mxu1 }
 0x126   : > { %v496_v57 = vpop.f32.mrb[2].mxu1 }
 0x127   : > { %v1153_v58 = vpop.f32.mrb[3].mxu1 }
 0x12b   : > { %v447_v59 = vpop.f32.mrb[0].mxu0 }
 0x12c   : > { %v494_v60 = vadd.f32 %v493_v55, %v447_v59  ;;  %v1146_v61 = vpop.f32.mrb[1].mxu0 }
 0x12d   : > { %v450_v62 = vpop.f32.mrb[2].mxu0  ;;  %v602_v63 = vpop.f32.mrb[4].mxu1 }
 0x12e   : > { %v497_v1 = vadd.f32 %v496_v57, %v450_v62  ;;  %v1147_v2 = vpop.f32.mrb[3].mxu0  ;;  %v1164_v3 = vpop.f32.mrb[5].mxu1 }
 0x12f   : > { %v605_v4 = vpop.f32.mrb[6].mxu1 }
 0x130   : > { %v1165_v0 = vpop.f32.mrb[7].mxu1 }
 0x133   : > { %v546_v5 = vpop.f32.mrb[4].mxu0 }
 0x134   : > { %v553_v6 = vadd.f32 %v546_v5, %v494_v60  ;;  %v1158_v7 = vpop.f32.mrb[5].mxu0 }
 0x135   : > { %v549_v8 = vpop.f32.mrb[6].mxu0  ;;  %v721_v9 = vpop.f32.mrb[8].mxu1 }
 0x136   : > { %v554_v10 = vadd.f32 %v549_v8, %v497_v1  ;;  %v609_v11 = vadd.f32 %v602_v63, %v553_v6  ;;  %v1159_v12 = vpop.f32.mrb[7].mxu0  ;;  %v1176_v13 = vpop.f32.mrb[9].mxu1 }
 0x137   : > { %v724_v14 = vpop.f32.mrb[10].mxu1 }
 0x138   : > { %v610_v15 = vadd.f32 %v605_v4, %v554_v10  ;;  %v1177_v16 = vpop.f32.mrb[11].mxu1 }
 0x13b   : > { %v667_v17 = vpop.f32.mrb[8].mxu0 }
 0x13c   : > { %v674_v18 = vadd.f32 %v667_v17, %v609_v11  ;;  %v1170_v19 = vpop.f32.mrb[9].mxu0 }
 0x13d   : > { %v670_v20 = vpop.f32.mrb[10].mxu0  ;;  %v842_v21 = vpop.f32.mrb[12].mxu1 }
 0x13e   : > { %v675_v22 = vadd.f32 %v670_v20, %v610_v15  ;;  %v728_v23 = vadd.f32 %v721_v9, %v674_v18  ;;  %v1171_v24 = vpop.f32.mrb[11].mxu0  ;;  %v1188_v25 = vpop.f32.mrb[13].mxu1 }
 0x13f   : > { %v845_v26 = vpop.f32.mrb[14].mxu1 }
 0x140   : > { %v729_v27 = vadd.f32 %v724_v14, %v675_v22  ;;  %v1189_v28 = vpop.f32.mrb[15].mxu1 }
 0x143   : > { %v777_v29 = vpop.f32.mrb[12].mxu0 }
 0x144   : > { %v784_v30 = vadd.f32 %v777_v29, %v728_v23  ;;  %v1182_v31 = vpop.f32.mrb[13].mxu0 }
 0x145   : > { %v780_v32 = vpop.f32.mrb[14].mxu0 }
 0x146   : > { %v785_v33 = vadd.f32 %v780_v32, %v729_v27  ;;  %v849_v34 = vadd.f32 %v842_v21, %v784_v30  ;;  %v1183_v35 = vpop.f32.mrb[15].mxu0 }
 0x148   : > { %v850_v36 = vadd.f32 %v845_v26, %v785_v33 }
 0x14b   : > { %v896_v37 = vpop.f32.mrb[16].mxu0 }
 0x14c   : > { %v903_v39 = vadd.f32 %v896_v37, %v849_v34  ;;  %v1194_v40 = vpop.f32.mrb[17].mxu0 }
 0x14d   : > { %v899_v41 = vpop.f32.mrb[18].mxu0 }
 0x14e   : > { %v912_v42 = vadd.f32 %v1117_v38, %v903_v39  ;;  %v904_v43 = vadd.f32 %v899_v41, %v850_v36  ;;  %v1195_v44 = vpop.f32.mrb[19].mxu0 }
 0x150   : > { %v914_v45 = vmax.f32 %v912_v42, 0.0  ;;  %v913_v46 = vadd.f32 %v1117_v38, %v904_v43 }
 0x152   : > { %v1122_v47 = vpack.c.bf16 %v914_v45, %v914_v45  ;;  %v915_v48 = vmax.f32 %v913_v46, 0.0 }
 0x154   : > { %925 = vst.msk [vmem:[%s370_s9] sm:$0xf] %vm924_vm5, %v1122_v47  ;;  %v1123_v49 = vpack.c.bf16 %v915_v48, %v915_v48 }
 0x156   : > { %926 = vst.msk [vmem:[%s370_s9 + $0x4] sm:$0xf] %vm924_vm5, %v1123_v49 }
 0x157 PF: > { %s17_s22 = sadd.s32 1, %s1373_s22   ;;  %s1623_s18 = smov %s1365_s20 }
 0x158   : > { %p14_p12 = scmp.ge.s32.totalorder %s17_s22, 34   ;;  %s1624_s19 = smov %s1369_s21 }
 0x159   : > { %s1625_s20 = smov %s1628_s24  ;;  %s1626_s21 = smov %s1632_s25 }
 0x15a   :  { %16 = sbr.rel (!%p14_p12) target bundleno = 4 (0x4), region = 93 }
 0x161   :  { %956 = vsyncpa [#allocation3], 1 }
 0x162   :  { %958 = vsyncpa [#allocation3 + $0x1], 1 }
 0x163   :  { %959 = vsyncpa [#allocation5], 1 }

// kernel: _lambda_.10
= control target key start
LH: loop header
LB: loop body
LE: loop exit
PB: predicated region body
PF: predicated region fallthrough
CT: control target
= control target key end

     0   :  { %s1733_s18 = smov 0   ;;  %s1735_s19 = smov 0   ;;  %s1999_s0 = inlined_call_operand.vmem [shape: bf16[2,18,18,64], index: 0, kind: input, shape index: {}, may-alias: {0,1,2}]   ;;  %s2000_s1 = inlined_call_operand.vmem [shape: bf16[2,18,18,64], index: 1, kind: input, shape index: {}, may-alias: {0,1,2}]   ;;  %s2001_s2 = inlined_call_operand.vmem [shape: bf16[2,18,18,64], index: 2, kind: input, shape index: {}, may-alias: {0,1,2}]   ;;  %s2002_s3 = inlined_call_operand.vmem [shape: bf16[9,64,64], index: 3, kind: input, shape index: {}]   ;;  %s2003_s4 = inlined_call_operand.vmem [shape: f32[1,64], index: 4, kind: input, shape index: {}]   ;;  %s2004_s5 = inlined_call_operand.vmem [shape: bf16[2,16,16,64], index: 5, kind: output, shape index: {}]  }
   0x1   :  { %s1737_s20 = smov 0   ;;  %s1739_s21 = smov 0  }
   0x2   :  { %s1741_s22 = smov 0  }
   0x3 LB: > { %s24_s23 = sadd.s32 1, %s1691_s20  ;;  %s27_s24 = sadd.s32 1, %s1695_s21  ;;  %s1699_s22 = sphi %s1741_s22, %s15_s22   ;;  %s1695_s21 = sphi %s1739_s21, %s2008_s21   ;;  %s1691_s20 = sphi %s1737_s20, %s2007_s20   ;;  %s1687_s19 = sphi %s1735_s19, %s2006_s19   ;;  %s1683_s18 = sphi %s1733_s18, %s2005_s18  }
   0x4   : > { %p25_p0 = scmp.ge.s32.totalorder %s24_s23, 16  ;;  %p1291_p1 = scmp.ge.s32.totalorder %s1699_s22, 1 }
   0x5   : > { %p247_p2 = scmp.lt.s32.totalorder %s1699_s22, 33 }
   0x6   : > { %s2010_s23 = smov (%p25_p0, %s24_s23), 0  ;;  %s2012_s24 = smov (!%p25_p0, %s27_s24), %s1695_s21 }
   0x7   : > { %p248_p3 = pnand %p1291_p1, %p247_p2  ;;  %p29_p4 = scmp.ge.s32.totalorder %s2012_s24, 2 }
   0x8   : > { %v1619_v0 = vld [vmem:[%s2002_s3 + $0x20] sm:$0xff] (!%p248_p3)   ;;  %v1701_v1 = vmov (!%p248_p3), 0.0   ;;  %v1621_v3 = vld [vmem:[%s2002_s3 + $0x28] sm:$0xff] (!%p248_p3)   ;;  %vm1702_vm0 = vmmov (!%p248_p3), 0   ;;  %p303_p5 = scmp.lt.s32.totalorder (!%p248_p3), %s1687_s19, 1  ;;  %p305_p6 = scmp.lt.s32.totalorder (!%p248_p3), %s1683_s18, 17 }
   0x9   : > { %s2014_s24 = smov (%p29_p4, %s2012_s24), 0  ;;  %251 = sbr.rel (%p248_p3) target bundleno = 319 (0x13f), region = 40 }
   0xa   : > { %1465 = vmatprep.subr.bf16.mxu0 (!%p248_p3), %v1701_v1  ;;  %1477 = vmatprep.subr.bf16.mxu1 (!%p248_p3), %v1701_v1  ;;  %v1620_v2 = vld [vmem:[%s2002_s3] sm:$0xff] (!%p248_p3)   ;;  %v1622_v4 = vld [vmem:[%s2002_s3 + $0x8] sm:$0xff] (!%p248_p3)   ;;  %v1623_v5 = vld [vmem:[%s2002_s3 + $0x30] sm:$0xff] (!%p248_p3)   ;;  %s312_s6 = sadd.s32 (!%p248_p3), 1, %s1683_s18  ;;  %vm415_vm1 = vcmask (!%p248_p3), 523264   ;;  %s323_s17 = sadd.s32 (!%p248_p3), 2, %s1683_s18 }
   0xb   : > { %1466 = vmatpush3.bf16.msra.mxu0 (!%p248_p3), %v1619_v0  ;;  %1473 = vmatprep.mubr.msk.bf16.mxu0 (!%p248_p3), %vm1702_vm0, %v1701_v1  ;;  %v1624_v6 = vld [vmem:[%s2002_s3 + $0x10] sm:$0xff] (!%p248_p3)   ;;  %v1625_v7 = vld [vmem:[%s2002_s3 + $0x38] sm:$0xff] (!%p248_p3)   ;;  %v1630_v11 = vld [vmem:[%s2002_s3 + $0x60] sm:$0xff] (!%p248_p3)   ;;  %p315_p7 = scmp.lt.s32.totalorder (!%p248_p3), %s312_s6, 17  ;;  %vm378_vm2 = vsmask.f32 (!%p248_p3), 7424 }
   0xc   : > { %1478 = vmatpush3.bf16.msra.mxu1 (!%p248_p3), %v1620_v2  ;;  %1467 = vmatprep.subr.bf16.mxu0 (!%p248_p3), %v1701_v1  ;;  %v1626_v8 = vld [vmem:[%s2002_s3 + $0x18] sm:$0xff] (!%p248_p3)   ;;  %v1629_v17 = vld [vmem:[%s2002_s3 + $0x40] sm:$0xff] (!%p248_p3)   ;;  %v1632_v19 = vld [vmem:[%s2002_s3 + $0x68] sm:$0xff] (!%p248_p3)   ;;  %p326_p8 = scmp.lt.s32.totalorder (!%p248_p3), %s323_s17, 17  ;;  %vm536_vm3 = vcmask (!%p248_p3), 1046528   ;;  %p336_p9 = scmp.lt.s32.totalorder (!%p248_p3), %s1683_s18, 15 }
   0xd   : > { %1479 = vmatprep.subr.bf16.mxu1 (!%p248_p3), %v1701_v1  ;;  %1485 = vmatprep.mubr.msk.bf16.mxu1 (!%p248_p3), %vm1702_vm0, %v1701_v1  ;;  %v1631_v21 = vld [vmem:[%s2002_s3 + $0x48] sm:$0xff] (!%p248_p3)   ;;  %v1634_v22 = vld [vmem:[%s2002_s3 + $0x70] sm:$0xff] (!%p248_p3)   ;;  %v1636_v24 = vld [vmem:[%s2002_s3 + $0x78] sm:$0xff] (!%p248_p3)   ;;  %vm1147_vm4 = vcmask (!%p248_p3), 519168  }
   0xe   : > { %v1633_v23 = vld [vmem:[%s2002_s3 + $0x50] sm:$0xff] (!%p248_p3)   ;;  %v1635_v25 = vld [vmem:[%s2002_s3 + $0x58] sm:$0xff] (!%p248_p3)   ;;  %v1639_v29 = vld [vmem:[%s2002_s3 + $0xa0] sm:$0xff] (!%p248_p3)  }
   0xf   : > { %1468 = vmatpush3.bf16.msra.mxu0 (!%p248_p3), %v1621_v3  ;;  %v1637_v30 = vld [vmem:[%s2002_s3 + $0x80] sm:$0xff] (!%p248_p3)   ;;  %v1641_v32 = vld [vmem:[%s2002_s3 + $0xa8] sm:$0xff] (!%p248_p3)   ;;  %v1643_v34 = vld [vmem:[%s2002_s3 + $0xb0] sm:$0xff] (!%p248_p3)  }
  0x10   : > { %s2016_s19 = smov (!%p303_p5, %s1687_s19), 1  ;;  %1480 = vmatpush3.bf16.msra.mxu1 %v1622_v4  ;;  %1469 = vmatprep.subr.bf16.mxu0 %v1701_v1  ;;  %s2018_s6 = smov (!%p315_p7, %s312_s6), 17  ;;  %v1640_v33 = vld [vmem:[%s2002_s3 + $0x88] sm:$0xff]   ;;  %v1642_v38 = vld [vmem:[%s2002_s3 + $0x90] sm:$0xff]   ;;  %v1645_v39 = vld [vmem:[%s2002_s3 + $0xb8] sm:$0xff]  }
  0x11   : > { %s306_s8 = scalar_select %p305_p6, %s1683_s18, 17  ;;  %1481 = vmatprep.subr.bf16.mxu1 %v1701_v1  ;;  %v1644_v44 = vld [vmem:[%s2002_s3 + $0x98] sm:$0xff]   ;;  %v1648_v48 = vld [vmem:[%s2002_s3 + $0xe0] sm:$0xff]   ;;  %v1650_v52 = vld [vmem:[%s2002_s3 + $0xe8] sm:$0xff]  }
  0x12   : > { %s1797_s11 = smul.u32 54, %s2016_s19  ;;  %s2020_s17 = smov (!%p326_p8, %s323_s17), 17  ;;  %v1647_v51 = vld [vmem:[%s2002_s3 + $0xc0] sm:$0xff]   ;;  %v1649_v55 = vld [vmem:[%s2002_s3 + $0xc8] sm:$0xff]   ;;  %v1652_v56 = vld [vmem:[%s2002_s3 + $0xf0] sm:$0xff]  }
  0x13   : > { %s1573_s14 = smul.u32 3, %s306_s8  ;;  %1470 = vmatpush3.bf16.msra.mxu0 %v1623_v5  ;;  %v1651_v60 = vld [vmem:[%s2002_s3 + $0xd0] sm:$0xff]   ;;  %v1654_v61 = vld [vmem:[%s2002_s3 + $0xf8] sm:$0xff]   ;;  %v1656_v3 = vld [vmem:[%s2002_s3 + $0x100] sm:$0xff]   ;;  %s2022_s18 = smov (!%p336_p9, %s1683_s18), 15 }
  0x14   : > { %1482 = vmatpush3.bf16.msra.mxu1 %v1624_v6  ;;  %1471 = vmatprep.subr.bf16.mxu0 %v1701_v1  ;;  %s1576_s16 = smul.u32 3, %s2020_s17  ;;  %v1653_v0 = vld [vmem:[%s2002_s3 + $0xd8] sm:$0xff]   ;;  %v1658_v4 = vld [vmem:[%s2002_s3 + $0x108] sm:$0xff]   ;;  %v1659_v5 = vld [vmem:[%s2002_s3 + $0x110] sm:$0xff]   ;;  %s1295_s7 = sshll.u32 %s2022_s18, 1 }
  0x15   : > { %s309_s15 = sadd.s32 %s1797_s11, %s1573_s14  ;;  %1483 = vmatprep.subr.bf16.mxu1 %v1701_v1  ;;  %s1575_s14 = smul.u32 3, %s2018_s6  ;;  %v1660_v6 = vld [vmem:[%s2002_s3 + $0x118] sm:$0xff]  }
  0x16   : > { %s1292_s25 = sshll.u32 %s309_s15, 2  ;;  %s330_s29 = sadd.s32 %s1576_s16, %s1797_s11 }
  0x17   : > { %s311_s30 = scalar_lea.vmem %s1999_s0, %s1292_s25  ;;  %1472 = vmatpush3.bf16.msra.mxu0 %v1625_v7  ;;  %s319_s27 = sadd.s32 %s1575_s14, %s1797_s11 }
  0x18   : > { %v1627_v9 = vld [vmem:[%s311_s30] sm:$0xff]   ;;  %v1628_v10 = vld [vmem:[%s311_s30 + $0x8] ss:$0 sps:$4 sm:$0x11]   ;;  %1484 = vmatpush3.bf16.msra.mxu1 %v1626_v8  ;;  %1489 = vmatprep.subr.bf16.mxu0 %v1701_v1  ;;  %s1293_s28 = sshll.u32 %s319_s27, 2  ;;  %s1294_s17 = sshll.u32 %s330_s29, 2 }
  0x19   : > { %v380_v12 = vshrl.u32 %v1627_v9, 16  ;;  %v382_v13 = vshll.u32 %v1627_v9, 16  ;;  %v387_v14 = vshll.u32 %v1628_v10, 16  ;;  %1501 = vmatprep.subr.bf16.mxu1 %v1701_v1  ;;  %s1849_s6 = scalar_lea.vmem %s2000_s1, %s1293_s28  ;;  %v537_v26 = vrot.slane %v1627_v9, 1  ;;  %s1887_s10 = scalar_lea.vmem %s2001_s2, %s1294_s17 }
  0x1a   : > { %v538_v27 = vrot.slane %v1628_v10, 1  ;;  %v1638_v28 = vld [vmem:[%s1849_s6] sm:$0xff]   ;;  %v1646_v35 = vld [vmem:[%s1849_s6 + $0x8] ss:$0 sps:$4 sm:$0x11]   ;;  %s1296_s8 = sshll.u32 %s2016_s19, 5 }
  0x1b   : > { %v384_v15 = vrot.slane %v382_v13, 1  ;;  %v389_v16 = vrot.slane %v387_v14, 1  ;;  %1486 = vmatmul.mubr.msk.bf16.vlgmr.msra.gmra.mrb[0].mxu1 %vm415_vm1, %v1627_v9  ;;  %v708_v36 = vshll.u32 %v1638_v28, 16  ;;  %v706_v37 = vshrl.u32 %v1638_v28, 16  ;;  %v1655_v49 = vld [vmem:[%s1887_s10] sm:$0xff]   ;;  %s340_s9 = sadd.s32 %s1296_s8, %s1295_s7 }
  0x1c   : > { %1502 = vmatpush3.bf16.msra.mxu1 %v1630_v11  ;;  %1509 = vmatprep.mubr.msk.bf16.mxu1 %vm1702_vm0, %v1701_v1  ;;  %v539_v31 = vsel %vm536_vm3, %v537_v26, %v538_v27  ;;  %v713_v41 = vshll.u32 %v1646_v35, 16  ;;  %v796_v42 = vrot.slane %v1638_v28, 1  ;;  %v797_v43 = vrot.slane %v1646_v35, 1  ;;  %v1657_v53 = vld [vmem:[%s1887_s10 + $0x8] ss:$0 sps:$4 sm:$0x11]  }
  0x1d   : > { %v385_v18 = vor.u32 %v384_v15, %v380_v12  ;;  %1503 = vmatprep.subr.bf16.mxu1 %v1701_v1  ;;  %v710_v40 = vrot.slane %v708_v36, 1  ;;  %v967_v54 = vshll.u32 %v1655_v49, 16  ;;  %v965_v57 = vshrl.u32 %v1655_v49, 16  ;;  %s1297_s12 = sshll.u32 %s340_s9, 2 }
  0x1e   : > { %v715_v46 = vrot.slane %v713_v41, 1  ;;  %v798_v47 = vsel %vm536_vm3, %v796_v42, %v797_v43  ;;  %v972_v59 = vshll.u32 %v1657_v53, 16  ;;  %v1055_v7 = vrot.slane %v1655_v49, 1  ;;  %s342_s18 = scalar_lea.vmem %s2004_s5, %s1297_s12 }
  0x1f   : > { %v390_v20 = vsel %vm378_vm2, %v385_v18, %v389_v16  ;;  %v711_v45 = vor.u32 %v710_v40, %v706_v37  ;;  %v969_v58 = vrot.slane %v967_v54, 1  ;;  %v1056_v8 = vrot.slane %v1657_v53, 1 }
  0x20   : > { %1474 = vmatmul.mubr.msk.bf16.vlgmr.msra.gmra.mrb[0].mxu0 %vm415_vm1, %v390_v20  ;;  %1504 = vmatpush3.bf16.msra.mxu1 %v1632_v19  ;;  %v974_v63 = vrot.slane %v972_v59, 1 }
  0x21   : > { %1490 = vmatpush3.bf16.msra.mxu0 %v1629_v17  ;;  %1505 = vmatprep.subr.bf16.mxu1 %v1701_v1  ;;  %v716_v50 = vsel %vm378_vm2, %v711_v45, %v715_v46  ;;  %v970_v62 = vor.u32 %v969_v58, %v965_v57  ;;  %v1057_v9 = vsel %vm536_vm3, %v1055_v7, %v1056_v8 }
  0x22   : > { %1491 = vmatprep.subr.bf16.mxu0 %v1701_v1  ;;  %1497 = vmatprep.mubr.msk.bf16.mxu0 %vm1702_vm0, %v1701_v1 }
  0x23   : > { %v975_v2 = vsel %vm378_vm2, %v970_v62, %v974_v63 }
  0x24   : > { %1506 = vmatpush3.bf16.msra.mxu1 %v1634_v22 }
  0x25   : > { %1492 = vmatpush3.bf16.msra.mxu0 %v1631_v21  ;;  %1507 = vmatprep.subr.bf16.mxu1 %v1701_v1 }
  0x26   : > { %1493 = vmatprep.subr.bf16.mxu0 %v1701_v1 }
  0x28   : > { %1508 = vmatpush3.bf16.msra.mxu1 %v1636_v24 }
  0x29   : > { %1494 = vmatpush3.bf16.msra.mxu0 %v1633_v23  ;;  %1525 = vmatprep.subr.bf16.mxu1 %v1701_v1 }
  0x2a   : > { %1495 = vmatprep.subr.bf16.mxu0 %v1701_v1 }
  0x2b   : > { %1510 = vmatmul.mubr.msk.bf16.vlgmr.msra.gmra.mrb[4].mxu1 %vm415_vm1, %v1638_v28 }
  0x2c   : > { %1526 = vmatpush3.bf16.msra.mxu1 %v1639_v29  ;;  %1533 = vmatprep.mubr.msk.bf16.mxu1 %vm1702_vm0, %v1701_v1 }
  0x2d   : > { %1496 = vmatpush3.bf16.msra.mxu0 %v1635_v25  ;;  %1527 = vmatprep.subr.bf16.mxu1 %v1701_v1 }
  0x2e   : > { %1513 = vmatprep.subr.bf16.mxu0 %v1701_v1 }
  0x30   : > { %1498 = vmatmul.mubr.msk.bf16.vlgmr.msra.gmra.mrb[4].mxu0 %vm415_vm1, %v539_v31  ;;  %1528 = vmatpush3.bf16.msra.mxu1 %v1641_v32 }
  0x31   : > { %1514 = vmatpush3.bf16.msra.mxu0 %v1637_v30  ;;  %1529 = vmatprep.subr.bf16.mxu1 %v1701_v1 }
  0x32   : > { %1515 = vmatprep.subr.bf16.mxu0 %v1701_v1  ;;  %1521 = vmatprep.mubr.msk.bf16.mxu0 %vm1702_vm0, %v1701_v1 }
  0x34   : > { %1530 = vmatpush3.bf16.msra.mxu1 %v1643_v34 }
  0x35   : > { %1516 = vmatpush3.bf16.msra.mxu0 %v1640_v33  ;;  %1531 = vmatprep.subr.bf16.mxu1 %v1701_v1 }
  0x36   : > { %1517 = vmatprep.subr.bf16.mxu0 %v1701_v1 }
  0x38   : > { %1532 = vmatpush3.bf16.msra.mxu1 %v1645_v39 }
  0x39   : > { %1518 = vmatpush3.bf16.msra.mxu0 %v1642_v38  ;;  %1549 = vmatprep.subr.bf16.mxu1 %v1701_v1 }
  0x3a   : > { %1519 = vmatprep.subr.bf16.mxu0 %v1701_v1 }
  0x3b   : > { %1534 = vmatmul.mubr.msk.bf16.vlgmr.msra.gmra.mrb[8].mxu1 %vm415_vm1, %v798_v47 }
  0x3c   : > { %1550 = vmatpush3.bf16.msra.mxu1 %v1648_v48  ;;  %1557 = vmatprep.mubr.msk.bf16.mxu1 %vm1702_vm0, %v1701_v1 }
  0x3d   : > { %1520 = vmatpush3.bf16.msra.mxu0 %v1644_v44  ;;  %1551 = vmatprep.subr.bf16.mxu1 %v1701_v1 }
  0x3e   : > { %1537 = vmatprep.subr.bf16.mxu0 %v1701_v1 }
  0x40   : > { %1522 = vmatmul.mubr.msk.bf16.vlgmr.msra.gmra.mrb[8].mxu0 %vm415_vm1, %v716_v50  ;;  %1552 = vmatpush3.bf16.msra.mxu1 %v1650_v52 }
  0x41   : > { %1538 = vmatpush3.bf16.msra.mxu0 %v1647_v51  ;;  %1553 = vmatprep.subr.bf16.mxu1 %v1701_v1 }
  0x42   : > { %1539 = vmatprep.subr.bf16.mxu0 %v1701_v1  ;;  %1545 = vmatprep.mubr.msk.bf16.mxu0 %vm1702_vm0, %v1701_v1 }
  0x44   : > { %1554 = vmatpush3.bf16.msra.mxu1 %v1652_v56  ;;  %v1413_v56 = vld [vmem:[%s2003_s4] ss:$0 sm:$0xff] }
  0x45   : > { %1540 = vmatpush3.bf16.msra.mxu0 %v1649_v55  ;;  %1555 = vmatprep.subr.bf16.mxu1 %v1701_v1 }
  0x46   : > { %1541 = vmatprep.subr.bf16.mxu0 %v1701_v1 }
  0x48   : > { %1556 = vmatpush3.bf16.msra.mxu1 %v1654_v61 }
  0x49   : > { %1542 = vmatpush3.bf16.msra.mxu0 %v1651_v60 }
  0x4a   : > { %1543 = vmatprep.subr.bf16.mxu0 %v1701_v1 }
  0x4b   : > { %1558 = vmatmul.mubr.msk.bf16.vlgmr.msra.gmra.mrb[12].mxu1 %vm415_vm1, %v975_v2 }
  0x4d   : > { %1544 = vmatpush3.bf16.msra.mxu0 %v1653_v0 }
  0x4e   : > { %1561 = vmatprep.subr.bf16.mxu0 %v1701_v1 }
  0x50   : > { %1546 = vmatmul.mubr.msk.bf16.vlgmr.msra.gmra.mrb[12].mxu0 %vm415_vm1, %v1655_v49 }
  0x51   : > { %1562 = vmatpush3.bf16.msra.mxu0 %v1656_v3  ;;  %1569 = vmatprep.mubr.msk.bf16.mxu0 %vm1702_vm0, %v1701_v1 }
  0x52   : > { %1563 = vmatprep.subr.bf16.mxu0 %v1701_v1 }
  0x55   : > { %1564 = vmatpush3.bf16.msra.mxu0 %v1658_v4 }
  0x56   : > { %1565 = vmatprep.subr.bf16.mxu0 %v1701_v1 }
  0x59   : > { %1566 = vmatpush3.bf16.msra.mxu0 %v1659_v5 }
  0x5a   : > { %1567 = vmatprep.subr.bf16.mxu0 %v1701_v1 }
  0x5d   : > { %1568 = vmatpush3.bf16.msra.mxu0 %v1660_v6 }
  0x60   : > { %1570 = vmatmul.mubr.msk.bf16.vlgmr.msra.gmra.mrb[16].mxu0 %vm415_vm1, %v1057_v9 }
  0xee   : > { %v520_v10 = vpop.f32.mrb[0].mxu1 }
  0xef   : > { %v1487_v11 = vpop.f32.mrb[1].mxu1 }
  0xf0   : > { %v523_v12 = vpop.f32.mrb[2].mxu1 }
  0xf1   : > { %v1488_v13 = vpop.f32.mrb[3].mxu1 }
  0xf3   : > { %v453_v14 = vpop.f32.mrb[0].mxu0 }
  0xf4   : > { %v521_v15 = vadd.f32 %v520_v10, %v453_v14  ;;  %v1475_v16 = vpop.f32.mrb[1].mxu0 }
  0xf5   : > { %v456_v17 = vpop.f32.mrb[2].mxu0 }
  0xf6   : > { %v524_v18 = vadd.f32 %v523_v12, %v456_v17  ;;  %v1476_v19 = vpop.f32.mrb[3].mxu0 }
  0xfe   : > { %v685_v20 = vpop.f32.mrb[4].mxu1 }
  0xff   : > { %v1511_v21 = vpop.f32.mrb[5].mxu1 }
 0x100   : > { %v688_v22 = vpop.f32.mrb[6].mxu1 }
 0x101   : > { %v1512_v23 = vpop.f32.mrb[7].mxu1 }
 0x103   : > { %v601_v1 = vpop.f32.mrb[4].mxu0 }
 0x104   : > { %v608_v24 = vadd.f32 %v601_v1, %v521_v15  ;;  %v1499_v25 = vpop.f32.mrb[5].mxu0 }
 0x105   : > { %v604_v26 = vpop.f32.mrb[6].mxu0 }
 0x106   : > { %v609_v27 = vadd.f32 %v604_v26, %v524_v18  ;;  %v692_v28 = vadd.f32 %v685_v20, %v608_v24  ;;  %v1500_v29 = vpop.f32.mrb[7].mxu0 }
 0x108   : > { %v693_v30 = vadd.f32 %v688_v22, %v609_v27 }
 0x10e   : > { %v860_v31 = vpop.f32.mrb[8].mxu1 }
 0x10f   : > { %v1535_v32 = vpop.f32.mrb[9].mxu1 }
 0x110   : > { %v863_v33 = vpop.f32.mrb[10].mxu1 }
 0x111   : > { %v1536_v34 = vpop.f32.mrb[11].mxu1 }
 0x113   : > { %v778_v35 = vpop.f32.mrb[8].mxu0 }
 0x114   : > { %v785_v36 = vadd.f32 %v778_v35, %v692_v28  ;;  %v1523_v37 = vpop.f32.mrb[9].mxu0 }
 0x115   : > { %v781_v38 = vpop.f32.mrb[10].mxu0 }
 0x116   : > { %v786_v39 = vadd.f32 %v781_v38, %v693_v30  ;;  %v867_v40 = vadd.f32 %v860_v31, %v785_v36  ;;  %v1524_v41 = vpop.f32.mrb[11].mxu0 }
 0x118   : > { %v868_v42 = vadd.f32 %v863_v33, %v786_v39 }
 0x11e   : > { %v1037_v43 = vpop.f32.mrb[12].mxu1 }
 0x11f   : > { %v1559_v44 = vpop.f32.mrb[13].mxu1 }
 0x120   : > { %v1040_v45 = vpop.f32.mrb[14].mxu1 }
 0x121   : > { %v1560_v46 = vpop.f32.mrb[15].mxu1 }
 0x123   : > { %v944_v47 = vpop.f32.mrb[12].mxu0 }
 0x124   : > { %v951_v48 = vadd.f32 %v944_v47, %v867_v40  ;;  %v1547_v49 = vpop.f32.mrb[13].mxu0 }
 0x125   : > { %v947_v50 = vpop.f32.mrb[14].mxu0 }
 0x126   : > { %v952_v51 = vadd.f32 %v947_v50, %v868_v42  ;;  %v1044_v52 = vadd.f32 %v1037_v43, %v951_v48  ;;  %v1548_v53 = vpop.f32.mrb[15].mxu0 }
 0x128   : > { %v1045_v54 = vadd.f32 %v1040_v45, %v952_v51 }
 0x133   : > { %v1119_v55 = vpop.f32.mrb[16].mxu0 }
 0x134   : > { %v1126_v57 = vadd.f32 %v1119_v55, %v1044_v52  ;;  %v1571_v58 = vpop.f32.mrb[17].mxu0 }
 0x135   : > { %v1122_v59 = vpop.f32.mrb[18].mxu0 }
 0x136   : > { %v1135_v60 = vadd.f32 %v1413_v56, %v1126_v57  ;;  %v1127_v61 = vadd.f32 %v1122_v59, %v1045_v54  ;;  %v1572_v62 = vpop.f32.mrb[19].mxu0 }
 0x138   : > { %v1137_v63 = vmax.f32 %v1135_v60, 0.0  ;;  %v1136_v0 = vadd.f32 %v1413_v56, %v1127_v61 }
 0x13a   : > { %v1418_v2 = vpack.c.bf16 %v1137_v63, %v1137_v63  ;;  %v1138_v3 = vmax.f32 %v1136_v0, 0.0 }
 0x13c   : > { %1148 = vst.msk [vmem:[%s342_s18] sm:$0xf] %vm1147_vm4, %v1418_v2  ;;  %v1419_v4 = vpack.c.bf16 %v1138_v3, %v1138_v3 }
 0x13e   : > { %1149 = vst.msk [vmem:[%s342_s18 + $0x4] sm:$0xf] %vm1147_vm4, %v1419_v4 }
 0x13f PF: > { %s15_s22 = sadd.s32 1, %s1699_s22   ;;  %s2005_s18 = smov %s1691_s20 }
 0x140   : > { %p12_p10 = scmp.ge.s32.totalorder %s15_s22, 34   ;;  %s2006_s19 = smov %s1695_s21 }
 0x141   : > { %s2007_s20 = smov %s2010_s23  ;;  %s2008_s21 = smov %s2014_s24 }
 0x142   :  { %14 = sbr.rel (!%p12_p10) target bundleno = 3 (0x3), region = 84 }

// kernel: _lambda_.14
= control target key start
LH: loop header
LB: loop body
LE: loop exit
PB: predicated region body
PF: predicated region fallthrough
CT: control target
= control target key end

     0   :  { %s358_s6 = smov 0   ;;  %s360_s7 = smov 0   ;;  %s409_s0 = inlined_call_operand.vmem [shape: bf16[2,8,4,256], index: 0, kind: input, shape index: {}]   ;;  %s410_s1 = inlined_call_operand.vmem [shape: bf16[2,4,4,128], index: 1, kind: output, shape index: {}]  }
   0x1   :  { %s362_s8 = smov 0   ;;  %s364_s9 = smov 0  }
   0x2   :  { %s366_s10 = smov 0  }
   0x3 LB: > { %s20_s11 = sadd.s32 1, %s338_s8  ;;  %s23_s12 = sadd.s32 1, %s342_s9  ;;  %s346_s10 = sphi %s366_s10, %s11_s10   ;;  %s342_s9 = sphi %s364_s9, %s414_s9   ;;  %s338_s8 = sphi %s362_s8, %s413_s8   ;;  %s334_s7 = sphi %s360_s7, %s412_s7   ;;  %s330_s6 = sphi %s358_s6, %s411_s6  }
   0x4   : > { %p21_p0 = scmp.ge.s32.totalorder %s20_s11, 4  ;;  %p258_p1 = scmp.ge.s32.totalorder %s346_s10, 1 }
   0x5   : > { %p109_p2 = scmp.lt.s32.totalorder %s346_s10, 9 }
   0x6   : > { %s416_s11 = smov (%p21_p0, %s20_s11), 0  ;;  %s418_s12 = smov (!%p21_p0, %s23_s12), %s342_s9 }
   0x7   : > { %p110_p3 = pnand %p258_p1, %p109_p2  ;;  %p25_p4 = scmp.ge.s32.totalorder %s418_s12, 2 }
   0x8   : > { %s259_s13 = sshll.u32 (!%p110_p3), %s330_s6, 1  ;;  %p138_p5 = scmp.lt.s32.totalorder (!%p110_p3), %s334_s7, 1 }
   0x9   : > { %s420_s12 = smov (%p25_p4, %s418_s12), 0  ;;  %113 = sbr.rel (%p110_p3) target bundleno = 29 (0x1d), region = 24 }
   0xa   : > { %p140_p6 = scmp.lt.s32.totalorder (!%p110_p3), %s259_s13, 7  ;;  %p150_p7 = scmp.lt.s32.totalorder (!%p110_p3), %s330_s6, 3 }
  0x10   : > { %s422_s7 = smov (!%p138_p5, %s334_s7), 1  ;;  %s424_s13 = smov (!%p140_p6, %s259_s13), 7 }
  0x11   : > { %s261_s14 = sshll.u32 %s422_s7, 4  ;;  %s260_s15 = sshll.u32 %s424_s13, 1 }
  0x12   : > { %s144_s16 = sadd.s32 %s261_s14, %s260_s15  ;;  %s263_s21 = sshll.u32 %s422_s7, 2 }
  0x13   : > { %s262_s17 = sshll.u32 %s144_s16, 1  ;;  %s426_s6 = smov (!%p150_p7, %s330_s6), 3 }
  0x14   : > { %s146_s20 = scalar_lea.vmem %s409_s0, %s262_s17  ;;  %s153_s22 = sadd.s32 %s263_s21, %s426_s6 }
  0x15   : > { %v156_v0 = vld [vmem:[%s146_s20] sm:$0xf]  ;;  %v265_v1 = vld [vmem:[%s146_s20 + $0x4] sm:$0xf]  ;;  %s264_s23 = sshll.u32 %s153_s22, 1 }
  0x16   : > { %v159_v2 = vmax.bf16 %v265_v1, %v156_v0  ;;  %s155_s26 = scalar_lea.vmem %s410_s1, %s264_s23 }
  0x18   : > { %v161_v3 = vrot.slane %v159_v2, 2 }
  0x1a   : > { %v163_v4 = vmax.bf16 %v161_v3, %v159_v2 }
  0x1c   : > { %164 = vst [vmem:[%s155_s26] sm:$0x3] %v163_v4 }
  0x1d PF: > { %s11_s10 = sadd.s32 1, %s346_s10   ;;  %s411_s6 = smov %s338_s8 }
  0x1e   : > { %p8_p8 = scmp.ge.s32.totalorder %s11_s10, 10   ;;  %s412_s7 = smov %s342_s9 }
  0x1f   : > { %s413_s8 = smov %s416_s11  ;;  %s414_s9 = smov %s420_s12 }
  0x20   :  { %10 = sbr.rel (!%p8_p8) target bundleno = 3 (0x3), region = 55 }

// kernel: _lambda_.13
= control target key start
LH: loop header
LB: loop body
LE: loop exit
PB: predicated region body
PF: predicated region fallthrough
CT: control target
= control target key end

     0   :  { %s2156_s18 = smov 0   ;;  %s2158_s19 = smov 0   ;;  %s2552_s0 = inlined_call_operand.vmem [shape: bf16[2,10,10,128], index: 0, kind: input, shape index: {}, may-alias: {0,1,2}]   ;;  %s2553_s1 = inlined_call_operand.vmem [shape: bf16[2,10,10,128], index: 1, kind: input, shape index: {}, may-alias: {0,1,2}]   ;;  %s2554_s2 = inlined_call_operand.vmem [shape: bf16[2,10,10,128], index: 2, kind: input, shape index: {}, may-alias: {0,1,2}]   ;;  %s2555_s3 = inlined_call_operand.vmem [shape: bf16[9,128,128], index: 3, kind: input, shape index: {}]   ;;  %s2556_s4 = inlined_call_operand.vmem [shape: f32[1,128], index: 4, kind: input, shape index: {}]   ;;  %s2557_s5 = inlined_call_operand.vmem [shape: bf16[2,8,8,128], index: 5, kind: output, shape index: {}]  }
   0x1   :  { %s2160_s20 = smov 0   ;;  %s2162_s21 = smov 0  }
   0x2   :  { %s2164_s22 = smov 0  }
   0x3 LB: > { %s24_s23 = sadd.s32 1, %s2114_s20  ;;  %s27_s24 = sadd.s32 1, %s2118_s21  ;;  %s2122_s22 = sphi %s2164_s22, %s15_s22   ;;  %s2118_s21 = sphi %s2162_s21, %s2561_s21   ;;  %s2114_s20 = sphi %s2160_s20, %s2560_s20   ;;  %s2110_s19 = sphi %s2158_s19, %s2559_s19   ;;  %s2106_s18 = sphi %s2156_s18, %s2558_s18  }
   0x4   : > { %p25_p0 = scmp.ge.s32.totalorder %s24_s23, 8  ;;  %p1490_p1 = scmp.ge.s32.totalorder %s2122_s22, 1 }
   0x5   : > { %p247_p2 = scmp.lt.s32.totalorder %s2122_s22, 17 }
   0x6   : > { %s2563_s23 = smov (%p25_p0, %s24_s23), 0  ;;  %s2565_s24 = smov (!%p25_p0, %s27_s24), %s2118_s21 }
   0x7   : > { %p248_p3 = pnand %p1490_p1, %p247_p2  ;;  %p29_p4 = scmp.ge.s32.totalorder %s2565_s24, 2 }
   0x8   : > { %v2009_v0 = vld [vmem:[%s2555_s3 + $0x40] sm:$0xff] (!%p248_p3)   ;;  %v2124_v1 = vmov (!%p248_p3), 0.0   ;;  %v2011_v3 = vld [vmem:[%s2555_s3 + $0x48] sm:$0xff] (!%p248_p3)   ;;  %vm2125_vm0 = vmmov (!%p248_p3), 0   ;;  %p302_p5 = scmp.lt.s32.totalorder (!%p248_p3), %s2110_s19, 1  ;;  %p304_p6 = scmp.lt.s32.totalorder (!%p248_p3), %s2106_s18, 9 }
   0x9   : > { %s2567_s24 = smov (%p29_p4, %s2565_s24), 0  ;;  %251 = sbr.rel (%p248_p3) target bundleno = 391 (0x187), region = 40 }
   0xa   : > { %1786 = vmatprep.subr.bf16.mxu0 (!%p248_p3), %v2124_v1  ;;  %1806 = vmatprep.subr.bf16.mxu1 (!%p248_p3), %v2124_v1  ;;  %v2010_v2 = vld [vmem:[%s2555_s3] sm:$0xff] (!%p248_p3)   ;;  %v2012_v4 = vld [vmem:[%s2555_s3 + $0x8] sm:$0xff] (!%p248_p3)   ;;  %v2013_v5 = vld [vmem:[%s2555_s3 + $0x50] sm:$0xff] (!%p248_p3)   ;;  %s322_s29 = sadd.s32 (!%p248_p3), 2, %s2106_s18  ;;  %p335_p9 = scmp.lt.s32.totalorder (!%p248_p3), %s2106_s18, 7 }
   0xb   : > { %1787 = vmatpush3.bf16.msra.mxu0 (!%p248_p3), %v2009_v0  ;;  %1802 = vmatprep.mubr.msk.bf16.mxu0 (!%p248_p3), %vm2125_vm0, %v2124_v1  ;;  %v2014_v6 = vld [vmem:[%s2555_s3 + $0x10] sm:$0xff] (!%p248_p3)   ;;  %v2015_v7 = vld [vmem:[%s2555_s3 + $0x58] sm:$0xff] (!%p248_p3)   ;;  %v2017_v9 = vld [vmem:[%s2555_s3 + $0x60] sm:$0xff] (!%p248_p3)   ;;  %p325_p8 = scmp.lt.s32.totalorder (!%p248_p3), %s322_s29, 9 }
   0xc   : > { %1807 = vmatpush3.bf16.msra.mxu1 (!%p248_p3), %v2010_v2  ;;  %1788 = vmatprep.subr.bf16.mxu0 (!%p248_p3), %v2124_v1  ;;  %v2016_v8 = vld [vmem:[%s2555_s3 + $0x18] sm:$0xff] (!%p248_p3)   ;;  %v2018_v10 = vld [vmem:[%s2555_s3 + $0x20] sm:$0xff] (!%p248_p3)   ;;  %v2019_v14 = vld [vmem:[%s2555_s3 + $0x68] sm:$0xff] (!%p248_p3)  }
   0xd   : > { %1808 = vmatprep.subr.bf16.mxu1 (!%p248_p3), %v2124_v1  ;;  %1822 = vmatprep.mubr.msk.bf16.mxu1 (!%p248_p3), %vm2125_vm0, %v2124_v1  ;;  %v2020_v15 = vld [vmem:[%s2555_s3 + $0x28] sm:$0xff] (!%p248_p3)   ;;  %v2021_v17 = vld [vmem:[%s2555_s3 + $0x70] sm:$0xff] (!%p248_p3)   ;;  %v2023_v21 = vld [vmem:[%s2555_s3 + $0x78] sm:$0xff] (!%p248_p3)  }
   0xe   : > { %v2022_v18 = vld [vmem:[%s2555_s3 + $0x30] sm:$0xff] (!%p248_p3)   ;;  %v2024_v22 = vld [vmem:[%s2555_s3 + $0x38] sm:$0xff] (!%p248_p3)   ;;  %v2026_v24 = vld [vmem:[%s2555_s3 + $0x80] sm:$0xff] (!%p248_p3)  }
   0xf   : > { %1789 = vmatpush3.bf16.msra.mxu0 (!%p248_p3), %v2011_v3  ;;  %v2027_v25 = vld [vmem:[%s2555_s3 + $0xc0] sm:$0xff] (!%p248_p3)   ;;  %v2028_v26 = vld [vmem:[%s2555_s3 + $0x88] sm:$0xff] (!%p248_p3)   ;;  %v2030_v28 = vld [vmem:[%s2555_s3 + $0x90] sm:$0xff] (!%p248_p3)  }
  0x10   : > { %s2569_s19 = smov (!%p302_p5, %s2110_s19), 1  ;;  %1809 = vmatpush3.bf16.msra.mxu1 %v2012_v4  ;;  %1790 = vmatprep.subr.bf16.mxu0 %v2124_v1  ;;  %v2029_v27 = vld [vmem:[%s2555_s3 + $0xc8] sm:$0xff]   ;;  %v2031_v29 = vld [vmem:[%s2555_s3 + $0xd0] sm:$0xff]   ;;  %v2032_v30 = vld [vmem:[%s2555_s3 + $0x98] sm:$0xff]   ;;  %s2573_s29 = smov (!%p325_p8, %s322_s29), 9 }
  0x11   : > { %s305_s8 = scalar_select %p304_p6, %s2106_s18, 9  ;;  %1810 = vmatprep.subr.bf16.mxu1 %v2124_v1  ;;  %v2033_v31 = vld [vmem:[%s2555_s3 + $0xd8] sm:$0xff]   ;;  %v2034_v32 = vld [vmem:[%s2555_s3 + $0xa0] sm:$0xff]   ;;  %v2036_v34 = vld [vmem:[%s2555_s3 + $0xa8] sm:$0xff]  }
  0x12   : > { %s2220_s11 = smul.u32 20, %s2569_s19  ;;  %v2035_v33 = vld [vmem:[%s2555_s3 + $0xe0] sm:$0xff]   ;;  %v2037_v35 = vld [vmem:[%s2555_s3 + $0xe8] sm:$0xff]   ;;  %v2038_v36 = vld [vmem:[%s2555_s3 + $0xb0] sm:$0xff]   ;;  %s1495_s26 = sshll.u32 %s2573_s29, 1 }
  0x13   : > { %s1491_s14 = sshll.u32 %s305_s8, 1  ;;  %1791 = vmatpush3.bf16.msra.mxu0 %v2013_v5  ;;  %v2039_v37 = vld [vmem:[%s2555_s3 + $0xf0] sm:$0xff]   ;;  %v2040_v38 = vld [vmem:[%s2555_s3 + $0xb8] sm:$0xff]   ;;  %v2042_v41 = vld [vmem:[%s2555_s3 + $0x100] sm:$0xff]  }
  0x14   : > { %s308_s15 = sadd.s32 %s2220_s11, %s1491_s14  ;;  %1811 = vmatpush3.bf16.msra.mxu1 %v2014_v6  ;;  %1792 = vmatprep.subr.bf16.mxu0 %v2124_v1  ;;  %v2041_v39 = vld [vmem:[%s2555_s3 + $0xf8] sm:$0xff]   ;;  %v2044_v43 = vld [vmem:[%s2555_s3 + $0x140] sm:$0xff]   ;;  %v2045_v44 = vld [vmem:[%s2555_s3 + $0x108] sm:$0xff]   ;;  %s329_s28 = sadd.s32 %s2220_s11, %s1495_s26 }
  0x15   : > { %s1492_s25 = sshll.u32 %s308_s15, 2  ;;  %1812 = vmatprep.subr.bf16.mxu1 %v2124_v1  ;;  %v2046_v45 = vld [vmem:[%s2555_s3 + $0x148] sm:$0xff]   ;;  %v2047_v46 = vld [vmem:[%s2555_s3 + $0x110] sm:$0xff]   ;;  %v2049_v48 = vld [vmem:[%s2555_s3 + $0x118] sm:$0xff]   ;;  %s1496_s29 = sshll.u32 %s329_s28, 2 }
  0x16   : > { %s310_s30 = scalar_lea.vmem %s2552_s0, %s1492_s25  ;;  %s311_s25 = sadd.s32 1, %s2106_s18  ;;  %v2048_v47 = vld [vmem:[%s2555_s3 + $0x150] sm:$0xff]   ;;  %v2050_v49 = vld [vmem:[%s2555_s3 + $0x158] sm:$0xff]   ;;  %v2051_v51 = vld [vmem:[%s2555_s3 + $0x120] sm:$0xff]  }
  0x17   : > { %1793 = vmatpush3.bf16.msra.mxu0 %v2015_v7  ;;  %v342_v11 = vld [vmem:[%s310_s30] sm:$0xf]  ;;  %v343_v12 = vld [vmem:[%s310_s30 + $0x4] sm:$0x1]  ;;  %p314_p7 = scmp.lt.s32.totalorder %s311_s25, 9  ;;  %v2053_v54 = vld [vmem:[%s2555_s3 + $0x128] sm:$0xff]   ;;  %s331_s14 = scalar_lea.vmem %s2554_s2, %s1496_s29 }
  0x18   : > { %1813 = vmatpush3.bf16.msra.mxu1 %v2016_v8  ;;  %1794 = vmatprep.subr.bf16.mxu0 %v2124_v1  ;;  %v2247_v13 = vcombine.low %v342_v11, %v343_v12  ;;  %v2052_v52 = vld [vmem:[%s2555_s3 + $0x160] sm:$0xff]   ;;  %v2054_v55 = vld [vmem:[%s2555_s3 + $0x168] sm:$0xff]   ;;  %v2055_v57 = vld [vmem:[%s2555_s3 + $0x130] sm:$0xff]   ;;  %s2575_s18 = smov (!%p335_p9, %s2106_s18), 7 }
  0x19   : > { %1814 = vmatprep.subr.bf16.mxu1 %v2124_v1  ;;  %s2571_s25 = smov (!%p314_p7, %s311_s25), 9  ;;  %v2056_v58 = vld [vmem:[%s2555_s3 + $0x170] sm:$0xff]   ;;  %v2057_v61 = vld [vmem:[%s2555_s3 + $0x138] sm:$0xff]   ;;  %v2059_v0 = vld [vmem:[%s2555_s3 + $0x180] sm:$0xff]  }
  0x1a   : > { %v389_v16 = vshll.u32 %v2247_v13, 16  ;;  %v387_v19 = vshrl.u32 %v2247_v13, 16  ;;  %s1493_s12 = sshll.u32 %s2571_s25, 1  ;;  %v587_v40 = vrot.slane %v2247_v13, 1  ;;  %v2058_v62 = vld [vmem:[%s2555_s3 + $0x178] sm:$0xff]   ;;  %v2060_v3 = vld [vmem:[%s2555_s3 + $0x1c0] sm:$0xff]  }
  0x1b   : > { %1795 = vmatpush3.bf16.msra.mxu0 %v2017_v9  ;;  %s318_s15 = sadd.s32 %s2220_s11, %s1493_s12  ;;  %v2061_v4 = vld [vmem:[%s2555_s3 + $0x188] sm:$0xff]   ;;  %v2063_v6 = vld [vmem:[%s2555_s3 + $0x190] sm:$0xff]   ;;  %v2065_v8 = vld [vmem:[%s2555_s3 + $0x198] sm:$0xff]   ;;  %s1497_s11 = sshll.u32 %s2569_s19, 3 }
  0x1c   : > { %1815 = vmatpush3.bf16.msra.mxu1 %v2018_v10  ;;  %1796 = vmatprep.subr.bf16.mxu0 %v2124_v1  ;;  %v391_v20 = vrot.slane %v389_v16, 1  ;;  %s1494_s27 = sshll.u32 %s318_s15, 2  ;;  %v2062_v5 = vld [vmem:[%s2555_s3 + $0x1c8] sm:$0xff]   ;;  %v2064_v7 = vld [vmem:[%s2555_s3 + $0x1d0] sm:$0xff]   ;;  %v2066_v9 = vld [vmem:[%s2555_s3 + $0x1d8] sm:$0xff]   ;;  %s338_s12 = sadd.s32 %s1497_s11, %s2575_s18 }
  0x1d   : > { %1816 = vmatprep.subr.bf16.mxu1 %v2124_v1  ;;  %s2347_s9 = scalar_lea.vmem %s2553_s1, %s1494_s27  ;;  %v2067_v10 = vld [vmem:[%s2555_s3 + $0x1a0] sm:$0xff]   ;;  %v2070_v16 = vld [vmem:[%s2555_s3 + $0x1e8] sm:$0xff]   ;;  %s1498_s15 = sshll.u32 %s338_s12, 2 }
  0x1e   : > { %v392_v23 = vor.u32 %v391_v20, %v387_v19  ;;  %v344_v42 = vld [vmem:[%s2347_s9] sm:$0xf]  ;;  %v345_v50 = vld [vmem:[%s2347_s9 + $0x4] sm:$0x1]  ;;  %v2072_v19 = vld [vmem:[%s2555_s3 + $0x1f0] sm:$0xff]   ;;  %s340_s17 = scalar_lea.vmem %s2557_s5, %s1498_s15 }
  0x1f   : > { %1797 = vmatpush3.bf16.msra.mxu0 %v2019_v14  ;;  %v1596_v53 = vcombine.low %v344_v42, %v345_v50  ;;  %v346_v12 = vld [vmem:[%s331_s14] sm:$0xf]  ;;  %v347_v13 = vld [vmem:[%s331_s14 + $0x4] sm:$0x1]  ;;  %v2069_v14 = vld [vmem:[%s2555_s3 + $0x1a8] sm:$0xff]  }
  0x20   : > { %1817 = vmatpush3.bf16.msra.mxu1 %v2020_v15  ;;  %1798 = vmatprep.subr.bf16.mxu0 %v2124_v1  ;;  %v1669_v15 = vcombine.low %v346_v12, %v347_v13  ;;  %v2073_v20 = vld [vmem:[%s2555_s3 + $0x1b8] sm:$0xff]  }
  0x21   : > { %1818 = vmatprep.subr.bf16.mxu1 %v2124_v1  ;;  %v809_v56 = vshll.u32 %v1596_v53, 16  ;;  %v807_v59 = vshrl.u32 %v1596_v53, 16  ;;  %v920_v2 = vrot.slane %v1596_v53, 1 }
  0x23   : > { %1799 = vmatpush3.bf16.msra.mxu0 %v2021_v17  ;;  %v811_v60 = vrot.slane %v809_v56, 1  ;;  %v2071_v17 = vld [vmem:[%s2555_s3 + $0x1b0] sm:$0xff]  }
  0x24   : > { %1819 = vmatpush3.bf16.msra.mxu1 %v2022_v18  ;;  %1800 = vmatprep.subr.bf16.mxu0 %v2124_v1  ;;  %v1142_v18 = vshll.u32 %v1669_v15, 16 }
  0x25   : > { %1820 = vmatprep.subr.bf16.mxu1 %v2124_v1  ;;  %v812_v63 = vor.u32 %v811_v60, %v807_v59 }
  0x27   : > { %1801 = vmatpush3.bf16.msra.mxu0 %v2023_v21  ;;  %v1140_v21 = vshrl.u32 %v1669_v15, 16 }
  0x28   : > { %1821 = vmatpush3.bf16.msra.mxu1 %v2024_v22  ;;  %1826 = vmatprep.subr.bf16.mxu0 %v2124_v1  ;;  %v1144_v22 = vrot.slane %v1142_v18, 1 }
  0x29   : > { %1846 = vmatprep.subr.bf16.mxu1 %v2124_v1 }
  0x2a   : > { %1803 = vmatmul.mubr.bf16.vlgmr.msra.gmra.mrb[0].mxu0 %v392_v23  ;;  %v2074_v23 = vld [vmem:[%s2555_s3 + $0x1f8] sm:$0xff]  }
  0x2b   : > { %1823 = vmatmul.mubr.bf16.vlgmr.msra.gmra.mrb[0].mxu1 %v342_v11  ;;  %1827 = vmatpush3.bf16.msra.mxu0 %v2026_v24  ;;  %v2068_v11 = vld [vmem:[%s2555_s3 + $0x1e0] sm:$0xff]  }
  0x2c   : > { %1847 = vmatpush3.bf16.msra.mxu1 %v2027_v25  ;;  %1828 = vmatprep.subr.bf16.mxu0 %v2124_v1  ;;  %v2076_v24 = vld [vmem:[%s2555_s3 + $0x200] sm:$0xff]   ;;  %v1145_v25 = vor.u32 %v1144_v22, %v1140_v21 }
  0x2d   : > { %1848 = vmatprep.subr.bf16.mxu1 %v2124_v1  ;;  %1842 = vmatprep.mubr.msk.bf16.mxu0 %vm2125_vm0, %v2124_v1 }
  0x2e   : > { %1862 = vmatprep.mubr.msk.bf16.mxu1 %vm2125_vm0, %v2124_v1 }
  0x2f   : > { %1829 = vmatpush3.bf16.msra.mxu0 %v2028_v26  ;;  %v2077_v26 = vld [vmem:[%s2555_s3 + $0x208] sm:$0xff]  }
  0x30   : > { %1849 = vmatpush3.bf16.msra.mxu1 %v2029_v27  ;;  %1830 = vmatprep.subr.bf16.mxu0 %v2124_v1  ;;  %v2078_v27 = vld [vmem:[%s2555_s3 + $0x210] sm:$0xff]  }
  0x31   : > { %1850 = vmatprep.subr.bf16.mxu1 %v2124_v1 }
  0x33   : > { %1831 = vmatpush3.bf16.msra.mxu0 %v2030_v28  ;;  %v2079_v28 = vld [vmem:[%s2555_s3 + $0x218] sm:$0xff]  }
  0x34   : > { %1851 = vmatpush3.bf16.msra.mxu1 %v2031_v29  ;;  %1832 = vmatprep.subr.bf16.mxu0 %v2124_v1  ;;  %v2080_v29 = vld [vmem:[%s2555_s3 + $0x220] sm:$0xff]  }
  0x35   : > { %1852 = vmatprep.subr.bf16.mxu1 %v2124_v1 }
  0x37   : > { %1833 = vmatpush3.bf16.msra.mxu0 %v2032_v30  ;;  %v2081_v30 = vld [vmem:[%s2555_s3 + $0x228] sm:$0xff]  }
  0x38   : > { %1853 = vmatpush3.bf16.msra.mxu1 %v2033_v31  ;;  %1834 = vmatprep.subr.bf16.mxu0 %v2124_v1  ;;  %v2082_v31 = vld [vmem:[%s2555_s3 + $0x230] sm:$0xff]  }
  0x39   : > { %1854 = vmatprep.subr.bf16.mxu1 %v2124_v1 }
  0x3b   : > { %1835 = vmatpush3.bf16.msra.mxu0 %v2034_v32  ;;  %v2083_v32 = vld [vmem:[%s2555_s3 + $0x238] sm:$0xff]  }
  0x3c   : > { %1855 = vmatpush3.bf16.msra.mxu1 %v2035_v33  ;;  %1836 = vmatprep.subr.bf16.mxu0 %v2124_v1  ;;  %v1253_v33 = vrot.slane %v1669_v15, 1 }
  0x3d   : > { %1856 = vmatprep.subr.bf16.mxu1 %v2124_v1 }
  0x3f   : > { %1837 = vmatpush3.bf16.msra.mxu0 %v2036_v34 }
  0x40   : > { %1857 = vmatpush3.bf16.msra.mxu1 %v2037_v35  ;;  %1838 = vmatprep.subr.bf16.mxu0 %v2124_v1 }
  0x41   : > { %1858 = vmatprep.subr.bf16.mxu1 %v2124_v1 }
  0x43   : > { %1839 = vmatpush3.bf16.msra.mxu0 %v2038_v36 }
  0x44   : > { %1859 = vmatpush3.bf16.msra.mxu1 %v2039_v37  ;;  %1840 = vmatprep.subr.bf16.mxu0 %v2124_v1 }
  0x45   : > { %1860 = vmatprep.subr.bf16.mxu1 %v2124_v1 }
  0x47   : > { %1841 = vmatpush3.bf16.msra.mxu0 %v2040_v38 }
  0x48   : > { %1861 = vmatpush3.bf16.msra.mxu1 %v2041_v39  ;;  %1866 = vmatprep.subr.bf16.mxu0 %v2124_v1 }
  0x49   : > { %1886 = vmatprep.subr.bf16.mxu1 %v2124_v1 }
  0x4a   : > { %1843 = vmatmul.mubr.bf16.vlgmr.msra.gmra.mrb[4].mxu0 %v587_v40 }
  0x4b   : > { %1867 = vmatpush3.bf16.msra.mxu0 %v2042_v41  ;;  %1863 = vmatmul.mubr.bf16.vlgmr.msra.gmra.mrb[4].mxu1 %v344_v42 }
  0x4c   : > { %1887 = vmatpush3.bf16.msra.mxu1 %v2044_v43  ;;  %1868 = vmatprep.subr.bf16.mxu0 %v2124_v1 }
  0x4d   : > { %1888 = vmatprep.subr.bf16.mxu1 %v2124_v1  ;;  %1882 = vmatprep.mubr.msk.bf16.mxu0 %vm2125_vm0, %v2124_v1 }
  0x4e   : > { %1902 = vmatprep.mubr.msk.bf16.mxu1 %vm2125_vm0, %v2124_v1 }
  0x4f   : > { %1869 = vmatpush3.bf16.msra.mxu0 %v2045_v44 }
  0x50   : > { %1889 = vmatpush3.bf16.msra.mxu1 %v2046_v45  ;;  %1870 = vmatprep.subr.bf16.mxu0 %v2124_v1 }
  0x51   : > { %1890 = vmatprep.subr.bf16.mxu1 %v2124_v1 }
  0x53   : > { %1871 = vmatpush3.bf16.msra.mxu0 %v2047_v46 }
  0x54   : > { %1891 = vmatpush3.bf16.msra.mxu1 %v2048_v47  ;;  %1872 = vmatprep.subr.bf16.mxu0 %v2124_v1 }
  0x55   : > { %1892 = vmatprep.subr.bf16.mxu1 %v2124_v1 }
  0x57   : > { %1873 = vmatpush3.bf16.msra.mxu0 %v2049_v48 }
  0x58   : > { %1893 = vmatpush3.bf16.msra.mxu1 %v2050_v49  ;;  %1874 = vmatprep.subr.bf16.mxu0 %v2124_v1 }
  0x59   : > { %1894 = vmatprep.subr.bf16.mxu1 %v2124_v1 }
  0x5b   : > { %1875 = vmatpush3.bf16.msra.mxu0 %v2051_v51 }
  0x5c   : > { %1895 = vmatpush3.bf16.msra.mxu1 %v2052_v52  ;;  %1876 = vmatprep.subr.bf16.mxu0 %v2124_v1 }
  0x5d   : > { %1896 = vmatprep.subr.bf16.mxu1 %v2124_v1 }
  0x5f   : > { %1877 = vmatpush3.bf16.msra.mxu0 %v2053_v54 }
  0x60   : > { %1897 = vmatpush3.bf16.msra.mxu1 %v2054_v55  ;;  %1878 = vmatprep.subr.bf16.mxu0 %v2124_v1 }
  0x61   : > { %1898 = vmatprep.subr.bf16.mxu1 %v2124_v1 }
  0x63   : > { %1879 = vmatpush3.bf16.msra.mxu0 %v2055_v57 }
  0x64   : > { %1899 = vmatpush3.bf16.msra.mxu1 %v2056_v58  ;;  %1880 = vmatprep.subr.bf16.mxu0 %v2124_v1 }
  0x65   : > { %1900 = vmatprep.subr.bf16.mxu1 %v2124_v1 }
  0x67   : > { %1881 = vmatpush3.bf16.msra.mxu0 %v2057_v61 }
  0x68   : > { %1901 = vmatpush3.bf16.msra.mxu1 %v2058_v62  ;;  %1906 = vmatprep.subr.bf16.mxu0 %v2124_v1 }
  0x69   : > { %1926 = vmatprep.subr.bf16.mxu1 %v2124_v1 }
  0x6a   : > { %1883 = vmatmul.mubr.bf16.vlgmr.msra.gmra.mrb[8].mxu0 %v812_v63 }
  0x6b   : > { %1907 = vmatpush3.bf16.msra.mxu0 %v2059_v0  ;;  %1903 = vmatmul.mubr.bf16.vlgmr.msra.gmra.mrb[8].mxu1 %v920_v2 }
  0x6c   : > { %1927 = vmatpush3.bf16.msra.mxu1 %v2060_v3  ;;  %1908 = vmatprep.subr.bf16.mxu0 %v2124_v1 }
  0x6d   : > { %1928 = vmatprep.subr.bf16.mxu1 %v2124_v1  ;;  %1922 = vmatprep.mubr.msk.bf16.mxu0 %vm2125_vm0, %v2124_v1 }
  0x6e   : > { %1942 = vmatprep.mubr.msk.bf16.mxu1 %vm2125_vm0, %v2124_v1 }
  0x6f   : > { %1909 = vmatpush3.bf16.msra.mxu0 %v2061_v4 }
  0x70   : > { %1929 = vmatpush3.bf16.msra.mxu1 %v2062_v5  ;;  %1910 = vmatprep.subr.bf16.mxu0 %v2124_v1 }
  0x71   : > { %1930 = vmatprep.subr.bf16.mxu1 %v2124_v1 }
  0x73   : > { %1911 = vmatpush3.bf16.msra.mxu0 %v2063_v6 }
  0x74   : > { %1931 = vmatpush3.bf16.msra.mxu1 %v2064_v7  ;;  %1912 = vmatprep.subr.bf16.mxu0 %v2124_v1 }
  0x75   : > { %1932 = vmatprep.subr.bf16.mxu1 %v2124_v1 }
  0x77   : > { %1913 = vmatpush3.bf16.msra.mxu0 %v2065_v8 }
  0x78   : > { %1933 = vmatpush3.bf16.msra.mxu1 %v2066_v9  ;;  %1914 = vmatprep.subr.bf16.mxu0 %v2124_v1 }
  0x79   : > { %1934 = vmatprep.subr.bf16.mxu1 %v2124_v1 }
  0x7b   : > { %1915 = vmatpush3.bf16.msra.mxu0 %v2067_v10  ;;  %v1702_v10 = vld [vmem:[%s2556_s4] ss:$0 sm:$0xff] }
  0x7c   : > { %1935 = vmatpush3.bf16.msra.mxu1 %v2068_v11  ;;  %1916 = vmatprep.subr.bf16.mxu0 %v2124_v1 }
  0x7d   : > { %1936 = vmatprep.subr.bf16.mxu1 %v2124_v1 }
  0x7f   : > { %1917 = vmatpush3.bf16.msra.mxu0 %v2069_v14 }
  0x80   : > { %1937 = vmatpush3.bf16.msra.mxu1 %v2070_v16  ;;  %1918 = vmatprep.subr.bf16.mxu0 %v2124_v1 }
  0x81   : > { %1938 = vmatprep.subr.bf16.mxu1 %v2124_v1 }
  0x83   : > { %1919 = vmatpush3.bf16.msra.mxu0 %v2071_v17 }
  0x84   : > { %1939 = vmatpush3.bf16.msra.mxu1 %v2072_v19  ;;  %1920 = vmatprep.subr.bf16.mxu0 %v2124_v1 }
  0x85   : > { %1940 = vmatprep.subr.bf16.mxu1 %v2124_v1 }
  0x87   : > { %1921 = vmatpush3.bf16.msra.mxu0 %v2073_v20 }
  0x88   : > { %1941 = vmatpush3.bf16.msra.mxu1 %v2074_v23  ;;  %1946 = vmatprep.subr.bf16.mxu0 %v2124_v1 }
  0x8a   : > { %1923 = vmatmul.mubr.bf16.vlgmr.msra.gmra.mrb[12].mxu0 %v346_v12 }
  0x8b   : > { %1947 = vmatpush3.bf16.msra.mxu0 %v2076_v24  ;;  %1943 = vmatmul.mubr.bf16.vlgmr.msra.gmra.mrb[12].mxu1 %v1145_v25 }
  0x8c   : > { %1948 = vmatprep.subr.bf16.mxu0 %v2124_v1  ;;  %1962 = vmatprep.mubr.msk.bf16.mxu0 %vm2125_vm0, %v2124_v1 }
  0x8f   : > { %1949 = vmatpush3.bf16.msra.mxu0 %v2077_v26 }
  0x90   : > { %1950 = vmatprep.subr.bf16.mxu0 %v2124_v1 }
  0x93   : > { %1951 = vmatpush3.bf16.msra.mxu0 %v2078_v27 }
  0x94   : > { %1952 = vmatprep.subr.bf16.mxu0 %v2124_v1 }
  0x97   : > { %1953 = vmatpush3.bf16.msra.mxu0 %v2079_v28 }
  0x98   : > { %1954 = vmatprep.subr.bf16.mxu0 %v2124_v1 }
  0x9b   : > { %1955 = vmatpush3.bf16.msra.mxu0 %v2080_v29 }
  0x9c   : > { %1956 = vmatprep.subr.bf16.mxu0 %v2124_v1 }
  0x9f   : > { %1957 = vmatpush3.bf16.msra.mxu0 %v2081_v30 }
  0xa0   : > { %1958 = vmatprep.subr.bf16.mxu0 %v2124_v1 }
  0xa3   : > { %1959 = vmatpush3.bf16.msra.mxu0 %v2082_v31 }
  0xa4   : > { %1960 = vmatprep.subr.bf16.mxu0 %v2124_v1 }
  0xa7   : > { %1961 = vmatpush3.bf16.msra.mxu0 %v2083_v32 }
  0xaa   : > { %1963 = vmatmul.mubr.bf16.vlgmr.msra.gmra.mrb[16].mxu0 %v1253_v33 }
  0xfd   : > { %v476_v34 = vpop.f32.mrb[0].mxu0 }
  0xfe   : > { %v1804_v35 = vpop.f32.mrb[1].mxu0  ;;  %v564_v36 = vpop.f32.mrb[0].mxu1 }
  0xff   : > { %v565_v37 = vadd.f32 %v564_v36, %v476_v34  ;;  %v479_v38 = vpop.f32.mrb[2].mxu0  ;;  %v1824_v39 = vpop.f32.mrb[1].mxu1 }
 0x100   : > { %v1805_v40 = vpop.f32.mrb[3].mxu0  ;;  %v567_v41 = vpop.f32.mrb[2].mxu1 }
 0x101   : > { %v1825_v42 = vpop.f32.mrb[3].mxu1 }
 0x11d   : > { %v671_v43 = vpop.f32.mrb[4].mxu0 }
 0x11e   : > { %v677_v44 = vadd.f32 %v671_v43, %v565_v37  ;;  %v1844_v45 = vpop.f32.mrb[5].mxu0  ;;  %v777_v46 = vpop.f32.mrb[4].mxu1 }
 0x11f   : > { %v674_v47 = vpop.f32.mrb[6].mxu0  ;;  %v1864_v48 = vpop.f32.mrb[5].mxu1 }
 0x120   : > { %v783_v49 = vadd.f32 %v777_v46, %v677_v44  ;;  %v1845_v1 = vpop.f32.mrb[7].mxu0  ;;  %v780_v50 = vpop.f32.mrb[6].mxu1 }
 0x121   : > { %v1865_v51 = vpop.f32.mrb[7].mxu1 }
 0x13d   : > { %v896_v52 = vpop.f32.mrb[8].mxu0 }
 0x13e   : > { %v902_v53 = vadd.f32 %v896_v52, %v783_v49  ;;  %v1884_v54 = vpop.f32.mrb[9].mxu0  ;;  %v1004_v55 = vpop.f32.mrb[8].mxu1 }
 0x13f   : > { %v899_v56 = vpop.f32.mrb[10].mxu0  ;;  %v1904_v57 = vpop.f32.mrb[9].mxu1 }
 0x140   : > { %v1010_v58 = vadd.f32 %v1004_v55, %v902_v53  ;;  %v1885_v59 = vpop.f32.mrb[11].mxu0  ;;  %v1007_v60 = vpop.f32.mrb[10].mxu1 }
 0x141   : > { %v1905_v61 = vpop.f32.mrb[11].mxu1 }
 0x15d   : > { %v1110_v62 = vpop.f32.mrb[12].mxu0 }
 0x15e   : > { %v1116_v63 = vadd.f32 %v1110_v62, %v1010_v58  ;;  %v1924_v0 = vpop.f32.mrb[13].mxu0  ;;  %v1229_v2 = vpop.f32.mrb[12].mxu1 }
 0x15f   : > { %v1113_v3 = vpop.f32.mrb[14].mxu0  ;;  %v1944_v4 = vpop.f32.mrb[13].mxu1 }
 0x160   : > { %v1235_v5 = vadd.f32 %v1229_v2, %v1116_v63  ;;  %v1925_v6 = vpop.f32.mrb[15].mxu0  ;;  %v1232_v7 = vpop.f32.mrb[14].mxu1 }
 0x161   : > { %v1945_v8 = vpop.f32.mrb[15].mxu1 }
 0x17d   : > { %v1337_v9 = vpop.f32.mrb[16].mxu0 }
 0x17e   : > { %v1343_v11 = vadd.f32 %v1337_v9, %v1235_v5  ;;  %v1964_v12 = vpop.f32.mrb[17].mxu0 }
 0x17f   : > { %v1340_v13 = vpop.f32.mrb[18].mxu0 }
 0x180   : > { %v1351_v14 = vadd.f32 %v1702_v10, %v1343_v11  ;;  %v1965_v15 = vpop.f32.mrb[19].mxu0 }
 0x182   : > { %v1352_v16 = vmax.f32 %v1351_v14, 0.0 }
 0x184   : > { %v1353_v17 = vpack.c.bf16 %v1352_v16, %v1352_v16 }
 0x186   : > { %1354 = vst [vmem:[%s340_s17] sm:$0xf] %v1353_v17 }
 0x187 PF: > { %s15_s22 = sadd.s32 1, %s2122_s22   ;;  %s2558_s18 = smov %s2114_s20 }
 0x188   : > { %p12_p10 = scmp.ge.s32.totalorder %s15_s22, 18   ;;  %s2559_s19 = smov %s2118_s21 }
 0x189   : > { %s2560_s20 = smov %s2563_s23  ;;  %s2561_s21 = smov %s2567_s24 }
 0x18a   :  { %14 = sbr.rel (!%p12_p10) target bundleno = 3 (0x3), region = 84 }

// kernel: _lambda_.12
= control target key start
LH: loop header
LB: loop body
LE: loop exit
PB: predicated region body
PF: predicated region fallthrough
CT: control target
= control target key end

     0   :  { %s1655_s18 = smov 0   ;;  %s1657_s19 = smov 0   ;;  %s1907_s0 = inlined_call_operand.vmem [shape: bf16[2,10,10,64], index: 0, kind: input, shape index: {}, may-alias: {0,1,2}]   ;;  %s1908_s1 = inlined_call_operand.vmem [shape: bf16[2,10,10,64], index: 1, kind: input, shape index: {}, may-alias: {0,1,2}]   ;;  %s1909_s2 = inlined_call_operand.vmem [shape: bf16[2,10,10,64], index: 2, kind: input, shape index: {}, may-alias: {0,1,2}]   ;;  %s1910_s3 = inlined_call_operand.vmem [shape: bf16[9,64,128], index: 3, kind: input, shape index: {}]   ;;  %s1911_s4 = inlined_call_operand.vmem [shape: f32[1,128], index: 4, kind: input, shape index: {}]   ;;  %s1912_s5 = inlined_call_operand.vmem [shape: bf16[2,8,8,128], index: 5, kind: output, shape index: {}]  }
   0x1   :  { %s1659_s20 = smov 0   ;;  %s1661_s21 = smov 0  }
   0x2   :  { %s1663_s22 = smov 0  }
   0x3 LB: > { %s24_s23 = sadd.s32 1, %s1613_s20  ;;  %s27_s24 = sadd.s32 1, %s1617_s21  ;;  %s1621_s22 = sphi %s1663_s22, %s15_s22   ;;  %s1617_s21 = sphi %s1661_s21, %s1916_s21   ;;  %s1613_s20 = sphi %s1659_s20, %s1915_s20   ;;  %s1609_s19 = sphi %s1657_s19, %s1914_s19   ;;  %s1605_s18 = sphi %s1655_s18, %s1913_s18  }
   0x4   : > { %p25_p0 = scmp.ge.s32.totalorder %s24_s23, 8  ;;  %p1224_p1 = scmp.ge.s32.totalorder %s1621_s22, 1 }
   0x5   : > { %p247_p2 = scmp.lt.s32.totalorder %s1621_s22, 17 }
   0x6   : > { %s1918_s23 = smov (%p25_p0, %s24_s23), 0  ;;  %s1920_s24 = smov (!%p25_p0, %s27_s24), %s1617_s21 }
   0x7   : > { %p248_p3 = pnand %p1224_p1, %p247_p2  ;;  %p29_p4 = scmp.ge.s32.totalorder %s1920_s24, 2 }
   0x8   : > { %v1544_v0 = vld [vmem:[%s1910_s3 + $0x20] sm:$0xff] (!%p248_p3)   ;;  %v1623_v1 = vmov (!%p248_p3), 0.0   ;;  %v1546_v3 = vld [vmem:[%s1910_s3 + $0x28] sm:$0xff] (!%p248_p3)   ;;  %vm1624_vm0 = vmmov (!%p248_p3), 0   ;;  %p302_p5 = scmp.lt.s32.totalorder (!%p248_p3), %s1609_s19, 1  ;;  %p304_p6 = scmp.lt.s32.totalorder (!%p248_p3), %s1605_s18, 9 }
   0x9   : > { %s1922_s24 = smov (%p29_p4, %s1920_s24), 0  ;;  %251 = sbr.rel (%p248_p3) target bundleno = 317 (0x13d), region = 40 }
   0xa   : > { %1393 = vmatprep.subr.bf16.mxu0 (!%p248_p3), %v1623_v1  ;;  %1405 = vmatprep.subr.bf16.mxu1 (!%p248_p3), %v1623_v1  ;;  %v1545_v2 = vld [vmem:[%s1910_s3] sm:$0xff] (!%p248_p3)   ;;  %v1547_v4 = vld [vmem:[%s1910_s3 + $0x8] sm:$0xff] (!%p248_p3)   ;;  %v1548_v5 = vld [vmem:[%s1910_s3 + $0x30] sm:$0xff] (!%p248_p3)   ;;  %s311_s6 = sadd.s32 (!%p248_p3), 1, %s1605_s18  ;;  %vm401_vm1 = vcmask (!%p248_p3), 523264   ;;  %s322_s28 = sadd.s32 (!%p248_p3), 2, %s1605_s18 }
   0xb   : > { %1394 = vmatpush3.bf16.msra.mxu0 (!%p248_p3), %v1544_v0  ;;  %1401 = vmatprep.mubr.msk.bf16.mxu0 (!%p248_p3), %vm1624_vm0, %v1623_v1  ;;  %v1549_v6 = vld [vmem:[%s1910_s3 + $0x10] sm:$0xff] (!%p248_p3)   ;;  %v1550_v7 = vld [vmem:[%s1910_s3 + $0x38] sm:$0xff] (!%p248_p3)   ;;  %p314_p7 = scmp.lt.s32.totalorder (!%p248_p3), %s311_s6, 9  ;;  %v1554_v14 = vld [vmem:[%s1910_s3 + $0x60] sm:$0xff] (!%p248_p3)   ;;  %p325_p8 = scmp.lt.s32.totalorder (!%p248_p3), %s322_s28, 9 }
   0xc   : > { %1406 = vmatpush3.bf16.msra.mxu1 (!%p248_p3), %v1545_v2  ;;  %1395 = vmatprep.subr.bf16.mxu0 (!%p248_p3), %v1623_v1  ;;  %v1551_v8 = vld [vmem:[%s1910_s3 + $0x18] sm:$0xff] (!%p248_p3)   ;;  %v1553_v16 = vld [vmem:[%s1910_s3 + $0x40] sm:$0xff] (!%p248_p3)   ;;  %v1556_v18 = vld [vmem:[%s1910_s3 + $0x68] sm:$0xff] (!%p248_p3)   ;;  %p335_p9 = scmp.lt.s32.totalorder (!%p248_p3), %s1605_s18, 7 }
   0xd   : > { %1407 = vmatprep.subr.bf16.mxu1 (!%p248_p3), %v1623_v1  ;;  %1413 = vmatprep.mubr.msk.bf16.mxu1 (!%p248_p3), %vm1624_vm0, %v1623_v1  ;;  %v1555_v19 = vld [vmem:[%s1910_s3 + $0x48] sm:$0xff] (!%p248_p3)   ;;  %v1558_v20 = vld [vmem:[%s1910_s3 + $0x70] sm:$0xff] (!%p248_p3)   ;;  %v1560_v22 = vld [vmem:[%s1910_s3 + $0x78] sm:$0xff] (!%p248_p3)  }
   0xe   : > { %v1557_v21 = vld [vmem:[%s1910_s3 + $0x50] sm:$0xff] (!%p248_p3)   ;;  %v1559_v23 = vld [vmem:[%s1910_s3 + $0x58] sm:$0xff] (!%p248_p3)   ;;  %v1563_v25 = vld [vmem:[%s1910_s3 + $0xa0] sm:$0xff] (!%p248_p3)  }
   0xf   : > { %1396 = vmatpush3.bf16.msra.mxu0 (!%p248_p3), %v1546_v3  ;;  %v1561_v27 = vld [vmem:[%s1910_s3 + $0x80] sm:$0xff] (!%p248_p3)   ;;  %v1565_v29 = vld [vmem:[%s1910_s3 + $0xa8] sm:$0xff] (!%p248_p3)   ;;  %v1567_v32 = vld [vmem:[%s1910_s3 + $0xb0] sm:$0xff] (!%p248_p3)  }
  0x10   : > { %s1924_s19 = smov (!%p302_p5, %s1609_s19), 1  ;;  %1408 = vmatpush3.bf16.msra.mxu1 %v1547_v4  ;;  %1397 = vmatprep.subr.bf16.mxu0 %v1623_v1  ;;  %s1926_s6 = smov (!%p314_p7, %s311_s6), 9  ;;  %v1564_v31 = vld [vmem:[%s1910_s3 + $0x88] sm:$0xff]   ;;  %v1566_v34 = vld [vmem:[%s1910_s3 + $0x90] sm:$0xff]   ;;  %v1569_v35 = vld [vmem:[%s1910_s3 + $0xb8] sm:$0xff]  }
  0x11   : > { %s305_s8 = scalar_select %p304_p6, %s1605_s18, 9  ;;  %1409 = vmatprep.subr.bf16.mxu1 %v1623_v1  ;;  %v1568_v38 = vld [vmem:[%s1910_s3 + $0x98] sm:$0xff]   ;;  %v1571_v40 = vld [vmem:[%s1910_s3 + $0xe0] sm:$0xff]   ;;  %v1573_v46 = vld [vmem:[%s1910_s3 + $0xe8] sm:$0xff]  }
  0x12   : > { %s1719_s11 = smul.u32 20, %s1924_s19  ;;  %s1928_s28 = smov (!%p325_p8, %s322_s28), 9  ;;  %v1570_v44 = vld [vmem:[%s1910_s3 + $0xc0] sm:$0xff]   ;;  %v1572_v47 = vld [vmem:[%s1910_s3 + $0xc8] sm:$0xff]   ;;  %v1575_v49 = vld [vmem:[%s1910_s3 + $0xf0] sm:$0xff]  }
  0x13   : > { %s1225_s14 = sshll.u32 %s305_s8, 1  ;;  %1398 = vmatpush3.bf16.msra.mxu0 %v1548_v5  ;;  %v1574_v50 = vld [vmem:[%s1910_s3 + $0xd0] sm:$0xff]   ;;  %v1577_v53 = vld [vmem:[%s1910_s3 + $0xf8] sm:$0xff]   ;;  %v1579_v56 = vld [vmem:[%s1910_s3 + $0x100] sm:$0xff]   ;;  %s1930_s18 = smov (!%p335_p9, %s1605_s18), 7 }
  0x14   : > { %s308_s15 = sadd.s32 %s1719_s11, %s1225_s14  ;;  %1410 = vmatpush3.bf16.msra.mxu1 %v1549_v6  ;;  %1399 = vmatprep.subr.bf16.mxu0 %v1623_v1  ;;  %s1227_s14 = sshll.u32 %s1926_s6, 1  ;;  %v1576_v54 = vld [vmem:[%s1910_s3 + $0xd8] sm:$0xff]   ;;  %v1580_v57 = vld [vmem:[%s1910_s3 + $0x108] sm:$0xff]   ;;  %v1581_v58 = vld [vmem:[%s1910_s3 + $0x110] sm:$0xff]  }
  0x15   : > { %s1226_s25 = sshll.u32 %s308_s15, 2  ;;  %1411 = vmatprep.subr.bf16.mxu1 %v1623_v1  ;;  %s318_s17 = sadd.s32 %s1719_s11, %s1227_s14  ;;  %v1582_v59 = vld [vmem:[%s1910_s3 + $0x118] sm:$0xff]  }
  0x16   : > { %s310_s30 = scalar_lea.vmem %s1907_s0, %s1226_s25  ;;  %s1228_s27 = sshll.u32 %s318_s17, 2 }
  0x17   : > { %v342_v9 = vld [vmem:[%s310_s30] sm:$0xf]  ;;  %v343_v10 = vld [vmem:[%s310_s30 + $0x4] sm:$0x1]  ;;  %1400 = vmatpush3.bf16.msra.mxu0 %v1550_v7  ;;  %s320_s10 = scalar_lea.vmem %s1908_s1, %s1228_s27  ;;  %s1229_s27 = sshll.u32 %s1928_s28, 1 }
  0x18   : > { %v1241_v11 = vcombine.low %v342_v9, %v343_v10  ;;  %1412 = vmatpush3.bf16.msra.mxu1 %v1551_v8  ;;  %1417 = vmatprep.subr.bf16.mxu0 %v1623_v1  ;;  %v344_v24 = vld [vmem:[%s320_s10] sm:$0xf]  ;;  %v345_v28 = vld [vmem:[%s320_s10 + $0x4] sm:$0x1]  ;;  %s329_s6 = sadd.s32 %s1719_s11, %s1229_s27  ;;  %s1231_s7 = sshll.u32 %s1924_s19, 3 }
  0x19   : > { %1429 = vmatprep.subr.bf16.mxu1 %v1623_v1  ;;  %v1286_v30 = vcombine.low %v344_v24, %v345_v28  ;;  %s1230_s10 = sshll.u32 %s329_s6, 2  ;;  %s338_s8 = sadd.s32 %s1231_s7, %s1930_s18 }
  0x1a   : > { %v371_v12 = vshrl.u32 %v1241_v11, 16  ;;  %v373_v13 = vshll.u32 %v1241_v11, 16  ;;  %v521_v26 = vrot.slane %v1241_v11, 1  ;;  %s331_s15 = scalar_lea.vmem %s1909_s2, %s1230_s10  ;;  %s1232_s10 = sshll.u32 %s338_s8, 2 }
  0x1b   : > { %1414 = vmatmul.mubr.msk.bf16.vlgmr.msra.gmra.mrb[0].mxu1 %vm401_vm1, %v342_v9  ;;  %v684_v33 = vshll.u32 %v1286_v30, 16  ;;  %v682_v36 = vshrl.u32 %v1286_v30, 16  ;;  %v765_v39 = vrot.slane %v1286_v30, 1  ;;  %v346_v41 = vld [vmem:[%s331_s15] sm:$0xf]  ;;  %s340_s11 = scalar_lea.vmem %s1912_s5, %s1232_s10 }
  0x1c   : > { %v375_v15 = vrot.slane %v373_v13, 1  ;;  %1430 = vmatpush3.bf16.msra.mxu1 %v1554_v14  ;;  %1437 = vmatprep.mubr.msk.bf16.mxu1 %vm1624_vm0, %v1623_v1  ;;  %v347_v42 = vld [vmem:[%s331_s15 + $0x4] sm:$0x1] }
  0x1d   : > { %1431 = vmatprep.subr.bf16.mxu1 %v1623_v1  ;;  %v686_v37 = vrot.slane %v684_v33, 1  ;;  %v1326_v45 = vcombine.low %v346_v41, %v347_v42 }
  0x1e   : > { %v376_v17 = vor.u32 %v375_v15, %v371_v12 }
  0x1f   : > { %v687_v43 = vor.u32 %v686_v37, %v682_v36  ;;  %v928_v48 = vshll.u32 %v1326_v45, 16  ;;  %v926_v51 = vshrl.u32 %v1326_v45, 16  ;;  %v1009_v60 = vrot.slane %v1326_v45, 1  ;;  %v1345_v37 = vld [vmem:[%s1911_s4] ss:$0 sm:$0xff] }
  0x20   : > { %1402 = vmatmul.mubr.msk.bf16.vlgmr.msra.gmra.mrb[0].mxu0 %vm401_vm1, %v376_v17  ;;  %1432 = vmatpush3.bf16.msra.mxu1 %v1556_v18 }
  0x21   : > { %1418 = vmatpush3.bf16.msra.mxu0 %v1553_v16  ;;  %1425 = vmatprep.mubr.msk.bf16.mxu0 %vm1624_vm0, %v1623_v1  ;;  %v930_v52 = vrot.slane %v928_v48, 1 }
  0x22   : > { %1419 = vmatprep.subr.bf16.mxu0 %v1623_v1  ;;  %1433 = vmatprep.subr.bf16.mxu1 %v1623_v1 }
  0x23   : > { %v931_v55 = vor.u32 %v930_v52, %v926_v51 }
  0x24   : > { %1434 = vmatpush3.bf16.msra.mxu1 %v1558_v20 }
  0x25   : > { %1420 = vmatpush3.bf16.msra.mxu0 %v1555_v19  ;;  %1435 = vmatprep.subr.bf16.mxu1 %v1623_v1 }
  0x26   : > { %1421 = vmatprep.subr.bf16.mxu0 %v1623_v1 }
  0x28   : > { %1436 = vmatpush3.bf16.msra.mxu1 %v1560_v22 }
  0x29   : > { %1422 = vmatpush3.bf16.msra.mxu0 %v1557_v21  ;;  %1453 = vmatprep.subr.bf16.mxu1 %v1623_v1 }
  0x2a   : > { %1423 = vmatprep.subr.bf16.mxu0 %v1623_v1 }
  0x2b   : > { %1438 = vmatmul.mubr.msk.bf16.vlgmr.msra.gmra.mrb[4].mxu1 %vm401_vm1, %v344_v24 }
  0x2c   : > { %1454 = vmatpush3.bf16.msra.mxu1 %v1563_v25  ;;  %1461 = vmatprep.mubr.msk.bf16.mxu1 %vm1624_vm0, %v1623_v1 }
  0x2d   : > { %1424 = vmatpush3.bf16.msra.mxu0 %v1559_v23  ;;  %1455 = vmatprep.subr.bf16.mxu1 %v1623_v1 }
  0x2e   : > { %1441 = vmatprep.subr.bf16.mxu0 %v1623_v1 }
  0x30   : > { %1426 = vmatmul.mubr.msk.bf16.vlgmr.msra.gmra.mrb[4].mxu0 %vm401_vm1, %v521_v26  ;;  %1456 = vmatpush3.bf16.msra.mxu1 %v1565_v29 }
  0x31   : > { %1442 = vmatpush3.bf16.msra.mxu0 %v1561_v27  ;;  %1449 = vmatprep.mubr.msk.bf16.mxu0 %vm1624_vm0, %v1623_v1 }
  0x32   : > { %1443 = vmatprep.subr.bf16.mxu0 %v1623_v1  ;;  %1457 = vmatprep.subr.bf16.mxu1 %v1623_v1 }
  0x34   : > { %1458 = vmatpush3.bf16.msra.mxu1 %v1567_v32 }
  0x35   : > { %1444 = vmatpush3.bf16.msra.mxu0 %v1564_v31  ;;  %1459 = vmatprep.subr.bf16.mxu1 %v1623_v1 }
  0x36   : > { %1445 = vmatprep.subr.bf16.mxu0 %v1623_v1 }
  0x38   : > { %1460 = vmatpush3.bf16.msra.mxu1 %v1569_v35 }
  0x39   : > { %1446 = vmatpush3.bf16.msra.mxu0 %v1566_v34  ;;  %1477 = vmatprep.subr.bf16.mxu1 %v1623_v1 }
  0x3a   : > { %1447 = vmatprep.subr.bf16.mxu0 %v1623_v1 }
  0x3b   : > { %1462 = vmatmul.mubr.msk.bf16.vlgmr.msra.gmra.mrb[8].mxu1 %vm401_vm1, %v765_v39 }
  0x3c   : > { %1478 = vmatpush3.bf16.msra.mxu1 %v1571_v40  ;;  %1485 = vmatprep.mubr.msk.bf16.mxu1 %vm1624_vm0, %v1623_v1 }
  0x3d   : > { %1448 = vmatpush3.bf16.msra.mxu0 %v1568_v38  ;;  %1479 = vmatprep.subr.bf16.mxu1 %v1623_v1 }
  0x3e   : > { %1465 = vmatprep.subr.bf16.mxu0 %v1623_v1 }
  0x40   : > { %1450 = vmatmul.mubr.msk.bf16.vlgmr.msra.gmra.mrb[8].mxu0 %vm401_vm1, %v687_v43  ;;  %1480 = vmatpush3.bf16.msra.mxu1 %v1573_v46 }
  0x41   : > { %1466 = vmatpush3.bf16.msra.mxu0 %v1570_v44  ;;  %1473 = vmatprep.mubr.msk.bf16.mxu0 %vm1624_vm0, %v1623_v1 }
  0x42   : > { %1467 = vmatprep.subr.bf16.mxu0 %v1623_v1  ;;  %1481 = vmatprep.subr.bf16.mxu1 %v1623_v1 }
  0x44   : > { %1482 = vmatpush3.bf16.msra.mxu1 %v1575_v49 }
  0x45   : > { %1468 = vmatpush3.bf16.msra.mxu0 %v1572_v47  ;;  %1483 = vmatprep.subr.bf16.mxu1 %v1623_v1 }
  0x46   : > { %1469 = vmatprep.subr.bf16.mxu0 %v1623_v1 }
  0x48   : > { %1484 = vmatpush3.bf16.msra.mxu1 %v1577_v53 }
  0x49   : > { %1470 = vmatpush3.bf16.msra.mxu0 %v1574_v50 }
  0x4a   : > { %1471 = vmatprep.subr.bf16.mxu0 %v1623_v1 }
  0x4b   : > { %1486 = vmatmul.mubr.msk.bf16.vlgmr.msra.gmra.mrb[12].mxu1 %vm401_vm1, %v931_v55 }
  0x4d   : > { %1472 = vmatpush3.bf16.msra.mxu0 %v1576_v54 }
  0x4e   : > { %1489 = vmatprep.subr.bf16.mxu0 %v1623_v1 }
  0x50   : > { %1474 = vmatmul.mubr.msk.bf16.vlgmr.msra.gmra.mrb[12].mxu0 %vm401_vm1, %v346_v41 }
  0x51   : > { %1490 = vmatpush3.bf16.msra.mxu0 %v1579_v56  ;;  %1497 = vmatprep.mubr.msk.bf16.mxu0 %vm1624_vm0, %v1623_v1 }
  0x52   : > { %1491 = vmatprep.subr.bf16.mxu0 %v1623_v1 }
  0x55   : > { %1492 = vmatpush3.bf16.msra.mxu0 %v1580_v57 }
  0x56   : > { %1493 = vmatprep.subr.bf16.mxu0 %v1623_v1 }
  0x59   : > { %1494 = vmatpush3.bf16.msra.mxu0 %v1581_v58 }
  0x5a   : > { %1495 = vmatprep.subr.bf16.mxu0 %v1623_v1 }
  0x5d   : > { %1496 = vmatpush3.bf16.msra.mxu0 %v1582_v59 }
  0x60   : > { %1498 = vmatmul.mubr.msk.bf16.vlgmr.msra.gmra.mrb[16].mxu0 %vm401_vm1, %v1009_v60 }
  0xee   : > { %v506_v61 = vpop.f32.mrb[0].mxu1 }
  0xef   : > { %v1415_v62 = vpop.f32.mrb[1].mxu1 }
  0xf0   : > { %v509_v0 = vpop.f32.mrb[2].mxu1 }
  0xf1   : > { %v1416_v4 = vpop.f32.mrb[3].mxu1 }
  0xf3   : > { %v439_v63 = vpop.f32.mrb[0].mxu0 }
  0xf4   : > { %v1403_v2 = vpop.f32.mrb[1].mxu0  ;;  %v507_v3 = vadd.f32 %v506_v61, %v439_v63 }
  0xf5   : > { %v442_v5 = vpop.f32.mrb[2].mxu0 }
  0xf6   : > { %v1404_v6 = vpop.f32.mrb[3].mxu0 }
  0xfe   : > { %v660_v7 = vpop.f32.mrb[4].mxu1 }
  0xff   : > { %v1439_v8 = vpop.f32.mrb[5].mxu1 }
 0x100   : > { %v663_v10 = vpop.f32.mrb[6].mxu1 }
 0x101   : > { %v1440_v1 = vpop.f32.mrb[7].mxu1 }
 0x103   : > { %v583_v9 = vpop.f32.mrb[4].mxu0 }
 0x104   : > { %v589_v11 = vadd.f32 %v583_v9, %v507_v3  ;;  %v1427_v12 = vpop.f32.mrb[5].mxu0 }
 0x105   : > { %v586_v13 = vpop.f32.mrb[6].mxu0 }
 0x106   : > { %v666_v14 = vadd.f32 %v660_v7, %v589_v11  ;;  %v1428_v15 = vpop.f32.mrb[7].mxu0 }
 0x10e   : > { %v827_v16 = vpop.f32.mrb[8].mxu1 }
 0x10f   : > { %v1463_v17 = vpop.f32.mrb[9].mxu1 }
 0x110   : > { %v830_v19 = vpop.f32.mrb[10].mxu1 }
 0x111   : > { %v1464_v22 = vpop.f32.mrb[11].mxu1 }
 0x113   : > { %v749_v18 = vpop.f32.mrb[8].mxu0 }
 0x114   : > { %v755_v20 = vadd.f32 %v749_v18, %v666_v14  ;;  %v1451_v21 = vpop.f32.mrb[9].mxu0 }
 0x115   : > { %v752_v23 = vpop.f32.mrb[10].mxu0 }
 0x116   : > { %v833_v24 = vadd.f32 %v827_v16, %v755_v20  ;;  %v1452_v25 = vpop.f32.mrb[11].mxu0 }
 0x11e   : > { %v993_v26 = vpop.f32.mrb[12].mxu1 }
 0x11f   : > { %v1487_v27 = vpop.f32.mrb[13].mxu1 }
 0x120   : > { %v996_v29 = vpop.f32.mrb[14].mxu1 }
 0x121   : > { %v1488_v32 = vpop.f32.mrb[15].mxu1 }
 0x123   : > { %v904_v28 = vpop.f32.mrb[12].mxu0 }
 0x124   : > { %v910_v30 = vadd.f32 %v904_v28, %v833_v24  ;;  %v1475_v31 = vpop.f32.mrb[13].mxu0 }
 0x125   : > { %v907_v33 = vpop.f32.mrb[14].mxu0 }
 0x126   : > { %v999_v34 = vadd.f32 %v993_v26, %v910_v30  ;;  %v1476_v35 = vpop.f32.mrb[15].mxu0 }
 0x133   : > { %v1071_v36 = vpop.f32.mrb[16].mxu0 }
 0x134   : > { %v1077_v38 = vadd.f32 %v1071_v36, %v999_v34  ;;  %v1499_v39 = vpop.f32.mrb[17].mxu0 }
 0x135   : > { %v1074_v40 = vpop.f32.mrb[18].mxu0 }
 0x136   : > { %v1085_v41 = vadd.f32 %v1345_v37, %v1077_v38  ;;  %v1500_v42 = vpop.f32.mrb[19].mxu0 }
 0x138   : > { %v1086_v43 = vmax.f32 %v1085_v41, 0.0 }
 0x13a   : > { %v1087_v44 = vpack.c.bf16 %v1086_v43, %v1086_v43 }
 0x13c   : > { %1088 = vst [vmem:[%s340_s11] sm:$0xf] %v1087_v44 }
 0x13d PF: > { %s15_s22 = sadd.s32 1, %s1621_s22   ;;  %s1913_s18 = smov %s1613_s20 }
 0x13e   : > { %p12_p10 = scmp.ge.s32.totalorder %s15_s22, 18   ;;  %s1914_s19 = smov %s1617_s21 }
 0x13f   : > { %s1915_s20 = smov %s1918_s23  ;;  %s1916_s21 = smov %s1922_s24 }
 0x140   :  { %14 = sbr.rel (!%p12_p10) target bundleno = 3 (0x3), region = 84 }

// kernel: _lambda_.15
= control target key start
LH: loop header
LB: loop body
LE: loop exit
PB: predicated region body
PF: predicated region fallthrough
CT: control target
= control target key end

     0   :  { %s2412_s18 = smov 0   ;;  %s2414_s19 = smov 0   ;;  %s2946_s0 = inlined_call_operand.vmem [shape: bf16[2,6,6,128], index: 0, kind: input, shape index: {}, may-alias: {0,1,2}]   ;;  %s2947_s1 = inlined_call_operand.vmem [shape: bf16[2,6,6,128], index: 1, kind: input, shape index: {}, may-alias: {0,1,2}]   ;;  %s2948_s2 = inlined_call_operand.vmem [shape: bf16[2,6,6,128], index: 2, kind: input, shape index: {}, may-alias: {0,1,2}]   ;;  %s2949_s3 = inlined_call_operand.vmem [shape: bf16[9,128,256], index: 3, kind: input, shape index: {}]   ;;  %s2950_s4 = inlined_call_operand.vmem [shape: f32[1,256], index: 4, kind: input, shape index: {}]   ;;  %s2951_s5 = inlined_call_operand.vmem [shape: bf16[2,4,4,256], index: 5, kind: output, shape index: {}]  }
   0x1   :  { %s2416_s20 = smov 0   ;;  %s2418_s21 = smov 0  }
   0x2   :  { %s2420_s22 = smov 0  }
   0x3 LB: > { %s24_s23 = sadd.s32 1, %s2371_s20  ;;  %s27_s24 = sadd.s32 1, %s2375_s21  ;;  %s2379_s22 = sphi %s2420_s22, %s15_s22   ;;  %s2375_s21 = sphi %s2418_s21, %s2955_s21   ;;  %s2371_s20 = sphi %s2416_s20, %s2954_s20   ;;  %s2367_s19 = sphi %s2414_s19, %s2953_s19   ;;  %s2363_s18 = sphi %s2412_s18, %s2952_s18  }
   0x4   : > { %p25_p0 = scmp.ge.s32.totalorder %s24_s23, 4  ;;  %p1794_p1 = scmp.ge.s32.totalorder %s2379_s22, 1 }
   0x5   : > { %p244_p2 = scmp.lt.s32.totalorder %s2379_s22, 9 }
   0x6   : > { %s2957_s23 = smov (%p25_p0, %s24_s23), 0  ;;  %s2959_s24 = smov (!%p25_p0, %s27_s24), %s2375_s21 }
   0x7   : > { %p245_p3 = pnand %p1794_p1, %p244_p2  ;;  %p29_p4 = scmp.ge.s32.totalorder %s2959_s24, 2 }
   0x8   : > { %v2122_v0 = vld [vmem:[%s2949_s3 + $0x84] ss:$8 sps:$4 sm:$0xff] (!%p245_p3)   ;;  %p297_p5 = scmp.lt.s32.totalorder (!%p245_p3), %s2367_s19, 1  ;;  %v2381_v2 = vmov (!%p245_p3), 0   ;;  %v2126_v3 = vld [vmem:[%s2949_s3 + $0x80] ss:$8 sps:$4 sm:$0xff] (!%p245_p3)  }
   0x9   : > { %s2961_s24 = smov (%p29_p4, %s2959_s24), 0  ;;  %248 = sbr.rel (%p245_p3) target bundleno = 393 (0x189), region = 40 }
   0xa   : > { %v2124_v1 = vld [vmem:[%s2949_s3 + $0x4] ss:$8 sps:$4 sm:$0xff] (!%p245_p3)   ;;  %494 = vmatprep.mubr.bf16.mxu0 (!%p245_p3), %v2381_v2  ;;  %615 = vmatprep.mubr.bf16.mxu1 (!%p245_p3), %v2381_v2  ;;  %v2127_v4 = vld [vmem:[%s2949_s3] ss:$8 sps:$4 sm:$0xff] (!%p245_p3)   ;;  %p299_p6 = scmp.lt.s32.totalorder (!%p245_p3), %s2363_s18, 5  ;;  %s305_s17 = sadd.s32 (!%p245_p3), 1, %s2363_s18 }
   0xb   : > { %462 = vmatprep.subr.bf16.mxu0 (!%p245_p3), %v2122_v0  ;;  %583 = vmatprep.subr.bf16.mxu1 (!%p245_p3), %v2124_v1  ;;  %v2128_v5 = vld [vmem:[%s2949_s3 + $0x94] ss:$8 sps:$4 sm:$0xff] (!%p245_p3)   ;;  %v2132_v7 = vld [vmem:[%s2949_s3 + $0x90] ss:$8 sps:$4 sm:$0xff] (!%p245_p3)   ;;  %v2134_v9 = vld [vmem:[%s2949_s3 + $0xa4] ss:$8 sps:$4 sm:$0xff] (!%p245_p3)  }
   0xc   : > { %463 = vmatpush1.bf16.msra.mxu0 (!%p245_p3), %v2126_v3  ;;  %584 = vmatpush1.bf16.msra.mxu1 (!%p245_p3), %v2127_v4  ;;  %v2130_v6 = vld [vmem:[%s2949_s3 + $0x14] ss:$8 sps:$4 sm:$0xff] (!%p245_p3)   ;;  %v2133_v8 = vld [vmem:[%s2949_s3 + $0x10] ss:$8 sps:$4 sm:$0xff] (!%p245_p3)   ;;  %v2136_v10 = vld [vmem:[%s2949_s3 + $0x24] ss:$8 sps:$4 sm:$0xff] (!%p245_p3)  }
   0xd   : > { %464 = vmatprep.subr.bf16.mxu0 (!%p245_p3), %v2128_v5  ;;  %585 = vmatprep.subr.bf16.mxu1 (!%p245_p3), %v2130_v6  ;;  %v2138_v11 = vld [vmem:[%s2949_s3 + $0xa0] ss:$8 sps:$4 sm:$0xff] (!%p245_p3)   ;;  %v2140_v13 = vld [vmem:[%s2949_s3 + $0xb4] ss:$8 sps:$4 sm:$0xff] (!%p245_p3)   ;;  %v2144_v15 = vld [vmem:[%s2949_s3 + $0xb0] ss:$8 sps:$4 sm:$0xff] (!%p245_p3)  }
   0xe   : > { %v2139_v12 = vld [vmem:[%s2949_s3 + $0x20] ss:$8 sps:$4 sm:$0xff] (!%p245_p3)   ;;  %v2142_v14 = vld [vmem:[%s2949_s3 + $0x34] ss:$8 sps:$4 sm:$0xff] (!%p245_p3)   ;;  %v2145_v16 = vld [vmem:[%s2949_s3 + $0x30] ss:$8 sps:$4 sm:$0xff] (!%p245_p3)  }
   0xf   : > { %v2146_v17 = vld [vmem:[%s2949_s3 + $0xc4] ss:$8 sps:$4 sm:$0xff] (!%p245_p3)   ;;  %v2150_v19 = vld [vmem:[%s2949_s3 + $0xc0] ss:$8 sps:$4 sm:$0xff] (!%p245_p3)   ;;  %v2152_v21 = vld [vmem:[%s2949_s3 + $0xd4] ss:$8 sps:$4 sm:$0xff] (!%p245_p3)  }
  0x10   : > { %s2963_s19 = smov (!%p297_p5, %s2367_s19), 1  ;;  %465 = vmatpush1.bf16.msra.mxu0 %v2132_v7  ;;  %586 = vmatpush1.bf16.msra.mxu1 %v2133_v8  ;;  %v2148_v18 = vld [vmem:[%s2949_s3 + $0x44] ss:$8 sps:$4 sm:$0xff]   ;;  %v2151_v20 = vld [vmem:[%s2949_s3 + $0x40] ss:$8 sps:$4 sm:$0xff]   ;;  %p308_p7 = scmp.lt.s32.totalorder %s305_s17, 5 }
  0x11   : > { %s300_s25 = scalar_select %p299_p6, %s2363_s18, 5  ;;  %466 = vmatprep.subr.bf16.mxu0 %v2134_v9  ;;  %587 = vmatprep.subr.bf16.mxu1 %v2136_v10  ;;  %v2154_v22 = vld [vmem:[%s2949_s3 + $0x54] ss:$8 sps:$4 sm:$0xff]   ;;  %v2156_v23 = vld [vmem:[%s2949_s3 + $0xd0] ss:$8 sps:$4 sm:$0xff]  }
  0x12   : > { %s2496_s9 = smul.u32 6, %s2963_s19  ;;  %v2157_v24 = vld [vmem:[%s2949_s3 + $0x50] ss:$8 sps:$4 sm:$0xff]   ;;  %v2158_v25 = vld [vmem:[%s2949_s3 + $0xe4] ss:$8 sps:$4 sm:$0xff]   ;;  %s2965_s17 = smov (!%p308_p7, %s305_s17), 5 }
  0x13   : > { %v2160_v26 = vld [vmem:[%s2949_s3 + $0x64] ss:$8 sps:$4 sm:$0xff]   ;;  %v2162_v29 = vld [vmem:[%s2949_s3 + $0xe0] ss:$8 sps:$4 sm:$0xff]   ;;  %v2164_v32 = vld [vmem:[%s2949_s3 + $0xf4] ss:$8 sps:$4 sm:$0xff]  }
  0x14   : > { %467 = vmatpush1.bf16.msra.mxu0 %v2138_v11  ;;  %588 = vmatpush1.bf16.msra.mxu1 %v2139_v12  ;;  %s302_s26 = sadd.s32 %s2496_s9, %s300_s25  ;;  %v2163_v30 = vld [vmem:[%s2949_s3 + $0x60] ss:$8 sps:$4 sm:$0xff]   ;;  %v2166_v33 = vld [vmem:[%s2949_s3 + $0x74] ss:$8 sps:$4 sm:$0xff]   ;;  %v2168_v34 = vld [vmem:[%s2949_s3 + $0xf0] ss:$8 sps:$4 sm:$0xff]   ;;  %s311_s30 = sadd.s32 %s2496_s9, %s2965_s17 }
  0x15   : > { %468 = vmatprep.subr.bf16.mxu0 %v2140_v13  ;;  %589 = vmatprep.subr.bf16.mxu1 %v2142_v14  ;;  %s1795_s8 = sshll.u32 %s302_s26, 2  ;;  %v2169_v37 = vld [vmem:[%s2949_s3 + $0x70] ss:$8 sps:$4 sm:$0xff]   ;;  %v2173_v38 = vld [vmem:[%s2949_s3 + $0x104] ss:$8 sps:$4 sm:$0xff]   ;;  %s1796_s17 = sshll.u32 %s311_s30, 2 }
  0x16   : > { %s304_s15 = scalar_lea.vmem %s2946_s0, %s1795_s8  ;;  %v2176_v39 = vld [vmem:[%s2949_s3 + $0x184] ss:$8 sps:$4 sm:$0xff]   ;;  %v2171_v41 = vld [vmem:[%s2949_s3 + $0x100] ss:$8 sps:$4 sm:$0xff]   ;;  %v2179_v43 = vld [vmem:[%s2949_s3 + $0x114] ss:$8 sps:$4 sm:$0xff]   ;;  %s313_s30 = scalar_lea.vmem %s2947_s1, %s1796_s17 }
  0x17   : > { %v335_v27 = vld [vmem:[%s304_s15] sm:$0x7]  ;;  %v2182_v44 = vld [vmem:[%s2949_s3 + $0x194] ss:$8 sps:$4 sm:$0xff]   ;;  %v2177_v45 = vld [vmem:[%s2949_s3 + $0x110] ss:$8 sps:$4 sm:$0xff]  }
  0x18   : > { %469 = vmatpush1.bf16.msra.mxu0 %v2144_v15  ;;  %590 = vmatpush1.bf16.msra.mxu1 %v2145_v16  ;;  %v2541_v28 = vcombine.low %v335_v27, %v335_v27  ;;  %v2174_v42 = vld [vmem:[%s2949_s3 + $0x180] ss:$8 sps:$4 sm:$0xff]   ;;  %v2180_v46 = vld [vmem:[%s2949_s3 + $0x190] ss:$8 sps:$4 sm:$0xff]   ;;  %v2185_v47 = vld [vmem:[%s2949_s3 + $0x124] ss:$8 sps:$4 sm:$0xff]  }
  0x19   : > { %470 = vmatprep.subr.bf16.mxu0 %v2146_v17  ;;  %591 = vmatprep.subr.bf16.mxu1 %v2148_v18  ;;  %v2188_v48 = vld [vmem:[%s2949_s3 + $0x1a4] ss:$8 sps:$4 sm:$0xff]   ;;  %v2183_v49 = vld [vmem:[%s2949_s3 + $0x120] ss:$8 sps:$4 sm:$0xff]   ;;  %v2191_v51 = vld [vmem:[%s2949_s3 + $0x134] ss:$8 sps:$4 sm:$0xff]  }
  0x1a   : > { %v377_v31 = vshll.u32 %v2541_v28, 16  ;;  %v375_v35 = vshrl.u32 %v2541_v28, 16  ;;  %v2186_v50 = vld [vmem:[%s2949_s3 + $0x1a0] ss:$8 sps:$4 sm:$0xff]   ;;  %v2194_v52 = vld [vmem:[%s2949_s3 + $0x1b4] ss:$8 sps:$4 sm:$0xff]  }
  0x1b   : > { %v2189_v53 = vld [vmem:[%s2949_s3 + $0x130] ss:$8 sps:$4 sm:$0xff]   ;;  %v2197_v55 = vld [vmem:[%s2949_s3 + $0x144] ss:$8 sps:$4 sm:$0xff]   ;;  %v2195_v57 = vld [vmem:[%s2949_s3 + $0x140] ss:$8 sps:$4 sm:$0xff]  }
  0x1c   : > { %471 = vmatpush1.bf16.msra.mxu0 %v2150_v19  ;;  %592 = vmatpush1.bf16.msra.mxu1 %v2151_v20  ;;  %v379_v36 = vrot.slane %v377_v31, 1  ;;  %v2192_v54 = vld [vmem:[%s2949_s3 + $0x1b0] ss:$8 sps:$4 sm:$0xff]   ;;  %v2200_v56 = vld [vmem:[%s2949_s3 + $0x1c4] ss:$8 sps:$4 sm:$0xff]   ;;  %v641_v10 = vrot.slane %v2541_v28, 1 }
  0x1d   : > { %472 = vmatprep.subr.bf16.mxu0 %v2152_v21  ;;  %593 = vmatprep.subr.bf16.mxu1 %v2154_v22  ;;  %v2198_v58 = vld [vmem:[%s2949_s3 + $0x1c0] ss:$8 sps:$4 sm:$0xff]   ;;  %v2203_v59 = vld [vmem:[%s2949_s3 + $0x154] ss:$8 sps:$4 sm:$0xff]   ;;  %v2201_v61 = vld [vmem:[%s2949_s3 + $0x150] ss:$8 sps:$4 sm:$0xff]  }
  0x1e   : > { %v380_v40 = vor.u32 %v379_v36, %v375_v35  ;;  %v2206_v60 = vld [vmem:[%s2949_s3 + $0x1d4] ss:$8 sps:$4 sm:$0xff]   ;;  %v2204_v62 = vld [vmem:[%s2949_s3 + $0x1d0] ss:$8 sps:$4 sm:$0xff]   ;;  %v2209_v63 = vld [vmem:[%s2949_s3 + $0x164] ss:$8 sps:$4 sm:$0xff]  }
  0x1f   : > { %v2212_v0 = vld [vmem:[%s2949_s3 + $0x1e4] ss:$8 sps:$4 sm:$0xff]   ;;  %v2207_v1 = vld [vmem:[%s2949_s3 + $0x160] ss:$8 sps:$4 sm:$0xff]   ;;  %v2215_v4 = vld [vmem:[%s2949_s3 + $0x174] ss:$8 sps:$4 sm:$0xff]  }
  0x20   : > { %473 = vmatpush1.bf16.msra.mxu0 %v2156_v23  ;;  %594 = vmatpush1.bf16.msra.mxu1 %v2157_v24  ;;  %v2210_v3 = vld [vmem:[%s2949_s3 + $0x1e0] ss:$8 sps:$4 sm:$0xff]   ;;  %v2218_v5 = vld [vmem:[%s2949_s3 + $0x1f4] ss:$8 sps:$4 sm:$0xff]   ;;  %v2213_v6 = vld [vmem:[%s2949_s3 + $0x170] ss:$8 sps:$4 sm:$0xff]  }
  0x21   : > { %474 = vmatprep.subr.bf16.mxu0 %v2158_v25  ;;  %595 = vmatprep.subr.bf16.mxu1 %v2160_v26  ;;  %v2216_v7 = vld [vmem:[%s2949_s3 + $0x1f0] ss:$8 sps:$4 sm:$0xff]   ;;  %v2221_v8 = vld [vmem:[%s2949_s3 + $0x204] ss:$8 sps:$4 sm:$0xff]   ;;  %v2219_v11 = vld [vmem:[%s2949_s3 + $0x200] ss:$8 sps:$4 sm:$0xff]  }
  0x22   : > { %v2225_v9 = vld [vmem:[%s2949_s3 + $0x284] ss:$8 sps:$4 sm:$0xff]   ;;  %v336_v12 = vld [vmem:[%s313_s30] sm:$0x7]  ;;  %v2228_v14 = vld [vmem:[%s2949_s3 + $0x214] ss:$8 sps:$4 sm:$0xff]  }
  0x23   : > { %v2223_v13 = vld [vmem:[%s2949_s3 + $0x280] ss:$8 sps:$4 sm:$0xff]   ;;  %v2231_v15 = vld [vmem:[%s2949_s3 + $0x294] ss:$8 sps:$4 sm:$0xff]   ;;  %v2226_v16 = vld [vmem:[%s2949_s3 + $0x210] ss:$8 sps:$4 sm:$0xff]  }
  0x24   : > { %475 = vmatpush1.bf16.msra.mxu0 %v2162_v29  ;;  %596 = vmatpush1.bf16.msra.mxu1 %v2163_v30  ;;  %v2229_v17 = vld [vmem:[%s2949_s3 + $0x290] ss:$8 sps:$4 sm:$0xff]   ;;  %v2234_v18 = vld [vmem:[%s2949_s3 + $0x224] ss:$8 sps:$4 sm:$0xff]   ;;  %v2232_v20 = vld [vmem:[%s2949_s3 + $0x220] ss:$8 sps:$4 sm:$0xff]  }
  0x25   : > { %476 = vmatprep.subr.bf16.mxu0 %v2164_v32  ;;  %597 = vmatprep.subr.bf16.mxu1 %v2166_v33  ;;  %v2237_v19 = vld [vmem:[%s2949_s3 + $0x2a4] ss:$8 sps:$4 sm:$0xff]   ;;  %v2235_v21 = vld [vmem:[%s2949_s3 + $0x2a0] ss:$8 sps:$4 sm:$0xff]   ;;  %v2240_v22 = vld [vmem:[%s2949_s3 + $0x234] ss:$8 sps:$4 sm:$0xff]   ;;  %v1930_v32 = vcombine.low %v336_v12, %v336_v12 }
  0x26   : > { %v2243_v23 = vld [vmem:[%s2949_s3 + $0x2b4] ss:$8 sps:$4 sm:$0xff]   ;;  %v2238_v24 = vld [vmem:[%s2949_s3 + $0x230] ss:$8 sps:$4 sm:$0xff]   ;;  %v2246_v26 = vld [vmem:[%s2949_s3 + $0x244] ss:$8 sps:$4 sm:$0xff]  }
  0x27   : > { %v2241_v25 = vld [vmem:[%s2949_s3 + $0x2b0] ss:$8 sps:$4 sm:$0xff]   ;;  %v2244_v28 = vld [vmem:[%s2949_s3 + $0x240] ss:$8 sps:$4 sm:$0xff]   ;;  %v2252_v30 = vld [vmem:[%s2949_s3 + $0x254] ss:$8 sps:$4 sm:$0xff]  }
  0x28   : > { %477 = vmatpush1.bf16.msra.mxu0 %v2168_v34  ;;  %598 = vmatpush1.bf16.msra.mxu1 %v2169_v37  ;;  %v2247_v29 = vld [vmem:[%s2949_s3 + $0x2c0] ss:$8 sps:$4 sm:$0xff]   ;;  %v2255_v31 = vld [vmem:[%s2949_s3 + $0x2d4] ss:$8 sps:$4 sm:$0xff]   ;;  %v2250_v33 = vld [vmem:[%s2949_s3 + $0x250] ss:$8 sps:$4 sm:$0xff]  }
  0x29   : > { %723 = vmatprep.subr.bf16.mxu0 %v2173_v38  ;;  %863 = vmatprep.subr.bf16.mxu1 %v2176_v39  ;;  %v2253_v34 = vld [vmem:[%s2949_s3 + $0x2d0] ss:$8 sps:$4 sm:$0xff]   ;;  %v2258_v35 = vld [vmem:[%s2949_s3 + $0x264] ss:$8 sps:$4 sm:$0xff]   ;;  %v929_v37 = vshll.u32 %v1930_v32, 16  ;;  %s315_s28 = sadd.s32 2, %s2363_s18 }
  0x2a   : > { %v2261_v36 = vld [vmem:[%s2949_s3 + $0x2e4] ss:$8 sps:$4 sm:$0xff]   ;;  %v2256_v38 = vld [vmem:[%s2949_s3 + $0x260] ss:$8 sps:$4 sm:$0xff]   ;;  %p318_p8 = scmp.lt.s32.totalorder %s315_s28, 5  ;;  %p327_p9 = scmp.lt.s32.totalorder %s2363_s18, 3 }
  0x2b   : > { %495 = vmatmul.mubr.bf16.vlgmr.msra.gmra.mrb[0].mxu0 %v380_v40  ;;  %616 = vmatmul.mubr.bf16.vlgmr.msra.gmra.mrb[0].mxu1 %v335_v27  ;;  %v2249_v27 = vld [vmem:[%s2949_s3 + $0x2c4] ss:$8 sps:$4 sm:$0xff]   ;;  %v2259_v39 = vld [vmem:[%s2949_s3 + $0x2e0] ss:$8 sps:$4 sm:$0xff]   ;;  %v2264_v40 = vld [vmem:[%s2949_s3 + $0x274] ss:$8 sps:$4 sm:$0xff]  }
  0x2c   : > { %724 = vmatpush1.bf16.msra.mxu0 %v2171_v41  ;;  %864 = vmatpush1.bf16.msra.mxu1 %v2174_v42  ;;  %v2267_v41 = vld [vmem:[%s2949_s3 + $0x2f4] ss:$8 sps:$4 sm:$0xff]   ;;  %v927_v42 = vshrl.u32 %v1930_v32, 16  ;;  %s2967_s28 = smov (!%p318_p8, %s315_s28), 5  ;;  %s2969_s18 = smov (!%p327_p9, %s2363_s18), 3 }
  0x2d   : > { %725 = vmatprep.subr.bf16.mxu0 %v2179_v43  ;;  %865 = vmatprep.subr.bf16.mxu1 %v2182_v44  ;;  %v2262_v43 = vld [vmem:[%s2949_s3 + $0x270] ss:$8 sps:$4 sm:$0xff]   ;;  %v931_v44 = vrot.slane %v929_v37, 1  ;;  %s321_s30 = sadd.s32 %s2496_s9, %s2967_s28  ;;  %s1799_s15 = sshll.u32 %s2963_s19, 3 }
  0x2e   : > { %755 = vmatprep.mubr.bf16.mxu0 %v2381_v2  ;;  %895 = vmatprep.mubr.bf16.mxu1 %v2381_v2  ;;  %s1797_s9 = sshll.u32 %s321_s30, 2  ;;  %v2338_v37 = vld [vmem:[%s2949_s3 + $0x470] ss:$8 sps:$4 sm:$0xff]  }
  0x2f   : > { %s323_s8 = scalar_lea.vmem %s2948_s2, %s1797_s9  ;;  %s1798_s9 = sshll.u32 %s2969_s18, 1 }
  0x30   : > { %726 = vmatpush1.bf16.msra.mxu0 %v2177_v45  ;;  %866 = vmatpush1.bf16.msra.mxu1 %v2180_v46  ;;  %v2265_v45 = vld [vmem:[%s2949_s3 + $0x2f0] ss:$8 sps:$4 sm:$0xff]   ;;  %v2270_v46 = vld [vmem:[%s2949_s3 + $0x304] ss:$8 sps:$4 sm:$0xff]   ;;  %s331_s16 = sadd.s32 %s1799_s15, %s1798_s9 }
  0x31   : > { %727 = vmatprep.subr.bf16.mxu0 %v2185_v47  ;;  %867 = vmatprep.subr.bf16.mxu1 %v2188_v48  ;;  %v2273_v47 = vld [vmem:[%s2949_s3 + $0x384] ss:$8 sps:$4 sm:$0xff]   ;;  %v932_v48 = vor.u32 %v931_v44, %v927_v42  ;;  %s1800_s26 = sshll.u32 %s331_s16, 1 }
  0x32   : > { %s333_s6 = scalar_lea.vmem %s2951_s5, %s1800_s26 }
  0x34   : > { %728 = vmatpush1.bf16.msra.mxu0 %v2183_v49  ;;  %868 = vmatpush1.bf16.msra.mxu1 %v2186_v50  ;;  %v1074_v49 = vrot.slane %v1930_v32, 1  ;;  %v2268_v50 = vld [vmem:[%s2949_s3 + $0x300] ss:$8 sps:$4 sm:$0xff]   ;;  %v2334_v32 = vld [vmem:[%s2949_s3 + $0x454] ss:$8 sps:$4 sm:$0xff]  }
  0x35   : > { %729 = vmatprep.subr.bf16.mxu0 %v2191_v51  ;;  %869 = vmatprep.subr.bf16.mxu1 %v2194_v52  ;;  %v2271_v51 = vld [vmem:[%s2949_s3 + $0x380] ss:$8 sps:$4 sm:$0xff]   ;;  %v2276_v52 = vld [vmem:[%s2949_s3 + $0x314] ss:$8 sps:$4 sm:$0xff]  }
  0x38   : > { %730 = vmatpush1.bf16.msra.mxu0 %v2189_v53  ;;  %870 = vmatpush1.bf16.msra.mxu1 %v2192_v54  ;;  %v2279_v53 = vld [vmem:[%s2949_s3 + $0x394] ss:$8 sps:$4 sm:$0xff]   ;;  %v2274_v54 = vld [vmem:[%s2949_s3 + $0x310] ss:$8 sps:$4 sm:$0xff]  }
  0x39   : > { %731 = vmatprep.subr.bf16.mxu0 %v2197_v55  ;;  %871 = vmatprep.subr.bf16.mxu1 %v2200_v56  ;;  %v2277_v55 = vld [vmem:[%s2949_s3 + $0x390] ss:$8 sps:$4 sm:$0xff]   ;;  %v2282_v56 = vld [vmem:[%s2949_s3 + $0x324] ss:$8 sps:$4 sm:$0xff]  }
  0x3c   : > { %732 = vmatpush1.bf16.msra.mxu0 %v2195_v57  ;;  %872 = vmatpush1.bf16.msra.mxu1 %v2198_v58  ;;  %v2285_v57 = vld [vmem:[%s2949_s3 + $0x3a4] ss:$8 sps:$4 sm:$0xff]   ;;  %v2280_v58 = vld [vmem:[%s2949_s3 + $0x320] ss:$8 sps:$4 sm:$0xff]  }
  0x3d   : > { %733 = vmatprep.subr.bf16.mxu0 %v2203_v59  ;;  %873 = vmatprep.subr.bf16.mxu1 %v2206_v60  ;;  %v2283_v59 = vld [vmem:[%s2949_s3 + $0x3a0] ss:$8 sps:$4 sm:$0xff]   ;;  %v2288_v60 = vld [vmem:[%s2949_s3 + $0x334] ss:$8 sps:$4 sm:$0xff]  }
  0x40   : > { %734 = vmatpush1.bf16.msra.mxu0 %v2201_v61  ;;  %874 = vmatpush1.bf16.msra.mxu1 %v2204_v62  ;;  %v2291_v61 = vld [vmem:[%s2949_s3 + $0x3b4] ss:$8 sps:$4 sm:$0xff]   ;;  %v2286_v62 = vld [vmem:[%s2949_s3 + $0x330] ss:$8 sps:$4 sm:$0xff]  }
  0x41   : > { %735 = vmatprep.subr.bf16.mxu0 %v2209_v63  ;;  %875 = vmatprep.subr.bf16.mxu1 %v2212_v0  ;;  %v2289_v63 = vld [vmem:[%s2949_s3 + $0x3b0] ss:$8 sps:$4 sm:$0xff]   ;;  %v2294_v0 = vld [vmem:[%s2949_s3 + $0x344] ss:$8 sps:$4 sm:$0xff]  }
  0x44   : > { %736 = vmatpush1.bf16.msra.mxu0 %v2207_v1  ;;  %876 = vmatpush1.bf16.msra.mxu1 %v2210_v3  ;;  %v2297_v1 = vld [vmem:[%s2949_s3 + $0x3c4] ss:$8 sps:$4 sm:$0xff]   ;;  %v2292_v3 = vld [vmem:[%s2949_s3 + $0x340] ss:$8 sps:$4 sm:$0xff]  }
  0x45   : > { %737 = vmatprep.subr.bf16.mxu0 %v2215_v4  ;;  %877 = vmatprep.subr.bf16.mxu1 %v2218_v5  ;;  %v2295_v4 = vld [vmem:[%s2949_s3 + $0x3c0] ss:$8 sps:$4 sm:$0xff]  }
  0x46   : > { %v337_v5 = vld [vmem:[%s323_s8] sm:$0x7] }
  0x48   : > { %738 = vmatpush1.bf16.msra.mxu0 %v2213_v6  ;;  %878 = vmatpush1.bf16.msra.mxu1 %v2216_v7  ;;  %v2300_v6 = vld [vmem:[%s2949_s3 + $0x354] ss:$8 sps:$4 sm:$0xff]  }
  0x49   : > { %1014 = vmatprep.subr.bf16.mxu0 %v2221_v8  ;;  %1156 = vmatprep.subr.bf16.mxu1 %v2225_v9  ;;  %v2303_v7 = vld [vmem:[%s2949_s3 + $0x3d4] ss:$8 sps:$4 sm:$0xff]   ;;  %v2838_v8 = vcombine.low %v337_v5, %v337_v5  ;;  %v2298_v9 = vld [vmem:[%s2949_s3 + $0x350] ss:$8 sps:$4 sm:$0xff]  }
  0x4b   : > { %756 = vmatmul.mubr.bf16.vlgmr.msra.gmra.mrb[4].mxu0 %v641_v10  ;;  %896 = vmatmul.mubr.bf16.vlgmr.msra.gmra.mrb[4].mxu1 %v336_v12  ;;  %v2301_v10 = vld [vmem:[%s2949_s3 + $0x3d0] ss:$8 sps:$4 sm:$0xff]   ;;  %v2309_v12 = vld [vmem:[%s2949_s3 + $0x3e4] ss:$8 sps:$4 sm:$0xff]  }
  0x4c   : > { %1015 = vmatpush1.bf16.msra.mxu0 %v2219_v11  ;;  %1157 = vmatpush1.bf16.msra.mxu1 %v2223_v13  ;;  %v2306_v11 = vld [vmem:[%s2949_s3 + $0x364] ss:$8 sps:$4 sm:$0xff]   ;;  %v1362_v13 = vshll.u32 %v2838_v8, 16 }
  0x4d   : > { %1016 = vmatprep.subr.bf16.mxu0 %v2228_v14  ;;  %1158 = vmatprep.subr.bf16.mxu1 %v2231_v15  ;;  %v2304_v14 = vld [vmem:[%s2949_s3 + $0x360] ss:$8 sps:$4 sm:$0xff]  }
  0x4e   : > { %1046 = vmatprep.mubr.bf16.mxu0 %v2381_v2  ;;  %1188 = vmatprep.mubr.bf16.mxu1 %v2381_v2  ;;  %v2307_v15 = vld [vmem:[%s2949_s3 + $0x3e0] ss:$8 sps:$4 sm:$0xff]  }
  0x50   : > { %1017 = vmatpush1.bf16.msra.mxu0 %v2226_v16  ;;  %1159 = vmatpush1.bf16.msra.mxu1 %v2229_v17  ;;  %v2312_v16 = vld [vmem:[%s2949_s3 + $0x374] ss:$8 sps:$4 sm:$0xff]  }
  0x51   : > { %1018 = vmatprep.subr.bf16.mxu0 %v2234_v18  ;;  %1160 = vmatprep.subr.bf16.mxu1 %v2237_v19  ;;  %v2315_v17 = vld [vmem:[%s2949_s3 + $0x3f4] ss:$8 sps:$4 sm:$0xff]   ;;  %v1360_v18 = vshrl.u32 %v2838_v8, 16  ;;  %v1364_v19 = vrot.slane %v1362_v13, 1 }
  0x54   : > { %1019 = vmatpush1.bf16.msra.mxu0 %v2232_v20  ;;  %1161 = vmatpush1.bf16.msra.mxu1 %v2235_v21  ;;  %v2310_v20 = vld [vmem:[%s2949_s3 + $0x370] ss:$8 sps:$4 sm:$0xff]  }
  0x55   : > { %1020 = vmatprep.subr.bf16.mxu0 %v2240_v22  ;;  %1162 = vmatprep.subr.bf16.mxu1 %v2243_v23  ;;  %v2313_v21 = vld [vmem:[%s2949_s3 + $0x3f0] ss:$8 sps:$4 sm:$0xff]   ;;  %v2319_v22 = vld [vmem:[%s2949_s3 + $0x404] ss:$8 sps:$4 sm:$0xff]   ;;  %v1365_v23 = vor.u32 %v1364_v19, %v1360_v18 }
  0x58   : > { %1021 = vmatpush1.bf16.msra.mxu0 %v2238_v24  ;;  %1163 = vmatpush1.bf16.msra.mxu1 %v2241_v25  ;;  %v2317_v24 = vld [vmem:[%s2949_s3 + $0x400] ss:$8 sps:$4 sm:$0xff]   ;;  %v2322_v25 = vld [vmem:[%s2949_s3 + $0x414] ss:$8 sps:$4 sm:$0xff]  }
  0x59   : > { %1022 = vmatprep.subr.bf16.mxu0 %v2246_v26  ;;  %1164 = vmatprep.subr.bf16.mxu1 %v2249_v27  ;;  %v2320_v26 = vld [vmem:[%s2949_s3 + $0x410] ss:$8 sps:$4 sm:$0xff]   ;;  %v2325_v27 = vld [vmem:[%s2949_s3 + $0x424] ss:$8 sps:$4 sm:$0xff]  }
  0x5c   : > { %1023 = vmatpush1.bf16.msra.mxu0 %v2244_v28  ;;  %1165 = vmatpush1.bf16.msra.mxu1 %v2247_v29  ;;  %v2323_v28 = vld [vmem:[%s2949_s3 + $0x420] ss:$8 sps:$4 sm:$0xff]   ;;  %v2328_v29 = vld [vmem:[%s2949_s3 + $0x434] ss:$8 sps:$4 sm:$0xff]  }
  0x5d   : > { %1024 = vmatprep.subr.bf16.mxu0 %v2252_v30  ;;  %1166 = vmatprep.subr.bf16.mxu1 %v2255_v31  ;;  %v2331_v30 = vld [vmem:[%s2949_s3 + $0x444] ss:$8 sps:$4 sm:$0xff]   ;;  %v2329_v31 = vld [vmem:[%s2949_s3 + $0x440] ss:$8 sps:$4 sm:$0xff]  }
  0x60   : > { %1025 = vmatpush1.bf16.msra.mxu0 %v2250_v33  ;;  %1167 = vmatpush1.bf16.msra.mxu1 %v2253_v34  ;;  %v2332_v33 = vld [vmem:[%s2949_s3 + $0x450] ss:$8 sps:$4 sm:$0xff]   ;;  %v2337_v34 = vld [vmem:[%s2949_s3 + $0x464] ss:$8 sps:$4 sm:$0xff]  }
  0x61   : > { %1026 = vmatprep.subr.bf16.mxu0 %v2258_v35  ;;  %1168 = vmatprep.subr.bf16.mxu1 %v2261_v36  ;;  %v2335_v35 = vld [vmem:[%s2949_s3 + $0x460] ss:$8 sps:$4 sm:$0xff]   ;;  %v2340_v36 = vld [vmem:[%s2949_s3 + $0x474] ss:$8 sps:$4 sm:$0xff]  }
  0x64   : > { %1027 = vmatpush1.bf16.msra.mxu0 %v2256_v38  ;;  %1169 = vmatpush1.bf16.msra.mxu1 %v2259_v39  ;;  %v1507_v38 = vrot.slane %v2838_v8, 1 }
  0x65   : > { %1028 = vmatprep.subr.bf16.mxu0 %v2264_v40  ;;  %1170 = vmatprep.subr.bf16.mxu1 %v2267_v41 }
  0x68   : > { %1029 = vmatpush1.bf16.msra.mxu0 %v2262_v43  ;;  %1171 = vmatpush1.bf16.msra.mxu1 %v2265_v45 }
  0x69   : > { %1296 = vmatprep.subr.bf16.mxu0 %v2270_v46  ;;  %1447 = vmatprep.subr.bf16.mxu1 %v2273_v47 }
  0x6b   : > { %1047 = vmatmul.mubr.bf16.vlgmr.msra.gmra.mrb[8].mxu0 %v932_v48  ;;  %1189 = vmatmul.mubr.bf16.vlgmr.msra.gmra.mrb[8].mxu1 %v1074_v49 }
  0x6c   : > { %1297 = vmatpush1.bf16.msra.mxu0 %v2268_v50  ;;  %1448 = vmatpush1.bf16.msra.mxu1 %v2271_v51 }
  0x6d   : > { %1298 = vmatprep.subr.bf16.mxu0 %v2276_v52  ;;  %1449 = vmatprep.subr.bf16.mxu1 %v2279_v53 }
  0x6e   : > { %1328 = vmatprep.mubr.bf16.mxu0 %v2381_v2  ;;  %1479 = vmatprep.mubr.bf16.mxu1 %v2381_v2 }
  0x70   : > { %1299 = vmatpush1.bf16.msra.mxu0 %v2274_v54  ;;  %1450 = vmatpush1.bf16.msra.mxu1 %v2277_v55 }
  0x71   : > { %1300 = vmatprep.subr.bf16.mxu0 %v2282_v56  ;;  %1451 = vmatprep.subr.bf16.mxu1 %v2285_v57 }
  0x74   : > { %1301 = vmatpush1.bf16.msra.mxu0 %v2280_v58  ;;  %1452 = vmatpush1.bf16.msra.mxu1 %v2283_v59 }
  0x75   : > { %1302 = vmatprep.subr.bf16.mxu0 %v2288_v60  ;;  %1453 = vmatprep.subr.bf16.mxu1 %v2291_v61 }
  0x78   : > { %1303 = vmatpush1.bf16.msra.mxu0 %v2286_v62  ;;  %1454 = vmatpush1.bf16.msra.mxu1 %v2289_v63 }
  0x79   : > { %1304 = vmatprep.subr.bf16.mxu0 %v2294_v0  ;;  %1455 = vmatprep.subr.bf16.mxu1 %v2297_v1 }
  0x7c   : > { %1305 = vmatpush1.bf16.msra.mxu0 %v2292_v3  ;;  %1456 = vmatpush1.bf16.msra.mxu1 %v2295_v4 }
  0x7d   : > { %1306 = vmatprep.subr.bf16.mxu0 %v2300_v6  ;;  %1457 = vmatprep.subr.bf16.mxu1 %v2303_v7 }
  0x80   : > { %1307 = vmatpush1.bf16.msra.mxu0 %v2298_v9  ;;  %1458 = vmatpush1.bf16.msra.mxu1 %v2301_v10 }
  0x81   : > { %1308 = vmatprep.subr.bf16.mxu0 %v2306_v11  ;;  %1459 = vmatprep.subr.bf16.mxu1 %v2309_v12 }
  0x84   : > { %1309 = vmatpush1.bf16.msra.mxu0 %v2304_v14  ;;  %1460 = vmatpush1.bf16.msra.mxu1 %v2307_v15 }
  0x85   : > { %1310 = vmatprep.subr.bf16.mxu0 %v2312_v16  ;;  %1461 = vmatprep.subr.bf16.mxu1 %v2315_v17 }
  0x88   : > { %1311 = vmatpush1.bf16.msra.mxu0 %v2310_v20  ;;  %1462 = vmatpush1.bf16.msra.mxu1 %v2313_v21 }
  0x89   : > { %1589 = vmatprep.subr.bf16.mxu0 %v2319_v22  ;;  %v1634_v22 = vlaneseq }
  0x8b   : > { %1329 = vmatmul.mubr.bf16.vlgmr.msra.gmra.mrb[12].mxu0 %v337_v5  ;;  %1480 = vmatmul.mubr.bf16.vlgmr.msra.gmra.mrb[12].mxu1 %v1365_v23  ;;  %v1635_v23 = vshrl.u32 %v1634_v22, 7 }
  0x8c   : > { %1590 = vmatpush1.bf16.msra.mxu0 %v2317_v24  ;;  %1621 = vmatprep.mubr.bf16.mxu0 %v2381_v2  ;;  %v2326_v2 = vld [vmem:[%s2949_s3 + $0x430] ss:$8 sps:$4 sm:$0xff]  }
  0x8d   : > { %1591 = vmatprep.subr.bf16.mxu0 %v2322_v25  ;;  %v1636_v24 = vsub.s32 0, %v1635_v23  ;;  %v1632_v25 = vld [vmem:[%s2950_s4] sm:$0x3] }
  0x90   : > { %1592 = vmatpush1.bf16.msra.mxu0 %v2320_v26  ;;  %v1640_v26 = vsub.s32 1, %v1635_v23 }
  0x91   : > { %1593 = vmatprep.subr.bf16.mxu0 %v2325_v27  ;;  %v1637_v27 = vrot.slane %v1632_v25, %v1636_v24 }
  0x94   : > { %1594 = vmatpush1.bf16.msra.mxu0 %v2323_v28 }
  0x95   : > { %1595 = vmatprep.subr.bf16.mxu0 %v2328_v29  ;;  %v1641_v29 = vrot.slane %v1632_v25, %v1640_v26 }
  0x98   : > { %1596 = vmatpush1.bf16.msra.mxu0 %v2326_v2 }
  0x99   : > { %1597 = vmatprep.subr.bf16.mxu0 %v2331_v30 }
  0x9c   : > { %1598 = vmatpush1.bf16.msra.mxu0 %v2329_v31 }
  0x9d   : > { %1599 = vmatprep.subr.bf16.mxu0 %v2334_v32 }
  0xa0   : > { %1600 = vmatpush1.bf16.msra.mxu0 %v2332_v33 }
  0xa1   : > { %1601 = vmatprep.subr.bf16.mxu0 %v2337_v34 }
  0xa4   : > { %1602 = vmatpush1.bf16.msra.mxu0 %v2335_v35 }
  0xa5   : > { %1603 = vmatprep.subr.bf16.mxu0 %v2340_v36 }
  0xa8   : > { %1604 = vmatpush1.bf16.msra.mxu0 %v2338_v37 }
  0xab   : > { %1622 = vmatmul.mubr.bf16.vlgmr.msra.gmra.mrb[16].mxu0 %v1507_v38 }
  0xfe   : > { %v496_v39 = vpop.f32.mrb[0].mxu0  ;;  %v617_v40 = vpop.f32.mrb[0].mxu1 }
  0xff   : > { %v618_v41 = vadd.f32 %v617_v40, %v496_v39  ;;  %v498_v42 = vpop.f32.mrb[1].mxu0  ;;  %v619_v43 = vpop.f32.mrb[1].mxu1 }
 0x100   : > { %v620_v44 = vadd.f32 %v619_v43, %v498_v42  ;;  %v500_v45 = vpop.f32.mrb[2].mxu0  ;;  %v621_v46 = vpop.f32.mrb[2].mxu1 }
 0x101   : > { %v501_v47 = vpop.f32.mrb[3].mxu0  ;;  %v622_v48 = vpop.f32.mrb[3].mxu1 }
 0x11e   : > { %v757_v49 = vpop.f32.mrb[4].mxu0  ;;  %v897_v50 = vpop.f32.mrb[4].mxu1 }
 0x11f   : > { %v764_v51 = vadd.f32 %v757_v49, %v618_v41  ;;  %v759_v52 = vpop.f32.mrb[5].mxu0  ;;  %v899_v53 = vpop.f32.mrb[5].mxu1 }
 0x120   : > { %v765_v54 = vadd.f32 %v759_v52, %v620_v44  ;;  %v761_v55 = vpop.f32.mrb[6].mxu0  ;;  %v901_v56 = vpop.f32.mrb[6].mxu1 }
 0x121   : > { %v904_v57 = vadd.f32 %v897_v50, %v764_v51  ;;  %v762_v58 = vpop.f32.mrb[7].mxu0  ;;  %v902_v59 = vpop.f32.mrb[7].mxu1 }
 0x122   : > { %v905_v60 = vadd.f32 %v899_v53, %v765_v54 }
 0x13e   : > { %v1048_v61 = vpop.f32.mrb[8].mxu0  ;;  %v1190_v62 = vpop.f32.mrb[8].mxu1 }
 0x13f   : > { %v1055_v63 = vadd.f32 %v1048_v61, %v904_v57  ;;  %v1050_v0 = vpop.f32.mrb[9].mxu0  ;;  %v1192_v1 = vpop.f32.mrb[9].mxu1 }
 0x140   : > { %v1056_v3 = vadd.f32 %v1050_v0, %v905_v60  ;;  %v1052_v4 = vpop.f32.mrb[10].mxu0  ;;  %v1194_v5 = vpop.f32.mrb[10].mxu1 }
 0x141   : > { %v1197_v6 = vadd.f32 %v1190_v62, %v1055_v63  ;;  %v1053_v7 = vpop.f32.mrb[11].mxu0  ;;  %v1195_v8 = vpop.f32.mrb[11].mxu1 }
 0x142   : > { %v1198_v9 = vadd.f32 %v1192_v1, %v1056_v3 }
 0x15e   : > { %v1330_v10 = vpop.f32.mrb[12].mxu0  ;;  %v1481_v11 = vpop.f32.mrb[12].mxu1 }
 0x15f   : > { %v1337_v12 = vadd.f32 %v1330_v10, %v1197_v6  ;;  %v1332_v13 = vpop.f32.mrb[13].mxu0  ;;  %v1483_v14 = vpop.f32.mrb[13].mxu1 }
 0x160   : > { %v1338_v15 = vadd.f32 %v1332_v13, %v1198_v9  ;;  %v1334_v16 = vpop.f32.mrb[14].mxu0  ;;  %v1485_v17 = vpop.f32.mrb[14].mxu1 }
 0x161   : > { %v1488_v18 = vadd.f32 %v1481_v11, %v1337_v12  ;;  %v1335_v19 = vpop.f32.mrb[15].mxu0  ;;  %v1486_v20 = vpop.f32.mrb[15].mxu1 }
 0x162   : > { %v1489_v21 = vadd.f32 %v1483_v14, %v1338_v15 }
 0x17e   : > { %v1623_v28 = vpop.f32.mrb[16].mxu0 }
 0x17f   : > { %v1630_v2 = vadd.f32 %v1623_v28, %v1488_v18  ;;  %v1625_v30 = vpop.f32.mrb[17].mxu0 }
 0x180   : > { %v1631_v31 = vadd.f32 %v1625_v30, %v1489_v21  ;;  %v1627_v32 = vpop.f32.mrb[18].mxu0 }
 0x181   : > { %v1644_v33 = vadd.f32 %v1637_v27, %v1630_v2  ;;  %v1628_v34 = vpop.f32.mrb[19].mxu0 }
 0x182   : > { %v1645_v35 = vadd.f32 %v1641_v29, %v1631_v31 }
 0x183   : > { %v1646_v36 = vmax.f32 %v1644_v33, 0.0 }
 0x184   : > { %v1647_v37 = vmax.f32 %v1645_v35, 0.0 }
 0x186   : > { %v2076_v38 = vpack.c.bf16 %v1647_v37, %v1646_v36 }
 0x188   : > { %2077 = vst.sshfl [vmem:[%s333_s6] sm:$0x33 pattern:$0x76325410] %v2076_v38 }
 0x189 PF: > { %s15_s22 = sadd.s32 1, %s2379_s22   ;;  %s2952_s18 = smov %s2371_s20 }
 0x18a   : > { %p12_p10 = scmp.ge.s32.totalorder %s15_s22, 10   ;;  %s2953_s19 = smov %s2375_s21 }
 0x18b   : > { %s2954_s20 = smov %s2957_s23  ;;  %s2955_s21 = smov %s2961_s24 }
 0x18c   :  { %14 = sbr.rel (!%p12_p10) target bundleno = 3 (0x3), region = 84 }

// kernel: _lambda_.16
= control target key start
LH: loop header
LB: loop body
LE: loop exit
PB: predicated region body
PF: predicated region fallthrough
CT: control target
= control target key end

     0   :  { %s3830_s18 = smov 0   ;;  %s3832_s19 = smov 0   ;;  %s4823_s0 = inlined_call_operand.vmem [shape: bf16[2,6,6,256], index: 0, kind: input, shape index: {}, may-alias: {0,1,2}]   ;;  %s4824_s1 = inlined_call_operand.vmem [shape: bf16[2,6,6,256], index: 1, kind: input, shape index: {}, may-alias: {0,1,2}]   ;;  %s4825_s2 = inlined_call_operand.vmem [shape: bf16[2,6,6,256], index: 2, kind: input, shape index: {}, may-alias: {0,1,2}]   ;;  %s4826_s3 = inlined_call_operand.vmem [shape: bf16[9,256,256], index: 3, kind: input, shape index: {}]   ;;  %s4827_s4 = inlined_call_operand.vmem [shape: f32[1,256], index: 4, kind: input, shape index: {}]   ;;  %s4828_s5 = inlined_call_operand.vmem [shape: bf16[2,4,4,256], index: 5, kind: output, shape index: {}]  }
   0x1   :  { %s3834_s20 = smov 0   ;;  %s3836_s21 = smov 0  }
   0x2   :  { %s3838_s22 = smov 0  }
   0x3 LB: > { %s24_s23 = sadd.s32 1, %s3790_s20  ;;  %s27_s24 = sadd.s32 1, %s3794_s21  ;;  %s3798_s22 = sphi %s3838_s22, %s15_s22   ;;  %s3794_s21 = sphi %s3836_s21, %s4832_s21   ;;  %s3790_s20 = sphi %s3834_s20, %s4831_s20   ;;  %s3786_s19 = sphi %s3832_s19, %s4830_s19   ;;  %s3782_s18 = sphi %s3830_s18, %s4829_s18  }
   0x4   : > { %p25_p0 = scmp.ge.s32.totalorder %s24_s23, 4  ;;  %p2717_p1 = scmp.ge.s32.totalorder %s3798_s22, 1 }
   0x5   : > { %p247_p2 = scmp.lt.s32.totalorder %s3798_s22, 9 }
   0x6   : > { %s4834_s23 = smov (%p25_p0, %s24_s23), 0  ;;  %s4836_s24 = smov (!%p25_p0, %s27_s24), %s3794_s21 }
   0x7   : > { %p248_p3 = pnand %p2717_p1, %p247_p2  ;;  %p29_p4 = scmp.ge.s32.totalorder %s4836_s24, 2 }
   0x8   : > { %v3322_v0 = vld [vmem:[%s4826_s3 + $0x104] ss:$8 sps:$4 sm:$0xff] (!%p248_p3)   ;;  %v3326_v2 = vld [vmem:[%s4826_s3 + $0x100] ss:$8 sps:$4 sm:$0xff] (!%p248_p3)   ;;  %v3328_v4 = vld [vmem:[%s4826_s3 + $0x114] ss:$8 sps:$4 sm:$0xff] (!%p248_p3)  }
   0x9   : > { %s4838_s24 = smov (%p29_p4, %s4836_s24), 0  ;;  %251 = sbr.rel (%p248_p3) target bundleno = 552 (0x228), region = 40 }
   0xa   : > { %v3324_v1 = vld [vmem:[%s4826_s3 + $0x4] ss:$8 sps:$4 sm:$0xff] (!%p248_p3)   ;;  %592 = vmatprep.subr.bf16.mxu0 (!%p248_p3), %v3322_v0  ;;  %v3327_v3 = vld [vmem:[%s4826_s3] ss:$8 sps:$4 sm:$0xff] (!%p248_p3)   ;;  %v3330_v5 = vld [vmem:[%s4826_s3 + $0x14] ss:$8 sps:$4 sm:$0xff] (!%p248_p3)  }
   0xb   : > { %795 = vmatprep.subr.bf16.mxu1 (!%p248_p3), %v3324_v1  ;;  %593 = vmatpush1.bf16.msra.mxu0 (!%p248_p3), %v3326_v2  ;;  %v3332_v6 = vld [vmem:[%s4826_s3 + $0x110] ss:$8 sps:$4 sm:$0xff] (!%p248_p3)   ;;  %v3334_v8 = vld [vmem:[%s4826_s3 + $0x124] ss:$8 sps:$4 sm:$0xff] (!%p248_p3)   ;;  %v3338_v10 = vld [vmem:[%s4826_s3 + $0x120] ss:$8 sps:$4 sm:$0xff] (!%p248_p3)  }
   0xc   : > { %796 = vmatpush1.bf16.msra.mxu1 (!%p248_p3), %v3327_v3  ;;  %594 = vmatprep.subr.bf16.mxu0 (!%p248_p3), %v3328_v4  ;;  %v3333_v7 = vld [vmem:[%s4826_s3 + $0x10] ss:$8 sps:$4 sm:$0xff] (!%p248_p3)   ;;  %v3336_v9 = vld [vmem:[%s4826_s3 + $0x24] ss:$8 sps:$4 sm:$0xff] (!%p248_p3)   ;;  %v3339_v11 = vld [vmem:[%s4826_s3 + $0x20] ss:$8 sps:$4 sm:$0xff] (!%p248_p3)  }
   0xd   : > { %797 = vmatprep.subr.bf16.mxu1 (!%p248_p3), %v3330_v5  ;;  %v3340_v12 = vld [vmem:[%s4826_s3 + $0x134] ss:$8 sps:$4 sm:$0xff] (!%p248_p3)   ;;  %v3344_v14 = vld [vmem:[%s4826_s3 + $0x130] ss:$8 sps:$4 sm:$0xff] (!%p248_p3)   ;;  %v3346_v16 = vld [vmem:[%s4826_s3 + $0x144] ss:$8 sps:$4 sm:$0xff] (!%p248_p3)  }
   0xe   : > { %v3342_v13 = vld [vmem:[%s4826_s3 + $0x34] ss:$8 sps:$4 sm:$0xff] (!%p248_p3)   ;;  %v3345_v15 = vld [vmem:[%s4826_s3 + $0x30] ss:$8 sps:$4 sm:$0xff] (!%p248_p3)   ;;  %v3348_v17 = vld [vmem:[%s4826_s3 + $0x44] ss:$8 sps:$4 sm:$0xff] (!%p248_p3)  }
   0xf   : > { %595 = vmatpush1.bf16.msra.mxu0 (!%p248_p3), %v3332_v6  ;;  %v3350_v18 = vld [vmem:[%s4826_s3 + $0x140] ss:$8 sps:$4 sm:$0xff] (!%p248_p3)   ;;  %v3352_v20 = vld [vmem:[%s4826_s3 + $0x154] ss:$8 sps:$4 sm:$0xff] (!%p248_p3)   ;;  %v3356_v22 = vld [vmem:[%s4826_s3 + $0x150] ss:$8 sps:$4 sm:$0xff] (!%p248_p3)  }
  0x10   : > { %798 = vmatpush1.bf16.msra.mxu1 %v3333_v7  ;;  %596 = vmatprep.subr.bf16.mxu0 %v3334_v8  ;;  %v3351_v19 = vld [vmem:[%s4826_s3 + $0x40] ss:$8 sps:$4 sm:$0xff]   ;;  %v3354_v21 = vld [vmem:[%s4826_s3 + $0x54] ss:$8 sps:$4 sm:$0xff]   ;;  %v3357_v23 = vld [vmem:[%s4826_s3 + $0x50] ss:$8 sps:$4 sm:$0xff]  }
  0x11   : > { %799 = vmatprep.subr.bf16.mxu1 %v3336_v9  ;;  %v3358_v24 = vld [vmem:[%s4826_s3 + $0x164] ss:$8 sps:$4 sm:$0xff]   ;;  %p303_p5 = scmp.lt.s32.totalorder %s3786_s19, 1  ;;  %p305_p6 = scmp.lt.s32.totalorder %s3782_s18, 5  ;;  %v3362_v26 = vld [vmem:[%s4826_s3 + $0x160] ss:$8 sps:$4 sm:$0xff]  }
  0x12   : > { %v3360_v25 = vld [vmem:[%s4826_s3 + $0x64] ss:$8 sps:$4 sm:$0xff]   ;;  %v3363_v27 = vld [vmem:[%s4826_s3 + $0x60] ss:$8 sps:$4 sm:$0xff]   ;;  %v3364_v28 = vld [vmem:[%s4826_s3 + $0x174] ss:$8 sps:$4 sm:$0xff]  }
  0x13   : > { %597 = vmatpush1.bf16.msra.mxu0 %v3338_v10  ;;  %v3366_v29 = vld [vmem:[%s4826_s3 + $0x74] ss:$8 sps:$4 sm:$0xff]   ;;  %s4840_s19 = smov (!%p303_p5, %s3786_s19), 1  ;;  %v3368_v30 = vld [vmem:[%s4826_s3 + $0x170] ss:$8 sps:$4 sm:$0xff]   ;;  %s312_s8 = sadd.s32 1, %s3782_s18 }
  0x14   : > { %800 = vmatpush1.bf16.msra.mxu1 %v3339_v11  ;;  %598 = vmatprep.subr.bf16.mxu0 %v3340_v12  ;;  %s306_s6 = scalar_select %p305_p6, %s3782_s18, 5  ;;  %v3369_v31 = vld [vmem:[%s4826_s3 + $0x70] ss:$8 sps:$4 sm:$0xff]   ;;  %v3370_v32 = vld [vmem:[%s4826_s3 + $0x184] ss:$8 sps:$4 sm:$0xff]  }
  0x15   : > { %801 = vmatprep.subr.bf16.mxu1 %v3342_v13  ;;  %v3372_v33 = vld [vmem:[%s4826_s3 + $0x84] ss:$8 sps:$4 sm:$0xff]   ;;  %s3973_s15 = smul.u32 12, %s4840_s19  ;;  %v3374_v34 = vld [vmem:[%s4826_s3 + $0x180] ss:$8 sps:$4 sm:$0xff]   ;;  %p315_p7 = scmp.lt.s32.totalorder %s312_s8, 5 }
  0x16   : > { %s2718_s16 = sshll.u32 %s306_s6, 1  ;;  %v3375_v35 = vld [vmem:[%s4826_s3 + $0x80] ss:$8 sps:$4 sm:$0xff]   ;;  %v3376_v36 = vld [vmem:[%s4826_s3 + $0x194] ss:$8 sps:$4 sm:$0xff]   ;;  %s323_s9 = sadd.s32 2, %s3782_s18 }
  0x17   : > { %599 = vmatpush1.bf16.msra.mxu0 %v3344_v14  ;;  %v3378_v37 = vld [vmem:[%s4826_s3 + $0x94] ss:$8 sps:$4 sm:$0xff]   ;;  %s309_s6 = sadd.s32 %s3973_s15, %s2718_s16  ;;  %v3380_v38 = vld [vmem:[%s4826_s3 + $0x190] ss:$8 sps:$4 sm:$0xff]   ;;  %v3382_v40 = vld [vmem:[%s4826_s3 + $0x1a4] ss:$8 sps:$4 sm:$0xff]  }
  0x18   : > { %802 = vmatpush1.bf16.msra.mxu1 %v3345_v15  ;;  %600 = vmatprep.subr.bf16.mxu0 %v3346_v16  ;;  %v3381_v39 = vld [vmem:[%s4826_s3 + $0x90] ss:$8 sps:$4 sm:$0xff]   ;;  %s2719_s14 = sshll.u32 %s309_s6, 2  ;;  %v3384_v41 = vld [vmem:[%s4826_s3 + $0xa4] ss:$8 sps:$4 sm:$0xff]   ;;  %s4842_s8 = smov (!%p315_p7, %s312_s8), 5 }
  0x19   : > { %803 = vmatprep.subr.bf16.mxu1 %v3348_v17  ;;  %v3386_v42 = vld [vmem:[%s4826_s3 + $0x1a0] ss:$8 sps:$4 sm:$0xff]   ;;  %s311_s7 = scalar_lea.vmem %s4823_s0, %s2719_s14  ;;  %v3388_v44 = vld [vmem:[%s4826_s3 + $0x1b4] ss:$8 sps:$4 sm:$0xff]   ;;  %v3392_v47 = vld [vmem:[%s4826_s3 + $0x1b0] ss:$8 sps:$4 sm:$0xff]  }
  0x1a   : > { %v3387_v43 = vld [vmem:[%s4826_s3 + $0xa0] ss:$8 sps:$4 sm:$0xff]   ;;  %v3390_v45 = vld [vmem:[%s4826_s3 + $0xb4] ss:$8 sps:$4 sm:$0xff]   ;;  %v3393_v49 = vld [vmem:[%s4826_s3 + $0xb0] ss:$8 sps:$4 sm:$0xff]  }
  0x1b   : > { %601 = vmatpush1.bf16.msra.mxu0 %v3350_v18  ;;  %v343_v46 = vld [vmem:[%s311_s7] sm:$0x77]  ;;  %v3400_v57 = vld [vmem:[%s4826_s3 + $0x1d4] ss:$8 sps:$4 sm:$0xff]   ;;  %v3404_v60 = vld [vmem:[%s4826_s3 + $0x1d0] ss:$8 sps:$4 sm:$0xff]  }
  0x1c   : > { %804 = vmatpush1.bf16.msra.mxu1 %v3351_v19  ;;  %602 = vmatprep.subr.bf16.mxu0 %v3352_v20  ;;  %v4018_v48 = vcombine.high %v343_v46, %v343_v46  ;;  %v3394_v50 = vld [vmem:[%s4826_s3 + $0x1c4] ss:$8 sps:$4 sm:$0xff]   ;;  %v3398_v54 = vld [vmem:[%s4826_s3 + $0x1c0] ss:$8 sps:$4 sm:$0xff]   ;;  %v3402_v58 = vld [vmem:[%s4826_s3 + $0xd4] ss:$8 sps:$4 sm:$0xff]   ;;  %v4050_v62 = vcombine.low %v343_v46, %v343_v46 }
  0x1d   : > { %805 = vmatprep.subr.bf16.mxu1 %v3354_v21  ;;  %v3396_v51 = vld [vmem:[%s4826_s3 + $0xc4] ss:$8 sps:$4 sm:$0xff]   ;;  %v3399_v55 = vld [vmem:[%s4826_s3 + $0xc0] ss:$8 sps:$4 sm:$0xff]   ;;  %v3405_v61 = vld [vmem:[%s4826_s3 + $0xd0] ss:$8 sps:$4 sm:$0xff]  }
  0x1e   : > { %v424_v52 = vshrl.u32 %v4018_v48, 16  ;;  %v426_v53 = vshll.u32 %v4018_v48, 16  ;;  %827 = vmatprep.mubr.bf16.mxu1 %v4018_v48  ;;  %v3406_v63 = vld [vmem:[%s4826_s3 + $0x1e4] ss:$8 sps:$4 sm:$0xff]   ;;  %v3410_v1 = vld [vmem:[%s4826_s3 + $0x1e0] ss:$8 sps:$4 sm:$0xff]  }
  0x1f   : > { %603 = vmatpush1.bf16.msra.mxu0 %v3356_v22  ;;  %v3408_v0 = vld [vmem:[%s4826_s3 + $0xe4] ss:$8 sps:$4 sm:$0xff]   ;;  %v3411_v2 = vld [vmem:[%s4826_s3 + $0xe0] ss:$8 sps:$4 sm:$0xff]   ;;  %v419_v3 = vshll.u32 %v4050_v62, 16  ;;  %v417_v8 = vshrl.u32 %v4050_v62, 16 }
  0x20   : > { %806 = vmatpush1.bf16.msra.mxu1 %v3357_v23  ;;  %604 = vmatprep.subr.bf16.mxu0 %v3358_v24  ;;  %v428_v56 = vrot.slane %v426_v53, 1  ;;  %v3412_v4 = vld [vmem:[%s4826_s3 + $0x1f4] ss:$8 sps:$4 sm:$0xff]   ;;  %v3416_v6 = vld [vmem:[%s4826_s3 + $0x1f0] ss:$8 sps:$4 sm:$0xff]   ;;  %v870_v17 = vrot.slane %v4018_v48, 1 }
  0x21   : > { %807 = vmatprep.subr.bf16.mxu1 %v3360_v25  ;;  %v3414_v5 = vld [vmem:[%s4826_s3 + $0xf4] ss:$8 sps:$4 sm:$0xff]   ;;  %v3417_v7 = vld [vmem:[%s4826_s3 + $0xf0] ss:$8 sps:$4 sm:$0xff]   ;;  %v421_v9 = vrot.slane %v419_v3, 1  ;;  %s2720_s17 = sshll.u32 %s4842_s8, 1 }
  0x22   : > { %v429_v59 = vor.u32 %v428_v56, %v424_v52  ;;  %v3422_v10 = vld [vmem:[%s4826_s3 + $0x204] ss:$8 sps:$4 sm:$0xff]   ;;  %v3420_v13 = vld [vmem:[%s4826_s3 + $0x200] ss:$8 sps:$4 sm:$0xff]   ;;  %v3428_v15 = vld [vmem:[%s4826_s3 + $0x214] ss:$8 sps:$4 sm:$0xff]   ;;  %s319_s30 = sadd.s32 %s3973_s15, %s2720_s17 }
  0x23   : > { %605 = vmatpush1.bf16.msra.mxu0 %v3362_v26  ;;  %v3425_v11 = vld [vmem:[%s4826_s3 + $0x304] ss:$8 sps:$4 sm:$0xff]   ;;  %v422_v12 = vor.u32 %v421_v9, %v417_v8  ;;  %v3423_v14 = vld [vmem:[%s4826_s3 + $0x300] ss:$8 sps:$4 sm:$0xff]   ;;  %v3431_v16 = vld [vmem:[%s4826_s3 + $0x314] ss:$8 sps:$4 sm:$0xff]  }
  0x24   : > { %808 = vmatpush1.bf16.msra.mxu1 %v3363_v27  ;;  %606 = vmatprep.subr.bf16.mxu0 %v3364_v28  ;;  %v3426_v18 = vld [vmem:[%s4826_s3 + $0x210] ss:$8 sps:$4 sm:$0xff]   ;;  %v3434_v20 = vld [vmem:[%s4826_s3 + $0x224] ss:$8 sps:$4 sm:$0xff]   ;;  %v3432_v22 = vld [vmem:[%s4826_s3 + $0x220] ss:$8 sps:$4 sm:$0xff]  }
  0x25   : > { %809 = vmatprep.subr.bf16.mxu1 %v3366_v29  ;;  %624 = vmatprep.mubr.bf16.mxu0 %v429_v59  ;;  %v3429_v19 = vld [vmem:[%s4826_s3 + $0x310] ss:$8 sps:$4 sm:$0xff]   ;;  %v3437_v21 = vld [vmem:[%s4826_s3 + $0x324] ss:$8 sps:$4 sm:$0xff]   ;;  %v3435_v23 = vld [vmem:[%s4826_s3 + $0x320] ss:$8 sps:$4 sm:$0xff]  }
  0x26   : > { %v3440_v24 = vld [vmem:[%s4826_s3 + $0x234] ss:$8 sps:$4 sm:$0xff]   ;;  %v3438_v26 = vld [vmem:[%s4826_s3 + $0x230] ss:$8 sps:$4 sm:$0xff]   ;;  %v3446_v28 = vld [vmem:[%s4826_s3 + $0x244] ss:$8 sps:$4 sm:$0xff]  }
  0x27   : > { %607 = vmatpush1.bf16.msra.mxu0 %v3368_v30  ;;  %v3443_v25 = vld [vmem:[%s4826_s3 + $0x334] ss:$8 sps:$4 sm:$0xff]   ;;  %v3441_v27 = vld [vmem:[%s4826_s3 + $0x330] ss:$8 sps:$4 sm:$0xff]   ;;  %v3449_v29 = vld [vmem:[%s4826_s3 + $0x344] ss:$8 sps:$4 sm:$0xff]  }
  0x28   : > { %810 = vmatpush1.bf16.msra.mxu1 %v3369_v31  ;;  %608 = vmatprep.subr.bf16.mxu0 %v3370_v32  ;;  %v3444_v30 = vld [vmem:[%s4826_s3 + $0x240] ss:$8 sps:$4 sm:$0xff]   ;;  %v3452_v32 = vld [vmem:[%s4826_s3 + $0x254] ss:$8 sps:$4 sm:$0xff]   ;;  %s2721_s10 = sshll.u32 %s319_s30, 2  ;;  %p326_p8 = scmp.lt.s32.totalorder %s323_s9, 5 }
  0x29   : > { %811 = vmatprep.subr.bf16.mxu1 %v3372_v33  ;;  %v3447_v31 = vld [vmem:[%s4826_s3 + $0x340] ss:$8 sps:$4 sm:$0xff]   ;;  %v3455_v33 = vld [vmem:[%s4826_s3 + $0x354] ss:$8 sps:$4 sm:$0xff]   ;;  %s321_s29 = scalar_lea.vmem %s4824_s1, %s2721_s10  ;;  %v3470_v46 = vld [vmem:[%s4826_s3 + $0x284] ss:$8 sps:$4 sm:$0xff]  }
  0x2a   : > { %v3468_v48 = vld [vmem:[%s4826_s3 + $0x280] ss:$8 sps:$4 sm:$0xff]   ;;  %v3474_v52 = vld [vmem:[%s4826_s3 + $0x290] ss:$8 sps:$4 sm:$0xff]   ;;  %v3491_v59 = vld [vmem:[%s4826_s3 + $0x3b4] ss:$8 sps:$4 sm:$0xff]  }
  0x2b   : > { %609 = vmatpush1.bf16.msra.mxu0 %v3374_v34  ;;  %v3450_v34 = vld [vmem:[%s4826_s3 + $0x250] ss:$8 sps:$4 sm:$0xff]   ;;  %v3480_v56 = vld [vmem:[%s4826_s3 + $0x2a0] ss:$8 sps:$4 sm:$0xff]   ;;  %v3500_v3 = vld [vmem:[%s4826_s3 + $0x2d4] ss:$8 sps:$4 sm:$0xff]  }
  0x2c   : > { %812 = vmatpush1.bf16.msra.mxu1 %v3375_v35  ;;  %610 = vmatprep.subr.bf16.mxu0 %v3376_v36  ;;  %v3453_v35 = vld [vmem:[%s4826_s3 + $0x350] ss:$8 sps:$4 sm:$0xff]   ;;  %v3458_v36 = vld [vmem:[%s4826_s3 + $0x264] ss:$8 sps:$4 sm:$0xff]   ;;  %v3504_v9 = vld [vmem:[%s4826_s3 + $0x2e0] ss:$8 sps:$4 sm:$0xff]  }
  0x2d   : > { %813 = vmatprep.subr.bf16.mxu1 %v3378_v37  ;;  %v3461_v37 = vld [vmem:[%s4826_s3 + $0x364] ss:$8 sps:$4 sm:$0xff]   ;;  %v3477_v53 = vld [vmem:[%s4826_s3 + $0x390] ss:$8 sps:$4 sm:$0xff]   ;;  %s4844_s9 = smov (!%p326_p8, %s323_s9), 5  ;;  %p336_p9 = scmp.lt.s32.totalorder %s3782_s18, 3 }
  0x2e   : > { %v3509_v8 = vld [vmem:[%s4826_s3 + $0x3e4] ss:$8 sps:$4 sm:$0xff]   ;;  %s2722_s25 = sshll.u32 %s4844_s9, 1  ;;  %s2725_s6 = sshll.u32 %s4840_s19, 3 }
  0x2f   : > { %611 = vmatpush1.bf16.msra.mxu0 %v3380_v38  ;;  %v3456_v38 = vld [vmem:[%s4826_s3 + $0x260] ss:$8 sps:$4 sm:$0xff]   ;;  %s330_s7 = sadd.s32 %s3973_s15, %s2722_s25  ;;  %s4846_s18 = smov (!%p336_p9, %s3782_s18), 3 }
  0x30   : > { %814 = vmatpush1.bf16.msra.mxu1 %v3381_v39  ;;  %612 = vmatprep.subr.bf16.mxu0 %v3382_v40  ;;  %v3459_v39 = vld [vmem:[%s4826_s3 + $0x360] ss:$8 sps:$4 sm:$0xff]   ;;  %s2723_s15 = sshll.u32 %s330_s7, 2  ;;  %s2724_s7 = sshll.u32 %s4846_s18, 1 }
  0x31   : > { %815 = vmatprep.subr.bf16.mxu1 %v3384_v41  ;;  %v4169_v40 = vld [vmem:[%s321_s29] sm:$0x77]  ;;  %v3464_v41 = vld [vmem:[%s4826_s3 + $0x274] ss:$8 sps:$4 sm:$0xff]   ;;  %s332_s9 = scalar_lea.vmem %s4825_s2, %s2723_s15  ;;  %s340_s8 = sadd.s32 %s2725_s6, %s2724_s7 }
  0x32   : > { %s2726_s11 = sshll.u32 %s340_s8, 1 }
  0x33   : > { %613 = vmatpush1.bf16.msra.mxu0 %v3386_v42  ;;  %v3467_v42 = vld [vmem:[%s4826_s3 + $0x374] ss:$8 sps:$4 sm:$0xff]   ;;  %s342_s13 = scalar_lea.vmem %s4828_s5, %s2726_s11 }
  0x34   : > { %816 = vmatpush1.bf16.msra.mxu1 %v3387_v43  ;;  %614 = vmatprep.subr.bf16.mxu0 %v3388_v44  ;;  %v4179_v43 = vcombine.high %v4169_v40, %v4169_v40  ;;  %v3462_v44 = vld [vmem:[%s4826_s3 + $0x270] ss:$8 sps:$4 sm:$0xff]  }
  0x35   : > { %817 = vmatprep.subr.bf16.mxu1 %v3390_v45  ;;  %v3465_v45 = vld [vmem:[%s4826_s3 + $0x370] ss:$8 sps:$4 sm:$0xff]  }
  0x37   : > { %615 = vmatpush1.bf16.msra.mxu0 %v3392_v47  ;;  %v3473_v47 = vld [vmem:[%s4826_s3 + $0x384] ss:$8 sps:$4 sm:$0xff]  }
  0x38   : > { %818 = vmatpush1.bf16.msra.mxu1 %v3393_v49  ;;  %616 = vmatprep.subr.bf16.mxu0 %v3394_v50  ;;  %v3471_v49 = vld [vmem:[%s4826_s3 + $0x380] ss:$8 sps:$4 sm:$0xff]   ;;  %v3476_v50 = vld [vmem:[%s4826_s3 + $0x294] ss:$8 sps:$4 sm:$0xff]  }
  0x39   : > { %819 = vmatprep.subr.bf16.mxu1 %v3396_v51  ;;  %v3479_v51 = vld [vmem:[%s4826_s3 + $0x394] ss:$8 sps:$4 sm:$0xff]  }
  0x3b   : > { %617 = vmatpush1.bf16.msra.mxu0 %v3398_v54  ;;  %v3482_v54 = vld [vmem:[%s4826_s3 + $0x2a4] ss:$8 sps:$4 sm:$0xff]  }
  0x3c   : > { %820 = vmatpush1.bf16.msra.mxu1 %v3399_v55  ;;  %618 = vmatprep.subr.bf16.mxu0 %v3400_v57  ;;  %v3485_v55 = vld [vmem:[%s4826_s3 + $0x3a4] ss:$8 sps:$4 sm:$0xff]   ;;  %v3483_v57 = vld [vmem:[%s4826_s3 + $0x3a0] ss:$8 sps:$4 sm:$0xff]  }
  0x3d   : > { %821 = vmatprep.subr.bf16.mxu1 %v3402_v58  ;;  %v3488_v58 = vld [vmem:[%s4826_s3 + $0x2b4] ss:$8 sps:$4 sm:$0xff]  }
  0x3f   : > { %619 = vmatpush1.bf16.msra.mxu0 %v3404_v60  ;;  %v3486_v60 = vld [vmem:[%s4826_s3 + $0x2b0] ss:$8 sps:$4 sm:$0xff]  }
  0x40   : > { %822 = vmatpush1.bf16.msra.mxu1 %v3405_v61  ;;  %620 = vmatprep.subr.bf16.mxu0 %v3406_v63  ;;  %v3489_v61 = vld [vmem:[%s4826_s3 + $0x3b0] ss:$8 sps:$4 sm:$0xff]   ;;  %v3494_v63 = vld [vmem:[%s4826_s3 + $0x2c4] ss:$8 sps:$4 sm:$0xff]  }
  0x41   : > { %823 = vmatprep.subr.bf16.mxu1 %v3408_v0  ;;  %v3497_v0 = vld [vmem:[%s4826_s3 + $0x3c4] ss:$8 sps:$4 sm:$0xff]  }
  0x43   : > { %621 = vmatpush1.bf16.msra.mxu0 %v3410_v1  ;;  %v3492_v1 = vld [vmem:[%s4826_s3 + $0x2c0] ss:$8 sps:$4 sm:$0xff]  }
  0x44   : > { %824 = vmatpush1.bf16.msra.mxu1 %v3411_v2  ;;  %622 = vmatprep.subr.bf16.mxu0 %v3412_v4  ;;  %v3495_v2 = vld [vmem:[%s4826_s3 + $0x3c0] ss:$8 sps:$4 sm:$0xff]   ;;  %v3503_v4 = vld [vmem:[%s4826_s3 + $0x3d4] ss:$8 sps:$4 sm:$0xff]  }
  0x45   : > { %825 = vmatprep.subr.bf16.mxu1 %v3414_v5  ;;  %v3498_v5 = vld [vmem:[%s4826_s3 + $0x2d0] ss:$8 sps:$4 sm:$0xff]  }
  0x47   : > { %623 = vmatpush1.bf16.msra.mxu0 %v3416_v6  ;;  %v3501_v6 = vld [vmem:[%s4826_s3 + $0x3d0] ss:$8 sps:$4 sm:$0xff]  }
  0x48   : > { %826 = vmatpush1.bf16.msra.mxu1 %v3417_v7  ;;  %1033 = vmatprep.subr.bf16.mxu0 %v3422_v10  ;;  %v3506_v7 = vld [vmem:[%s4826_s3 + $0x2e4] ss:$8 sps:$4 sm:$0xff]   ;;  %v3507_v10 = vld [vmem:[%s4826_s3 + $0x3e0] ss:$8 sps:$4 sm:$0xff]  }
  0x49   : > { %1276 = vmatprep.subr.bf16.mxu1 %v3425_v11  ;;  %v3512_v11 = vld [vmem:[%s4826_s3 + $0x2f4] ss:$8 sps:$4 sm:$0xff]  }
  0x4a   : > { %625 = vmatmul.mubr.bf16.vlgmr.msra.gmra.mrb[0].mxu0 %v422_v12  ;;  %v3515_v12 = vld [vmem:[%s4826_s3 + $0x3f4] ss:$8 sps:$4 sm:$0xff]  }
  0x4b   : > { %828 = vmatmul.mubr.bf16.vlgmr.msra.gmra.mrb[0].mxu1 %v4050_v62  ;;  %1034 = vmatpush1.bf16.msra.mxu0 %v3420_v13  ;;  %v1362_v13 = vshll.u32 %v4179_v43, 16 }
  0x4c   : > { %1277 = vmatpush1.bf16.msra.mxu1 %v3423_v14  ;;  %1035 = vmatprep.subr.bf16.mxu0 %v3428_v15  ;;  %v3510_v14 = vld [vmem:[%s4826_s3 + $0x2f0] ss:$8 sps:$4 sm:$0xff]  }
  0x4d   : > { %1278 = vmatprep.subr.bf16.mxu1 %v3431_v16  ;;  %1065 = vmatprep.mubr.bf16.mxu0 %v870_v17  ;;  %v3513_v15 = vld [vmem:[%s4826_s3 + $0x3f0] ss:$8 sps:$4 sm:$0xff]   ;;  %v3518_v16 = vld [vmem:[%s4826_s3 + $0x404] ss:$8 sps:$4 sm:$0xff]  }
  0x4e   : > { %1308 = vmatprep.mubr.bf16.mxu1 %v4179_v43  ;;  %v3523_v17 = vld [vmem:[%s4826_s3 + $0x504] ss:$8 sps:$4 sm:$0xff]  }
  0x4f   : > { %1036 = vmatpush1.bf16.msra.mxu0 %v3426_v18  ;;  %v1360_v18 = vshrl.u32 %v4179_v43, 16 }
  0x50   : > { %1279 = vmatpush1.bf16.msra.mxu1 %v3429_v19  ;;  %1037 = vmatprep.subr.bf16.mxu0 %v3434_v20  ;;  %v1364_v19 = vrot.slane %v1362_v13, 1  ;;  %v869_v20 = vrot.slane %v4050_v62, 1  ;;  %v3526_v62 = vld [vmem:[%s4826_s3 + $0x414] ss:$8 sps:$4 sm:$0xff]   ;;  %v3599_v13 = vld [vmem:[%s4826_s3 + $0x5d0] ss:$8 sps:$4 sm:$0xff]  }
  0x51   : > { %1280 = vmatprep.subr.bf16.mxu1 %v3437_v21  ;;  %v3516_v21 = vld [vmem:[%s4826_s3 + $0x400] ss:$8 sps:$4 sm:$0xff]  }
  0x53   : > { %1038 = vmatpush1.bf16.msra.mxu0 %v3432_v22  ;;  %v4298_v22 = vcombine.low %v4169_v40, %v4169_v40  ;;  %v3545_v40 = vld [vmem:[%s4826_s3 + $0x540] ss:$8 sps:$4 sm:$0xff]  }
  0x54   : > { %1281 = vmatpush1.bf16.msra.mxu1 %v3435_v23  ;;  %1039 = vmatprep.subr.bf16.mxu0 %v3440_v24  ;;  %v3521_v23 = vld [vmem:[%s4826_s3 + $0x500] ss:$8 sps:$4 sm:$0xff]   ;;  %v3529_v24 = vld [vmem:[%s4826_s3 + $0x514] ss:$8 sps:$4 sm:$0xff]  }
  0x55   : > { %1282 = vmatprep.subr.bf16.mxu1 %v3443_v25  ;;  %v1365_v25 = vor.u32 %v1364_v19, %v1360_v18  ;;  %v3602_v18 = vld [vmem:[%s4826_s3 + $0x4e0] ss:$8 sps:$4 sm:$0xff]  }
  0x56   : > { %v3605_v19 = vld [vmem:[%s4826_s3 + $0x5e0] ss:$8 sps:$4 sm:$0xff]  }
  0x57   : > { %1040 = vmatpush1.bf16.msra.mxu0 %v3438_v26  ;;  %v1605_v26 = vrot.slane %v4179_v43, 1  ;;  %v3548_v43 = vld [vmem:[%s4826_s3 + $0x450] ss:$8 sps:$4 sm:$0xff]  }
  0x58   : > { %1283 = vmatpush1.bf16.msra.mxu1 %v3441_v27  ;;  %1041 = vmatprep.subr.bf16.mxu0 %v3446_v28  ;;  %v3524_v27 = vld [vmem:[%s4826_s3 + $0x410] ss:$8 sps:$4 sm:$0xff]  }
  0x59   : > { %1284 = vmatprep.subr.bf16.mxu1 %v3449_v29  ;;  %v3527_v28 = vld [vmem:[%s4826_s3 + $0x510] ss:$8 sps:$4 sm:$0xff]   ;;  %v3532_v29 = vld [vmem:[%s4826_s3 + $0x424] ss:$8 sps:$4 sm:$0xff]  }
  0x5b   : > { %1042 = vmatpush1.bf16.msra.mxu0 %v3444_v30  ;;  %v3535_v30 = vld [vmem:[%s4826_s3 + $0x524] ss:$8 sps:$4 sm:$0xff]  }
  0x5c   : > { %1285 = vmatpush1.bf16.msra.mxu1 %v3447_v31  ;;  %1043 = vmatprep.subr.bf16.mxu0 %v3452_v32  ;;  %v3530_v31 = vld [vmem:[%s4826_s3 + $0x420] ss:$8 sps:$4 sm:$0xff]  }
  0x5d   : > { %1286 = vmatprep.subr.bf16.mxu1 %v3455_v33  ;;  %v3533_v32 = vld [vmem:[%s4826_s3 + $0x520] ss:$8 sps:$4 sm:$0xff]   ;;  %v3538_v33 = vld [vmem:[%s4826_s3 + $0x434] ss:$8 sps:$4 sm:$0xff]  }
  0x5f   : > { %1044 = vmatpush1.bf16.msra.mxu0 %v3450_v34  ;;  %v3541_v34 = vld [vmem:[%s4826_s3 + $0x534] ss:$8 sps:$4 sm:$0xff]  }
  0x60   : > { %1287 = vmatpush1.bf16.msra.mxu1 %v3453_v35  ;;  %1045 = vmatprep.subr.bf16.mxu0 %v3458_v36  ;;  %v3536_v35 = vld [vmem:[%s4826_s3 + $0x430] ss:$8 sps:$4 sm:$0xff]  }
  0x61   : > { %1288 = vmatprep.subr.bf16.mxu1 %v3461_v37  ;;  %v3539_v36 = vld [vmem:[%s4826_s3 + $0x530] ss:$8 sps:$4 sm:$0xff]   ;;  %v3544_v37 = vld [vmem:[%s4826_s3 + $0x444] ss:$8 sps:$4 sm:$0xff]  }
  0x63   : > { %1046 = vmatpush1.bf16.msra.mxu0 %v3456_v38  ;;  %v3547_v38 = vld [vmem:[%s4826_s3 + $0x544] ss:$8 sps:$4 sm:$0xff]  }
  0x64   : > { %1289 = vmatpush1.bf16.msra.mxu1 %v3459_v39  ;;  %1047 = vmatprep.subr.bf16.mxu0 %v3464_v41  ;;  %v3542_v39 = vld [vmem:[%s4826_s3 + $0x440] ss:$8 sps:$4 sm:$0xff]   ;;  %v3550_v41 = vld [vmem:[%s4826_s3 + $0x454] ss:$8 sps:$4 sm:$0xff]  }
  0x65   : > { %1290 = vmatprep.subr.bf16.mxu1 %v3467_v42  ;;  %v3553_v42 = vld [vmem:[%s4826_s3 + $0x554] ss:$8 sps:$4 sm:$0xff]  }
  0x67   : > { %1048 = vmatpush1.bf16.msra.mxu0 %v3462_v44  ;;  %v3551_v44 = vld [vmem:[%s4826_s3 + $0x550] ss:$8 sps:$4 sm:$0xff]  }
  0x68   : > { %1291 = vmatpush1.bf16.msra.mxu1 %v3465_v45  ;;  %1049 = vmatprep.subr.bf16.mxu0 %v3470_v46  ;;  %v3556_v45 = vld [vmem:[%s4826_s3 + $0x464] ss:$8 sps:$4 sm:$0xff]  }
  0x69   : > { %1292 = vmatprep.subr.bf16.mxu1 %v3473_v47  ;;  %v3559_v46 = vld [vmem:[%s4826_s3 + $0x564] ss:$8 sps:$4 sm:$0xff]   ;;  %v3554_v47 = vld [vmem:[%s4826_s3 + $0x460] ss:$8 sps:$4 sm:$0xff]  }
  0x6b   : > { %1050 = vmatpush1.bf16.msra.mxu0 %v3468_v48  ;;  %v3557_v48 = vld [vmem:[%s4826_s3 + $0x560] ss:$8 sps:$4 sm:$0xff]  }
  0x6c   : > { %1293 = vmatpush1.bf16.msra.mxu1 %v3471_v49  ;;  %1051 = vmatprep.subr.bf16.mxu0 %v3476_v50  ;;  %v3562_v49 = vld [vmem:[%s4826_s3 + $0x474] ss:$8 sps:$4 sm:$0xff]  }
  0x6d   : > { %1294 = vmatprep.subr.bf16.mxu1 %v3479_v51  ;;  %v3565_v50 = vld [vmem:[%s4826_s3 + $0x574] ss:$8 sps:$4 sm:$0xff]   ;;  %v3560_v51 = vld [vmem:[%s4826_s3 + $0x470] ss:$8 sps:$4 sm:$0xff]  }
  0x6f   : > { %1052 = vmatpush1.bf16.msra.mxu0 %v3474_v52  ;;  %v3563_v52 = vld [vmem:[%s4826_s3 + $0x570] ss:$8 sps:$4 sm:$0xff]  }
  0x70   : > { %1295 = vmatpush1.bf16.msra.mxu1 %v3477_v53  ;;  %1053 = vmatprep.subr.bf16.mxu0 %v3482_v54  ;;  %v3568_v53 = vld [vmem:[%s4826_s3 + $0x484] ss:$8 sps:$4 sm:$0xff]  }
  0x71   : > { %1296 = vmatprep.subr.bf16.mxu1 %v3485_v55  ;;  %v3571_v54 = vld [vmem:[%s4826_s3 + $0x584] ss:$8 sps:$4 sm:$0xff]   ;;  %v3566_v55 = vld [vmem:[%s4826_s3 + $0x480] ss:$8 sps:$4 sm:$0xff]  }
  0x73   : > { %1054 = vmatpush1.bf16.msra.mxu0 %v3480_v56  ;;  %v3569_v56 = vld [vmem:[%s4826_s3 + $0x580] ss:$8 sps:$4 sm:$0xff]  }
  0x74   : > { %1297 = vmatpush1.bf16.msra.mxu1 %v3483_v57  ;;  %1055 = vmatprep.subr.bf16.mxu0 %v3488_v58  ;;  %v3574_v57 = vld [vmem:[%s4826_s3 + $0x494] ss:$8 sps:$4 sm:$0xff]  }
  0x75   : > { %1298 = vmatprep.subr.bf16.mxu1 %v3491_v59  ;;  %v3577_v58 = vld [vmem:[%s4826_s3 + $0x594] ss:$8 sps:$4 sm:$0xff]   ;;  %v3572_v59 = vld [vmem:[%s4826_s3 + $0x490] ss:$8 sps:$4 sm:$0xff]  }
  0x77   : > { %1056 = vmatpush1.bf16.msra.mxu0 %v3486_v60  ;;  %v3575_v60 = vld [vmem:[%s4826_s3 + $0x590] ss:$8 sps:$4 sm:$0xff]  }
  0x78   : > { %1299 = vmatpush1.bf16.msra.mxu1 %v3489_v61  ;;  %1057 = vmatprep.subr.bf16.mxu0 %v3494_v63  ;;  %v3580_v61 = vld [vmem:[%s4826_s3 + $0x4a4] ss:$8 sps:$4 sm:$0xff]  }
  0x79   : > { %1300 = vmatprep.subr.bf16.mxu1 %v3497_v0  ;;  %v3583_v63 = vld [vmem:[%s4826_s3 + $0x5a4] ss:$8 sps:$4 sm:$0xff]   ;;  %v3578_v0 = vld [vmem:[%s4826_s3 + $0x4a0] ss:$8 sps:$4 sm:$0xff]  }
  0x7b   : > { %1058 = vmatpush1.bf16.msra.mxu0 %v3492_v1  ;;  %v3581_v1 = vld [vmem:[%s4826_s3 + $0x5a0] ss:$8 sps:$4 sm:$0xff]  }
  0x7c   : > { %1301 = vmatpush1.bf16.msra.mxu1 %v3495_v2  ;;  %1059 = vmatprep.subr.bf16.mxu0 %v3500_v3  ;;  %v3586_v2 = vld [vmem:[%s4826_s3 + $0x4b4] ss:$8 sps:$4 sm:$0xff]  }
  0x7d   : > { %1302 = vmatprep.subr.bf16.mxu1 %v3503_v4  ;;  %v3589_v3 = vld [vmem:[%s4826_s3 + $0x5b4] ss:$8 sps:$4 sm:$0xff]   ;;  %v3584_v4 = vld [vmem:[%s4826_s3 + $0x4b0] ss:$8 sps:$4 sm:$0xff]  }
  0x7f   : > { %1060 = vmatpush1.bf16.msra.mxu0 %v3498_v5  ;;  %v3587_v5 = vld [vmem:[%s4826_s3 + $0x5b0] ss:$8 sps:$4 sm:$0xff]  }
  0x80   : > { %1303 = vmatpush1.bf16.msra.mxu1 %v3501_v6  ;;  %1061 = vmatprep.subr.bf16.mxu0 %v3506_v7  ;;  %v3592_v6 = vld [vmem:[%s4826_s3 + $0x4c4] ss:$8 sps:$4 sm:$0xff]  }
  0x81   : > { %1304 = vmatprep.subr.bf16.mxu1 %v3509_v8  ;;  %v3595_v7 = vld [vmem:[%s4826_s3 + $0x5c4] ss:$8 sps:$4 sm:$0xff]   ;;  %v3590_v8 = vld [vmem:[%s4826_s3 + $0x4c0] ss:$8 sps:$4 sm:$0xff]  }
  0x83   : > { %1062 = vmatpush1.bf16.msra.mxu0 %v3504_v9  ;;  %v3593_v9 = vld [vmem:[%s4826_s3 + $0x5c0] ss:$8 sps:$4 sm:$0xff]  }
  0x84   : > { %1305 = vmatpush1.bf16.msra.mxu1 %v3507_v10  ;;  %1063 = vmatprep.subr.bf16.mxu0 %v3512_v11  ;;  %v3598_v10 = vld [vmem:[%s4826_s3 + $0x4d4] ss:$8 sps:$4 sm:$0xff]  }
  0x85   : > { %1306 = vmatprep.subr.bf16.mxu1 %v3515_v12  ;;  %v3601_v11 = vld [vmem:[%s4826_s3 + $0x5d4] ss:$8 sps:$4 sm:$0xff]   ;;  %v3596_v12 = vld [vmem:[%s4826_s3 + $0x4d0] ss:$8 sps:$4 sm:$0xff]  }
  0x87   : > { %1064 = vmatpush1.bf16.msra.mxu0 %v3510_v14  ;;  %v4466_v14 = vld [vmem:[%s332_s9] sm:$0x77] }
  0x88   : > { %1307 = vmatpush1.bf16.msra.mxu1 %v3513_v15  ;;  %1528 = vmatprep.subr.bf16.mxu0 %v3518_v16  ;;  %v3604_v15 = vld [vmem:[%s4826_s3 + $0x4e4] ss:$8 sps:$4 sm:$0xff]  }
  0x89   : > { %1768 = vmatprep.subr.bf16.mxu1 %v3523_v17  ;;  %v3607_v16 = vld [vmem:[%s4826_s3 + $0x5e4] ss:$8 sps:$4 sm:$0xff]   ;;  %v4476_v17 = vcombine.high %v4466_v14, %v4466_v14 }
  0x8a   : > { %1066 = vmatmul.mubr.bf16.vlgmr.msra.gmra.mrb[4].mxu0 %v869_v20  ;;  %v1355_v20 = vshll.u32 %v4298_v22, 16 }
  0x8b   : > { %1309 = vmatmul.mubr.bf16.vlgmr.msra.gmra.mrb[4].mxu1 %v4298_v22  ;;  %1529 = vmatpush1.bf16.msra.mxu0 %v3516_v21  ;;  %v3610_v21 = vld [vmem:[%s4826_s3 + $0x4f4] ss:$8 sps:$4 sm:$0xff]  }
  0x8c   : > { %1769 = vmatpush1.bf16.msra.mxu1 %v3521_v23  ;;  %1530 = vmatprep.subr.bf16.mxu0 %v3526_v62  ;;  %v3613_v23 = vld [vmem:[%s4826_s3 + $0x5f4] ss:$8 sps:$4 sm:$0xff]   ;;  %v1353_v62 = vshrl.u32 %v4298_v22, 16 }
  0x8d   : > { %1770 = vmatprep.subr.bf16.mxu1 %v3529_v24  ;;  %1560 = vmatprep.mubr.bf16.mxu0 %v1365_v25  ;;  %v2097_v24 = vshll.u32 %v4476_v17, 16  ;;  %v3608_v25 = vld [vmem:[%s4826_s3 + $0x4f0] ss:$8 sps:$4 sm:$0xff]  }
  0x8e   : > { %1800 = vmatprep.mubr.bf16.mxu1 %v1605_v26  ;;  %v3611_v26 = vld [vmem:[%s4826_s3 + $0x5f0] ss:$8 sps:$4 sm:$0xff]  }
  0x8f   : > { %1531 = vmatpush1.bf16.msra.mxu0 %v3524_v27  ;;  %v1357_v27 = vrot.slane %v1355_v20, 1  ;;  %v3691_v20 = vld [vmem:[%s4826_s3 + $0x7c4] ss:$8 sps:$4 sm:$0xff]  }
  0x90   : > { %1771 = vmatpush1.bf16.msra.mxu1 %v3527_v28  ;;  %1532 = vmatprep.subr.bf16.mxu0 %v3532_v29  ;;  %v3616_v28 = vld [vmem:[%s4826_s3 + $0x604] ss:$8 sps:$4 sm:$0xff]  }
  0x91   : > { %1772 = vmatprep.subr.bf16.mxu1 %v3535_v30  ;;  %v3619_v29 = vld [vmem:[%s4826_s3 + $0x704] ss:$8 sps:$4 sm:$0xff]   ;;  %v2095_v30 = vshrl.u32 %v4476_v17, 16 }
  0x93   : > { %1533 = vmatpush1.bf16.msra.mxu0 %v3530_v31  ;;  %v2099_v31 = vrot.slane %v2097_v24, 1  ;;  %v3697_v24 = vld [vmem:[%s4826_s3 + $0x7d4] ss:$8 sps:$4 sm:$0xff]  }
  0x94   : > { %1773 = vmatpush1.bf16.msra.mxu1 %v3533_v32  ;;  %1534 = vmatprep.subr.bf16.mxu0 %v3538_v33  ;;  %v1358_v32 = vor.u32 %v1357_v27, %v1353_v62  ;;  %v3614_v33 = vld [vmem:[%s4826_s3 + $0x600] ss:$8 sps:$4 sm:$0xff]   ;;  %v3694_v62 = vld [vmem:[%s4826_s3 + $0x6d4] ss:$8 sps:$4 sm:$0xff]   ;;  %v3695_v27 = vld [vmem:[%s4826_s3 + $0x7d0] ss:$8 sps:$4 sm:$0xff]  }
  0x95   : > { %1774 = vmatprep.subr.bf16.mxu1 %v3541_v34  ;;  %v1604_v34 = vrot.slane %v4298_v22, 1  ;;  %v3620_v22 = vld [vmem:[%s4826_s3 + $0x610] ss:$8 sps:$4 sm:$0xff]  }
  0x97   : > { %1535 = vmatpush1.bf16.msra.mxu0 %v3536_v35  ;;  %v3617_v35 = vld [vmem:[%s4826_s3 + $0x700] ss:$8 sps:$4 sm:$0xff]  }
  0x98   : > { %1775 = vmatpush1.bf16.msra.mxu1 %v3539_v36  ;;  %1536 = vmatprep.subr.bf16.mxu0 %v3544_v37  ;;  %v3622_v36 = vld [vmem:[%s4826_s3 + $0x614] ss:$8 sps:$4 sm:$0xff]  }
  0x99   : > { %1776 = vmatprep.subr.bf16.mxu1 %v3547_v38  ;;  %v3625_v37 = vld [vmem:[%s4826_s3 + $0x714] ss:$8 sps:$4 sm:$0xff]   ;;  %v2100_v38 = vor.u32 %v2099_v31, %v2095_v30  ;;  %v3698_v30 = vld [vmem:[%s4826_s3 + $0x6e0] ss:$8 sps:$4 sm:$0xff]  }
  0x9a   : > { %v3701_v31 = vld [vmem:[%s4826_s3 + $0x7e0] ss:$8 sps:$4 sm:$0xff]  }
  0x9b   : > { %1537 = vmatpush1.bf16.msra.mxu0 %v3542_v39  ;;  %v3623_v39 = vld [vmem:[%s4826_s3 + $0x710] ss:$8 sps:$4 sm:$0xff]  }
  0x9c   : > { %1777 = vmatpush1.bf16.msra.mxu1 %v3545_v40  ;;  %1538 = vmatprep.subr.bf16.mxu0 %v3550_v41  ;;  %v3628_v40 = vld [vmem:[%s4826_s3 + $0x624] ss:$8 sps:$4 sm:$0xff]  }
  0x9d   : > { %1778 = vmatprep.subr.bf16.mxu1 %v3553_v42  ;;  %v3631_v41 = vld [vmem:[%s4826_s3 + $0x724] ss:$8 sps:$4 sm:$0xff]   ;;  %v3626_v42 = vld [vmem:[%s4826_s3 + $0x620] ss:$8 sps:$4 sm:$0xff]  }
  0x9f   : > { %1539 = vmatpush1.bf16.msra.mxu0 %v3548_v43  ;;  %v3629_v43 = vld [vmem:[%s4826_s3 + $0x720] ss:$8 sps:$4 sm:$0xff]  }
  0xa0   : > { %1779 = vmatpush1.bf16.msra.mxu1 %v3551_v44  ;;  %1540 = vmatprep.subr.bf16.mxu0 %v3556_v45  ;;  %v3634_v44 = vld [vmem:[%s4826_s3 + $0x634] ss:$8 sps:$4 sm:$0xff]  }
  0xa1   : > { %1780 = vmatprep.subr.bf16.mxu1 %v3559_v46  ;;  %v3637_v45 = vld [vmem:[%s4826_s3 + $0x734] ss:$8 sps:$4 sm:$0xff]   ;;  %v3632_v46 = vld [vmem:[%s4826_s3 + $0x630] ss:$8 sps:$4 sm:$0xff]  }
  0xa3   : > { %1541 = vmatpush1.bf16.msra.mxu0 %v3554_v47  ;;  %v3635_v47 = vld [vmem:[%s4826_s3 + $0x730] ss:$8 sps:$4 sm:$0xff]  }
  0xa4   : > { %1781 = vmatpush1.bf16.msra.mxu1 %v3557_v48  ;;  %1542 = vmatprep.subr.bf16.mxu0 %v3562_v49  ;;  %v3640_v48 = vld [vmem:[%s4826_s3 + $0x644] ss:$8 sps:$4 sm:$0xff]  }
  0xa5   : > { %1782 = vmatprep.subr.bf16.mxu1 %v3565_v50  ;;  %v3643_v49 = vld [vmem:[%s4826_s3 + $0x744] ss:$8 sps:$4 sm:$0xff]   ;;  %v3638_v50 = vld [vmem:[%s4826_s3 + $0x640] ss:$8 sps:$4 sm:$0xff]  }
  0xa7   : > { %1543 = vmatpush1.bf16.msra.mxu0 %v3560_v51  ;;  %v3641_v51 = vld [vmem:[%s4826_s3 + $0x740] ss:$8 sps:$4 sm:$0xff]  }
  0xa8   : > { %1783 = vmatpush1.bf16.msra.mxu1 %v3563_v52  ;;  %1544 = vmatprep.subr.bf16.mxu0 %v3568_v53  ;;  %v3646_v52 = vld [vmem:[%s4826_s3 + $0x654] ss:$8 sps:$4 sm:$0xff]  }
  0xa9   : > { %1784 = vmatprep.subr.bf16.mxu1 %v3571_v54  ;;  %v3649_v53 = vld [vmem:[%s4826_s3 + $0x754] ss:$8 sps:$4 sm:$0xff]   ;;  %v3644_v54 = vld [vmem:[%s4826_s3 + $0x650] ss:$8 sps:$4 sm:$0xff]  }
  0xab   : > { %1545 = vmatpush1.bf16.msra.mxu0 %v3566_v55  ;;  %v3647_v55 = vld [vmem:[%s4826_s3 + $0x750] ss:$8 sps:$4 sm:$0xff]  }
  0xac   : > { %1785 = vmatpush1.bf16.msra.mxu1 %v3569_v56  ;;  %1546 = vmatprep.subr.bf16.mxu0 %v3574_v57  ;;  %v3652_v56 = vld [vmem:[%s4826_s3 + $0x664] ss:$8 sps:$4 sm:$0xff]  }
  0xad   : > { %1786 = vmatprep.subr.bf16.mxu1 %v3577_v58  ;;  %v3655_v57 = vld [vmem:[%s4826_s3 + $0x764] ss:$8 sps:$4 sm:$0xff]   ;;  %v3650_v58 = vld [vmem:[%s4826_s3 + $0x660] ss:$8 sps:$4 sm:$0xff]  }
  0xaf   : > { %1547 = vmatpush1.bf16.msra.mxu0 %v3572_v59  ;;  %v3653_v59 = vld [vmem:[%s4826_s3 + $0x760] ss:$8 sps:$4 sm:$0xff]  }
  0xb0   : > { %1787 = vmatpush1.bf16.msra.mxu1 %v3575_v60  ;;  %1548 = vmatprep.subr.bf16.mxu0 %v3580_v61  ;;  %v3658_v60 = vld [vmem:[%s4826_s3 + $0x674] ss:$8 sps:$4 sm:$0xff]  }
  0xb1   : > { %1788 = vmatprep.subr.bf16.mxu1 %v3583_v63  ;;  %v3661_v61 = vld [vmem:[%s4826_s3 + $0x774] ss:$8 sps:$4 sm:$0xff]   ;;  %v3656_v63 = vld [vmem:[%s4826_s3 + $0x670] ss:$8 sps:$4 sm:$0xff]  }
  0xb3   : > { %1549 = vmatpush1.bf16.msra.mxu0 %v3578_v0  ;;  %v3659_v0 = vld [vmem:[%s4826_s3 + $0x770] ss:$8 sps:$4 sm:$0xff]  }
  0xb4   : > { %1789 = vmatpush1.bf16.msra.mxu1 %v3581_v1  ;;  %1550 = vmatprep.subr.bf16.mxu0 %v3586_v2  ;;  %v3664_v1 = vld [vmem:[%s4826_s3 + $0x684] ss:$8 sps:$4 sm:$0xff]  }
  0xb5   : > { %1790 = vmatprep.subr.bf16.mxu1 %v3589_v3  ;;  %v3667_v2 = vld [vmem:[%s4826_s3 + $0x784] ss:$8 sps:$4 sm:$0xff]   ;;  %v3662_v3 = vld [vmem:[%s4826_s3 + $0x680] ss:$8 sps:$4 sm:$0xff]  }
  0xb7   : > { %1551 = vmatpush1.bf16.msra.mxu0 %v3584_v4  ;;  %v3665_v4 = vld [vmem:[%s4826_s3 + $0x780] ss:$8 sps:$4 sm:$0xff]  }
  0xb8   : > { %1791 = vmatpush1.bf16.msra.mxu1 %v3587_v5  ;;  %1552 = vmatprep.subr.bf16.mxu0 %v3592_v6  ;;  %v3670_v5 = vld [vmem:[%s4826_s3 + $0x694] ss:$8 sps:$4 sm:$0xff]  }
  0xb9   : > { %1792 = vmatprep.subr.bf16.mxu1 %v3595_v7  ;;  %v3673_v6 = vld [vmem:[%s4826_s3 + $0x794] ss:$8 sps:$4 sm:$0xff]   ;;  %v3668_v7 = vld [vmem:[%s4826_s3 + $0x690] ss:$8 sps:$4 sm:$0xff]  }
  0xbb   : > { %1553 = vmatpush1.bf16.msra.mxu0 %v3590_v8  ;;  %v3671_v8 = vld [vmem:[%s4826_s3 + $0x790] ss:$8 sps:$4 sm:$0xff]  }
  0xbc   : > { %1793 = vmatpush1.bf16.msra.mxu1 %v3593_v9  ;;  %1554 = vmatprep.subr.bf16.mxu0 %v3598_v10  ;;  %v3676_v9 = vld [vmem:[%s4826_s3 + $0x6a4] ss:$8 sps:$4 sm:$0xff]  }
  0xbd   : > { %1794 = vmatprep.subr.bf16.mxu1 %v3601_v11  ;;  %v3679_v10 = vld [vmem:[%s4826_s3 + $0x7a4] ss:$8 sps:$4 sm:$0xff]   ;;  %v3674_v11 = vld [vmem:[%s4826_s3 + $0x6a0] ss:$8 sps:$4 sm:$0xff]  }
  0xbf   : > { %1555 = vmatpush1.bf16.msra.mxu0 %v3596_v12  ;;  %v3677_v12 = vld [vmem:[%s4826_s3 + $0x7a0] ss:$8 sps:$4 sm:$0xff]  }
  0xc0   : > { %1795 = vmatpush1.bf16.msra.mxu1 %v3599_v13  ;;  %1556 = vmatprep.subr.bf16.mxu0 %v3604_v15  ;;  %v3682_v13 = vld [vmem:[%s4826_s3 + $0x6b4] ss:$8 sps:$4 sm:$0xff]  }
  0xc1   : > { %1796 = vmatprep.subr.bf16.mxu1 %v3607_v16  ;;  %v3685_v15 = vld [vmem:[%s4826_s3 + $0x7b4] ss:$8 sps:$4 sm:$0xff]   ;;  %v3680_v16 = vld [vmem:[%s4826_s3 + $0x6b0] ss:$8 sps:$4 sm:$0xff]  }
  0xc3   : > { %1557 = vmatpush1.bf16.msra.mxu0 %v3602_v18  ;;  %v3683_v18 = vld [vmem:[%s4826_s3 + $0x7b0] ss:$8 sps:$4 sm:$0xff]  }
  0xc4   : > { %1797 = vmatpush1.bf16.msra.mxu1 %v3605_v19  ;;  %1558 = vmatprep.subr.bf16.mxu0 %v3610_v21  ;;  %v3688_v19 = vld [vmem:[%s4826_s3 + $0x6c4] ss:$8 sps:$4 sm:$0xff]   ;;  %v3686_v21 = vld [vmem:[%s4826_s3 + $0x6c0] ss:$8 sps:$4 sm:$0xff]  }
  0xc5   : > { %1798 = vmatprep.subr.bf16.mxu1 %v3613_v23  ;;  %v3689_v23 = vld [vmem:[%s4826_s3 + $0x7c0] ss:$8 sps:$4 sm:$0xff]  }
  0xc7   : > { %1559 = vmatpush1.bf16.msra.mxu0 %v3608_v25  ;;  %v4666_v25 = vcombine.low %v4466_v14, %v4466_v14  ;;  %v3703_v14 = vld [vmem:[%s4826_s3 + $0x7e4] ss:$8 sps:$4 sm:$0xff]  }
  0xc8   : > { %1799 = vmatpush1.bf16.msra.mxu1 %v3611_v26  ;;  %2011 = vmatprep.subr.bf16.mxu0 %v3616_v28  ;;  %v3692_v26 = vld [vmem:[%s4826_s3 + $0x6d0] ss:$8 sps:$4 sm:$0xff]   ;;  %v3700_v28 = vld [vmem:[%s4826_s3 + $0x6e4] ss:$8 sps:$4 sm:$0xff]  }
  0xc9   : > { %2263 = vmatprep.subr.bf16.mxu1 %v3619_v29  ;;  %v2090_v29 = vshll.u32 %v4666_v25, 16 }
  0xca   : > { %1561 = vmatmul.mubr.bf16.vlgmr.msra.gmra.mrb[8].mxu0 %v1358_v32  ;;  %v3706_v32 = vld [vmem:[%s4826_s3 + $0x6f4] ss:$8 sps:$4 sm:$0xff]  }
  0xcb   : > { %1801 = vmatmul.mubr.bf16.vlgmr.msra.gmra.mrb[8].mxu1 %v1604_v34  ;;  %2012 = vmatpush1.bf16.msra.mxu0 %v3614_v33  ;;  %v3709_v33 = vld [vmem:[%s4826_s3 + $0x7f4] ss:$8 sps:$4 sm:$0xff]   ;;  %v2088_v34 = vshrl.u32 %v4666_v25, 16 }
  0xcc   : > { %2264 = vmatpush1.bf16.msra.mxu1 %v3617_v35  ;;  %2013 = vmatprep.subr.bf16.mxu0 %v3622_v36  ;;  %v2092_v35 = vrot.slane %v2090_v29, 1  ;;  %v3704_v36 = vld [vmem:[%s4826_s3 + $0x6f0] ss:$8 sps:$4 sm:$0xff]  }
  0xcd   : > { %2265 = vmatprep.subr.bf16.mxu1 %v3625_v37  ;;  %2043 = vmatprep.mubr.bf16.mxu0 %v4476_v17  ;;  %v3707_v37 = vld [vmem:[%s4826_s3 + $0x7f0] ss:$8 sps:$4 sm:$0xff]  }
  0xce   : > { %2295 = vmatprep.mubr.bf16.mxu1 %v2100_v38  ;;  %v3714_v38 = vld [vmem:[%s4826_s3 + $0x804] ss:$8 sps:$4 sm:$0xff]  }
  0xcf   : > { %2014 = vmatpush1.bf16.msra.mxu0 %v3620_v22  ;;  %v2093_v22 = vor.u32 %v2092_v35, %v2088_v34 }
  0xd0   : > { %2266 = vmatpush1.bf16.msra.mxu1 %v3623_v39  ;;  %2015 = vmatprep.subr.bf16.mxu0 %v3628_v40  ;;  %v3712_v39 = vld [vmem:[%s4826_s3 + $0x800] ss:$8 sps:$4 sm:$0xff]   ;;  %v2340_v40 = vrot.slane %v4476_v17, 1 }
  0xd1   : > { %2267 = vmatprep.subr.bf16.mxu1 %v3631_v41  ;;  %v3717_v41 = vld [vmem:[%s4826_s3 + $0x814] ss:$8 sps:$4 sm:$0xff]   ;;  %v3718_v17 = vld [vmem:[%s4826_s3 + $0x820] ss:$8 sps:$4 sm:$0xff]  }
  0xd3   : > { %2016 = vmatpush1.bf16.msra.mxu0 %v3626_v42  ;;  %v3715_v42 = vld [vmem:[%s4826_s3 + $0x810] ss:$8 sps:$4 sm:$0xff]  }
  0xd4   : > { %2268 = vmatpush1.bf16.msra.mxu1 %v3629_v43  ;;  %2017 = vmatprep.subr.bf16.mxu0 %v3634_v44  ;;  %v3720_v43 = vld [vmem:[%s4826_s3 + $0x824] ss:$8 sps:$4 sm:$0xff]   ;;  %v3723_v44 = vld [vmem:[%s4826_s3 + $0x834] ss:$8 sps:$4 sm:$0xff]  }
  0xd5   : > { %2269 = vmatprep.subr.bf16.mxu1 %v3637_v45  ;;  %v3721_v45 = vld [vmem:[%s4826_s3 + $0x830] ss:$8 sps:$4 sm:$0xff]  }
  0xd7   : > { %2018 = vmatpush1.bf16.msra.mxu0 %v3632_v46  ;;  %v3726_v46 = vld [vmem:[%s4826_s3 + $0x844] ss:$8 sps:$4 sm:$0xff]  }
  0xd8   : > { %2270 = vmatpush1.bf16.msra.mxu1 %v3635_v47  ;;  %2019 = vmatprep.subr.bf16.mxu0 %v3640_v48  ;;  %v3724_v47 = vld [vmem:[%s4826_s3 + $0x840] ss:$8 sps:$4 sm:$0xff]   ;;  %v3729_v48 = vld [vmem:[%s4826_s3 + $0x854] ss:$8 sps:$4 sm:$0xff]  }
  0xd9   : > { %2271 = vmatprep.subr.bf16.mxu1 %v3643_v49  ;;  %v3727_v49 = vld [vmem:[%s4826_s3 + $0x850] ss:$8 sps:$4 sm:$0xff]  }
  0xdb   : > { %2020 = vmatpush1.bf16.msra.mxu0 %v3638_v50  ;;  %v3732_v50 = vld [vmem:[%s4826_s3 + $0x864] ss:$8 sps:$4 sm:$0xff]  }
  0xdc   : > { %2272 = vmatpush1.bf16.msra.mxu1 %v3641_v51  ;;  %2021 = vmatprep.subr.bf16.mxu0 %v3646_v52 }
  0xdd   : > { %2273 = vmatprep.subr.bf16.mxu1 %v3649_v53 }
  0xdf   : > { %2022 = vmatpush1.bf16.msra.mxu0 %v3644_v54 }
  0xe0   : > { %2274 = vmatpush1.bf16.msra.mxu1 %v3647_v55  ;;  %2023 = vmatprep.subr.bf16.mxu0 %v3652_v56 }
  0xe1   : > { %2275 = vmatprep.subr.bf16.mxu1 %v3655_v57 }
  0xe3   : > { %2024 = vmatpush1.bf16.msra.mxu0 %v3650_v58  ;;  %v3730_v58 = vld [vmem:[%s4826_s3 + $0x860] ss:$8 sps:$4 sm:$0xff]  }
  0xe4   : > { %2276 = vmatpush1.bf16.msra.mxu1 %v3653_v59  ;;  %2025 = vmatprep.subr.bf16.mxu0 %v3658_v60 }
  0xe5   : > { %2277 = vmatprep.subr.bf16.mxu1 %v3661_v61  ;;  %v3735_v61 = vld [vmem:[%s4826_s3 + $0x874] ss:$8 sps:$4 sm:$0xff]  }
  0xe7   : > { %2026 = vmatpush1.bf16.msra.mxu0 %v3656_v63 }
  0xe8   : > { %2278 = vmatpush1.bf16.msra.mxu1 %v3659_v0  ;;  %2027 = vmatprep.subr.bf16.mxu0 %v3664_v1  ;;  %v3733_v0 = vld [vmem:[%s4826_s3 + $0x870] ss:$8 sps:$4 sm:$0xff]   ;;  %v3738_v1 = vld [vmem:[%s4826_s3 + $0x884] ss:$8 sps:$4 sm:$0xff]  }
  0xe9   : > { %2279 = vmatprep.subr.bf16.mxu1 %v3667_v2  ;;  %v3736_v2 = vld [vmem:[%s4826_s3 + $0x880] ss:$8 sps:$4 sm:$0xff]  }
  0xeb   : > { %2028 = vmatpush1.bf16.msra.mxu0 %v3662_v3  ;;  %v3741_v3 = vld [vmem:[%s4826_s3 + $0x894] ss:$8 sps:$4 sm:$0xff]  }
  0xec   : > { %2280 = vmatpush1.bf16.msra.mxu1 %v3665_v4  ;;  %2029 = vmatprep.subr.bf16.mxu0 %v3670_v5  ;;  %v3739_v4 = vld [vmem:[%s4826_s3 + $0x890] ss:$8 sps:$4 sm:$0xff]   ;;  %v3744_v5 = vld [vmem:[%s4826_s3 + $0x8a4] ss:$8 sps:$4 sm:$0xff]  }
  0xed   : > { %2281 = vmatprep.subr.bf16.mxu1 %v3673_v6  ;;  %v3742_v6 = vld [vmem:[%s4826_s3 + $0x8a0] ss:$8 sps:$4 sm:$0xff]  }
  0xef   : > { %2030 = vmatpush1.bf16.msra.mxu0 %v3668_v7  ;;  %v3747_v7 = vld [vmem:[%s4826_s3 + $0x8b4] ss:$8 sps:$4 sm:$0xff]  }
  0xf0   : > { %2282 = vmatpush1.bf16.msra.mxu1 %v3671_v8  ;;  %2031 = vmatprep.subr.bf16.mxu0 %v3676_v9  ;;  %v3745_v8 = vld [vmem:[%s4826_s3 + $0x8b0] ss:$8 sps:$4 sm:$0xff]   ;;  %v3750_v9 = vld [vmem:[%s4826_s3 + $0x8c4] ss:$8 sps:$4 sm:$0xff]  }
  0xf1   : > { %2283 = vmatprep.subr.bf16.mxu1 %v3679_v10  ;;  %v3748_v10 = vld [vmem:[%s4826_s3 + $0x8c0] ss:$8 sps:$4 sm:$0xff]  }
  0xf3   : > { %2032 = vmatpush1.bf16.msra.mxu0 %v3674_v11  ;;  %v3753_v11 = vld [vmem:[%s4826_s3 + $0x8d4] ss:$8 sps:$4 sm:$0xff]  }
  0xf4   : > { %2284 = vmatpush1.bf16.msra.mxu1 %v3677_v12  ;;  %2033 = vmatprep.subr.bf16.mxu0 %v3682_v13  ;;  %v3751_v12 = vld [vmem:[%s4826_s3 + $0x8d0] ss:$8 sps:$4 sm:$0xff]   ;;  %v3756_v13 = vld [vmem:[%s4826_s3 + $0x8e4] ss:$8 sps:$4 sm:$0xff]  }
  0xf5   : > { %2285 = vmatprep.subr.bf16.mxu1 %v3685_v15  ;;  %v3754_v15 = vld [vmem:[%s4826_s3 + $0x8e0] ss:$8 sps:$4 sm:$0xff]  }
  0xf7   : > { %2034 = vmatpush1.bf16.msra.mxu0 %v3680_v16  ;;  %v3759_v16 = vld [vmem:[%s4826_s3 + $0x8f4] ss:$8 sps:$4 sm:$0xff]  }
  0xf8   : > { %2286 = vmatpush1.bf16.msra.mxu1 %v3683_v18  ;;  %2035 = vmatprep.subr.bf16.mxu0 %v3688_v19  ;;  %v3757_v18 = vld [vmem:[%s4826_s3 + $0x8f0] ss:$8 sps:$4 sm:$0xff]   ;;  %v2339_v19 = vrot.slane %v4666_v25, 1 }
  0xf9   : > { %2287 = vmatprep.subr.bf16.mxu1 %v3691_v20 }
  0xfb   : > { %2036 = vmatpush1.bf16.msra.mxu0 %v3686_v21 }
  0xfc   : > { %2288 = vmatpush1.bf16.msra.mxu1 %v3689_v23  ;;  %2037 = vmatprep.subr.bf16.mxu0 %v3694_v62 }
  0xfd   : > { %2289 = vmatprep.subr.bf16.mxu1 %v3697_v24 }
  0xff   : > { %2038 = vmatpush1.bf16.msra.mxu0 %v3692_v26 }
 0x100   : > { %2290 = vmatpush1.bf16.msra.mxu1 %v3695_v27  ;;  %2039 = vmatprep.subr.bf16.mxu0 %v3700_v28 }
 0x101   : > { %2291 = vmatprep.subr.bf16.mxu1 %v3703_v14 }
 0x103   : > { %2040 = vmatpush1.bf16.msra.mxu0 %v3698_v30 }
 0x104   : > { %2292 = vmatpush1.bf16.msra.mxu1 %v3701_v31  ;;  %2041 = vmatprep.subr.bf16.mxu0 %v3706_v32 }
 0x105   : > { %2293 = vmatprep.subr.bf16.mxu1 %v3709_v33 }
 0x107   : > { %2042 = vmatpush1.bf16.msra.mxu0 %v3704_v36 }
 0x108   : > { %2294 = vmatpush1.bf16.msra.mxu1 %v3707_v37  ;;  %2503 = vmatprep.subr.bf16.mxu0 %v3714_v38 }
 0x10a   : > { %2044 = vmatmul.mubr.bf16.vlgmr.msra.gmra.mrb[12].mxu0 %v4666_v25 }
 0x10b   : > { %2296 = vmatmul.mubr.bf16.vlgmr.msra.gmra.mrb[12].mxu1 %v2093_v22  ;;  %2504 = vmatpush1.bf16.msra.mxu0 %v3712_v39 }
 0x10c   : > { %2535 = vmatprep.mubr.bf16.mxu0 %v2340_v40  ;;  %2505 = vmatprep.subr.bf16.mxu0 %v3717_v41 }
 0x10f   : > { %2506 = vmatpush1.bf16.msra.mxu0 %v3715_v42 }
 0x110   : > { %2507 = vmatprep.subr.bf16.mxu0 %v3720_v43 }
 0x113   : > { %2508 = vmatpush1.bf16.msra.mxu0 %v3718_v17 }
 0x114   : > { %2509 = vmatprep.subr.bf16.mxu0 %v3723_v44 }
 0x117   : > { %2510 = vmatpush1.bf16.msra.mxu0 %v3721_v45 }
 0x118   : > { %2511 = vmatprep.subr.bf16.mxu0 %v3726_v46 }
 0x11b   : > { %2512 = vmatpush1.bf16.msra.mxu0 %v3724_v47 }
 0x11c   : > { %2513 = vmatprep.subr.bf16.mxu0 %v3729_v48 }
 0x11d   : > { %v626_v51 = vpop.f32.mrb[0].mxu0 }
 0x11e   : > { %v829_v52 = vpop.f32.mrb[0].mxu1  ;;  %v628_v54 = vpop.f32.mrb[1].mxu0 }
 0x11f   : > { %v830_v53 = vadd.f32 %v829_v52, %v626_v51  ;;  %v831_v55 = vpop.f32.mrb[1].mxu1  ;;  %v630_v57 = vpop.f32.mrb[2].mxu0  ;;  %2514 = vmatpush1.bf16.msra.mxu0 %v3727_v49 }
 0x120   : > { %v832_v56 = vadd.f32 %v831_v55, %v628_v54  ;;  %v833_v59 = vpop.f32.mrb[2].mxu1  ;;  %v631_v60 = vpop.f32.mrb[3].mxu0  ;;  %2515 = vmatprep.subr.bf16.mxu0 %v3732_v50 }
 0x121   : > { %v834_v63 = vpop.f32.mrb[3].mxu1 }
 0x123   : > { %2516 = vmatpush1.bf16.msra.mxu0 %v3730_v58 }
 0x124   : > { %2517 = vmatprep.subr.bf16.mxu0 %v3735_v61 }
 0x127   : > { %2518 = vmatpush1.bf16.msra.mxu0 %v3733_v0 }
 0x128   : > { %2519 = vmatprep.subr.bf16.mxu0 %v3738_v1 }
 0x12b   : > { %2520 = vmatpush1.bf16.msra.mxu0 %v3736_v2 }
 0x12c   : > { %2521 = vmatprep.subr.bf16.mxu0 %v3741_v3 }
 0x12f   : > { %2522 = vmatpush1.bf16.msra.mxu0 %v3739_v4 }
 0x130   : > { %2523 = vmatprep.subr.bf16.mxu0 %v3744_v5 }
 0x133   : > { %2524 = vmatpush1.bf16.msra.mxu0 %v3742_v6 }
 0x134   : > { %2525 = vmatprep.subr.bf16.mxu0 %v3747_v7 }
 0x137   : > { %2526 = vmatpush1.bf16.msra.mxu0 %v3745_v8 }
 0x138   : > { %2527 = vmatprep.subr.bf16.mxu0 %v3750_v9 }
 0x13b   : > { %2528 = vmatpush1.bf16.msra.mxu0 %v3748_v10 }
 0x13c   : > { %2529 = vmatprep.subr.bf16.mxu0 %v3753_v11 }
 0x13f   : > { %2530 = vmatpush1.bf16.msra.mxu0 %v3751_v12 }
 0x140   : > { %2531 = vmatprep.subr.bf16.mxu0 %v3756_v13 }
 0x143   : > { %2532 = vmatpush1.bf16.msra.mxu0 %v3754_v15 }
 0x144   : > { %2533 = vmatprep.subr.bf16.mxu0 %v3759_v16 }
 0x147   : > { %2534 = vmatpush1.bf16.msra.mxu0 %v3757_v18 }
 0x14a   : > { %2536 = vmatmul.mubr.bf16.vlgmr.msra.gmra.mrb[16].mxu0 %v2339_v19 }
 0x15d   : > { %v1067_v20 = vpop.f32.mrb[4].mxu0 }
 0x15e   : > { %v1310_v21 = vpop.f32.mrb[4].mxu1  ;;  %v1074_v23 = vadd.f32 %v1067_v20, %v830_v53  ;;  %v1069_v62 = vpop.f32.mrb[5].mxu0  ;;  %v2548_v53 = vlaneseq }
 0x15f   : > { %v1312_v24 = vpop.f32.mrb[5].mxu1  ;;  %v1075_v26 = vadd.f32 %v1069_v62, %v832_v56  ;;  %v1071_v27 = vpop.f32.mrb[6].mxu0  ;;  %v2546_v56 = vld [vmem:[%s4827_s4] sm:$0x3] }
 0x160   : > { %v1314_v28 = vpop.f32.mrb[6].mxu1  ;;  %v1317_v14 = vadd.f32 %v1310_v21, %v1074_v23  ;;  %v1072_v29 = vpop.f32.mrb[7].mxu0  ;;  %v2549_v54 = vshrl.u32 %v2548_v53, 7 }
 0x161   : > { %v1315_v30 = vpop.f32.mrb[7].mxu1  ;;  %v1318_v31 = vadd.f32 %v1312_v24, %v1075_v26 }
 0x162   : > { %v2550_v55 = vsub.s32 0, %v2549_v54  ;;  %v2554_v57 = vsub.s32 1, %v2549_v54 }
 0x164   : > { %v2551_v58 = vrot.slane %v2546_v56, %v2550_v55  ;;  %v2555_v60 = vrot.slane %v2546_v56, %v2554_v57 }
 0x19d   : > { %v1562_v32 = vpop.f32.mrb[8].mxu0 }
 0x19e   : > { %v1802_v33 = vpop.f32.mrb[8].mxu1  ;;  %v1569_v34 = vadd.f32 %v1562_v32, %v1317_v14  ;;  %v1564_v35 = vpop.f32.mrb[9].mxu0 }
 0x19f   : > { %v1804_v36 = vpop.f32.mrb[9].mxu1  ;;  %v1570_v25 = vadd.f32 %v1564_v35, %v1318_v31  ;;  %v1566_v37 = vpop.f32.mrb[10].mxu0 }
 0x1a0   : > { %v1806_v38 = vpop.f32.mrb[10].mxu1  ;;  %v1809_v22 = vadd.f32 %v1802_v33, %v1569_v34  ;;  %v1567_v39 = vpop.f32.mrb[11].mxu0 }
 0x1a1   : > { %v1807_v40 = vpop.f32.mrb[11].mxu1  ;;  %v1810_v41 = vadd.f32 %v1804_v36, %v1570_v25 }
 0x1dd   : > { %v2045_v42 = vpop.f32.mrb[12].mxu0 }
 0x1de   : > { %v2297_v43 = vpop.f32.mrb[12].mxu1  ;;  %v2052_v17 = vadd.f32 %v2045_v42, %v1809_v22  ;;  %v2047_v44 = vpop.f32.mrb[13].mxu0 }
 0x1df   : > { %v2299_v45 = vpop.f32.mrb[13].mxu1  ;;  %v2053_v46 = vadd.f32 %v2047_v44, %v1810_v41  ;;  %v2049_v47 = vpop.f32.mrb[14].mxu0 }
 0x1e0   : > { %v2301_v48 = vpop.f32.mrb[14].mxu1  ;;  %v2304_v49 = vadd.f32 %v2297_v43, %v2052_v17  ;;  %v2050_v50 = vpop.f32.mrb[15].mxu0 }
 0x1e1   : > { %v2302_v51 = vpop.f32.mrb[15].mxu1  ;;  %v2305_v52 = vadd.f32 %v2299_v45, %v2053_v46 }
 0x21d   : > { %v2537_v59 = vpop.f32.mrb[16].mxu0 }
 0x21e   : > { %v2544_v61 = vadd.f32 %v2537_v59, %v2304_v49  ;;  %v2539_v63 = vpop.f32.mrb[17].mxu0 }
 0x21f   : > { %v2545_v0 = vadd.f32 %v2539_v63, %v2305_v52  ;;  %v2541_v1 = vpop.f32.mrb[18].mxu0 }
 0x220   : > { %v2558_v2 = vadd.f32 %v2551_v58, %v2544_v61  ;;  %v2542_v3 = vpop.f32.mrb[19].mxu0 }
 0x221   : > { %v2559_v4 = vadd.f32 %v2555_v60, %v2545_v0 }
 0x222   : > { %v2560_v5 = vmax.f32 %v2558_v2, 0.0 }
 0x223   : > { %v2561_v6 = vmax.f32 %v2559_v4, 0.0 }
 0x225   : > { %v3277_v7 = vpack.c.bf16 %v2561_v6, %v2560_v5 }
 0x227   : > { %3278 = vst.sshfl [vmem:[%s342_s13] sm:$0x33 pattern:$0x76325410] %v3277_v7 }
 0x228 PF: > { %s15_s22 = sadd.s32 1, %s3798_s22   ;;  %s4829_s18 = smov %s3790_s20 }
 0x229   : > { %p12_p10 = scmp.ge.s32.totalorder %s15_s22, 10   ;;  %s4830_s19 = smov %s3794_s21 }
 0x22a   : > { %s4831_s20 = smov %s4834_s23  ;;  %s4832_s21 = smov %s4838_s24 }
 0x22b   :  { %14 = sbr.rel (!%p12_p10) target bundleno = 3 (0x3), region = 84 }

</bundles_post_ra>
